<compile_context>
chip_gen: v5e
topology: v5e:2x2
jax: 0.10.0
libtpu: 0.0.40
codegen_flags: <defaults>
</compile_context>

<pallas_src>
import jax
import jax.numpy as jnp
from jax.experimental import pallas as pl
from jax.experimental.pallas import tpu as pltpu

SELU_ALPHA = 1.6732632423543772
SELU_SCALE = 1.0507009873554805
NEG_INF = -1e30


# ----------------------------------------------------------------------------
# Fused forward kernel
# ----------------------------------------------------------------------------
def _landmark_gat_kernel(
        x_ref, maskw_ref, mask1_ref, rwide_ref, rwide_t_ref, tile_eye_ref,
        rep_ref, bm1_ref, bm2_ref,
        w1_ref, s1_ref, d1_ref, bn1s_ref, bn1b_ref,
        w2_ref, s2_ref, d2_ref, bn2s_ref, bn2b_ref,
        w3_ref, s3_ref, d3_ref, b3_ref,
        wp_ref, bp_ref,
        xs_ref, scores_ref):
    maskw = maskw_ref[...]        # (N, H*N)  additive -1e30 edge mask, per-head tiled
    rwide = rwide_ref[...]        # (H, H*N)  rwide[h, h*N+j] = 1  (widen per-head)
    rwide_t = rwide_t_ref[...]    # (H*N, H)  segment-sum selector (denominators)
    tile_eye = tile_eye_ref[...]  # (N, H*N)  [I_N | I_N | ...]
    rep = rep_ref[...]            # (H*N, N)  [I_N ; I_N ; ...]  bf16 0/1

    def gat_multi(x_bf, w_ref, ws_ref, wd_ref, bm_ref):
        # Linear transform: lane-dense (N, H*C) in a single bf16 MXU matmul.
        xw = jnp.dot(x_bf, w_ref[...], preferred_element_type=jnp.float32)
        # Attention logits from folded weights x @ (W . att): (N, H).
        a_src = jnp.dot(x_bf, ws_ref[...], preferred_element_type=jnp.float32)
        a_dst = jnp.dot(x_bf, wd_ref[...], preferred_element_type=jnp.float32)
        # Widen to the head-segmented (N, H*N) layout with tiny 0/1 matmuls.
        a_dst_w = jnp.dot(a_dst, rwide, preferred_element_type=jnp.float32)
        a_src_w = jnp.sum(
            jnp.dot(a_src, rwide, preferred_element_type=jnp.float32) * tile_eye,
            axis=0, keepdims=True)                       # (1, H*N): a_src[j, h]
        e = a_dst_w + a_src_w                            # e[i, h*N+j]
        e = jnp.maximum(e, 0.2 * e) + maskw              # LeakyReLU(0.2) + mask
        # Softmax per (target i, head h) segment; per-row max over all heads is
        # a valid (exact) shift and overflow-safe.
        m = jnp.max(e, axis=1, keepdims=True)
        p = jnp.exp(e - m)
        denom = jnp.dot(p, rwide_t, preferred_element_type=jnp.float32)   # (N, H)
        inv_w = jnp.dot(pl.reciprocal(denom, approx=True), rwide,
                        preferred_element_type=jnp.float32)               # (N, H*N)
        alpha = (p * inv_w).astype(jnp.bfloat16)
        # Aggregation: one lane-dense matmul against a block-diag copy of xw.
        xw_bd = (jnp.dot(rep, xw.astype(jnp.bfloat16),
                         preferred_element_type=jnp.float32)
                 * bm_ref[...]).astype(jnp.bfloat16)
        return jnp.dot(alpha, xw_bd, preferred_element_type=jnp.float32)

    def bn_selu(y, sc_ref, sh_ref):
        # Eval-mode BatchNorm folded to scale/shift (GAT bias folded into the
        # shift outside the kernel), fused with SELU.
        y = y * sc_ref[...] + sh_ref[...]
        return SELU_SCALE * jnp.where(
            y > 0, y, SELU_ALPHA * (jnp.exp(jnp.minimum(y, 0.0)) - 1.0))

    x_bf = x_ref[...].astype(jnp.bfloat16)
    h = gat_multi(x_bf, w1_ref, s1_ref, d1_ref, bm1_ref)
    h = bn_selu(h, bn1s_ref, bn1b_ref).astype(jnp.bfloat16)   # dropout: eval -> id
    h = gat_multi(h, w2_ref, s2_ref, d2_ref, bm2_ref)
    h = bn_selu(h, bn2s_ref, bn2b_ref).astype(jnp.bfloat16)   # dropout: eval -> id

    # gat3: heads=1, concat=False (mean over a single head == identity).
    xw3 = jnp.dot(h, w3_ref[...], preferred_element_type=jnp.float32)     # (N, 16)
    a_src3 = jnp.dot(h, s3_ref[...], preferred_element_type=jnp.float32)  # (N, 1)
    a_dst3 = jnp.dot(h, d3_ref[...], preferred_element_type=jnp.float32)  # (N, 1)
    e3 = a_dst3 + a_src3.T
    e3 = jnp.maximum(e3, 0.2 * e3) + mask1_ref[...]
    m3 = jnp.max(e3, axis=1, keepdims=True)
    p3 = jnp.exp(e3 - m3)
    alpha3 = (p3 * pl.reciprocal(jnp.sum(p3, axis=1, keepdims=True),
                                 approx=True)).astype(jnp.bfloat16)
    out3 = jnp.dot(alpha3, xw3.astype(jnp.bfloat16),
                   preferred_element_type=jnp.float32) + b3_ref[...]

    # GraphPool scores (dropout: eval -> identity); top-k gather stays in JAX.
    z = jnp.dot(out3, wp_ref[...], preferred_element_type=jnp.float32) + bp_ref[...]
    s = pl.reciprocal(1.0 + jnp.exp(-z), approx=True)
    scores_ref[...] = s
    xs_ref[...] = out3 * s


# ----------------------------------------------------------------------------
# Parameters (deterministic init)
# ----------------------------------------------------------------------------
def init_params(key, in_dim, h1=32, h2=16, out_dim=16, heads=8):
    ks = jax.random.split(key, 24)

    def glorot(k, shape):
        lim = (6.0 / (shape[0] + shape[-1])) ** 0.5
        return jax.random.uniform(k, shape, jnp.float32, -lim, lim)

    def bn_params(kg, kb, km, kv, c):
        return dict(
            gamma=1.0 + 0.05 * jax.random.normal(kg, (1, c), jnp.float32),
            beta=0.05 * jax.random.normal(kb, (1, c), jnp.float32),
            mean=0.05 * jax.random.normal(km, (1, c), jnp.float32),
            var=1.0 + 0.1 * jax.random.uniform(kv, (1, c), jnp.float32),
        )

    return dict(
        gat1=dict(w=glorot(ks[0], (in_dim, heads * h1)),
                  att_src=glorot(ks[1], (heads, h1)),
                  att_dst=glorot(ks[2], (heads, h1)),
                  bias=0.01 * jax.random.normal(ks[3], (1, heads * h1))),
        gat2=dict(w=glorot(ks[4], (heads * h1, heads * h2)),
                  att_src=glorot(ks[5], (heads, h2)),
                  att_dst=glorot(ks[6], (heads, h2)),
                  bias=0.01 * jax.random.normal(ks[7], (1, heads * h2))),
        gat3=dict(w=glorot(ks[8], (heads * h2, out_dim)),
                  att_src=glorot(ks[9], (1, out_dim)),
                  att_dst=glorot(ks[10], (1, out_dim)),
                  bias=0.01 * jax.random.normal(ks[11], (1, out_dim))),
        bn1=bn_params(ks[12], ks[13], ks[14], ks[15], heads * h1),
        bn2=bn_params(ks[16], ks[17], ks[18], ks[19], heads * h2),
        pool=dict(w=glorot(ks[20], (out_dim, 1)),
                  b=0.01 * jax.random.normal(ks[21], (1, 1))),
    )


# ----------------------------------------------------------------------------
# Full forward
# ----------------------------------------------------------------------------
def landmark_gat_forward(x, adj, params, *, heads=8, h1=32, h2=16, out_dim=16,
                         pooling_ratio=0.5):
    b, n, f = x.shape
    ntot = b * n
    xf = x.reshape(ntot, f).astype(jnp.float32)

    # ---- graph / param preprocessing (plain JAX, outside the kernel) --------
    addmask = jnp.where(adj > 0, 0.0, NEG_INF).astype(jnp.float32)    # (N, N)
    maskw = jnp.tile(addmask, (1, heads))                             # (N, H*N)
    eye = jnp.eye(ntot, dtype=jnp.float32)
    eye_h = jnp.eye(heads, dtype=jnp.float32)
    rwide = jnp.kron(eye_h, jnp.ones((1, ntot), jnp.float32))         # (H, H*N)
    rwide_t = rwide.T                                                 # (H*N, H)
    tile_eye = jnp.tile(eye, (1, heads))                              # (N, H*N)
    rep = jnp.tile(eye, (heads, 1)).astype(jnp.bfloat16)              # (H*N, N)
    bm1 = jnp.kron(eye_h, jnp.ones((ntot, h1), jnp.float32))          # (H*N, H*h1)
    bm2 = jnp.kron(eye_h, jnp.ones((ntot, h2), jnp.float32))          # (H*N, H*h2)

    def fold_att(w, att, nh, oc):
        # (F, nh*oc), (nh, oc) -> (F, nh): fold att into W so attention logits
        # become a single matmul x @ (W . att) inside the kernel.
        return jnp.einsum('fhc,hc->fh', w.reshape(w.shape[0], nh, oc), att)

    def bn_fold(bn, bias):
        # Fold eval BatchNorm to scale/shift and absorb the GATConv bias:
        # (agg + bias) * scale + shift  ==  agg * scale + (bias*scale + shift).
        scale = bn['gamma'] / jnp.sqrt(bn['var'] + 1e-5)
        shift = bn['beta'] - bn['mean'] * scale + bias * scale
        return scale.astype(jnp.float32), shift.astype(jnp.float32)

    bf = jnp.bfloat16
    g1, g2, g3 = params['gat1'], params['gat2'], params['gat3']
    bn1s, bn1b = bn_fold(params['bn1'], g1['bias'])
    bn2s, bn2b = bn_fold(params['bn2'], g2['bias'])

    args = (
        xf, maskw, addmask, rwide, rwide_t, tile_eye, rep, bm1, bm2,
        g1['w'].astype(bf),
        fold_att(g1['w'], g1['att_src'], heads, h1).astype(bf),
        fold_att(g1['w'], g1['att_dst'], heads, h1).astype(bf),
        bn1s, bn1b,
        g2['w'].astype(bf),
        fold_att(g2['w'], g2['att_src'], heads, h2).astype(bf),
        fold_att(g2['w'], g2['att_dst'], heads, h2).astype(bf),
        bn2s, bn2b,
        g3['w'].astype(bf),
        fold_att(g3['w'], g3['att_src'], 1, out_dim).astype(bf),
        fold_att(g3['w'], g3['att_dst'], 1, out_dim).astype(bf),
        g3['bias'],
        params['pool']['w'], params['pool']['b'],
    )

    xs, scores = pl.pallas_call(
        _landmark_gat_kernel,
        out_shape=(jax.ShapeDtypeStruct((ntot, out_dim), jnp.float32),
                   jax.ShapeDtypeStruct((ntot, 1), jnp.float32)),
        in_specs=[pl.BlockSpec(memory_space=pltpu.MemorySpace.VMEM)] * len(args),
        out_specs=(pl.BlockSpec(memory_space=pltpu.MemorySpace.VMEM),
                   pl.BlockSpec(memory_space=pltpu.MemorySpace.VMEM)),
        compiler_params=pltpu.CompilerParams(vmem_limit_bytes=32 * 1024 * 1024),
    )(*args)

    # GraphPool: top-k node selection + gather.
    scores = scores.reshape(b, n)
    xs = xs.reshape(b, n, out_dim)
    k = max(int(n * pooling_ratio), 1)
    # TODO(synk): torch.topk + gather have no clean Pallas TPU primitive; done
    # with lax.top_k / take_along_axis in plain JAX (tie-break order may differ).
    _, idx = jax.lax.top_k(scores, k)
    pooled = jnp.take_along_axis(
        xs, jnp.broadcast_to(idx[:, :, None], (b, k, out_dim)), axis=1)
    return pooled


# ----------------------------------------------------------------------------
def main():
    batch, num_nodes, in_dim = 2, 16, 8
    ntot = batch * num_nodes

    key = jax.random.PRNGKey(0)
    kx, kp = jax.random.split(key)
    x = jax.random.normal(kx, (batch, num_nodes, in_dim), jnp.float32)

    # Bidirectional ring graph per sample, indices offset into the flat batch.
    srcs, dsts = [], []
    for bi in range(batch):
        off = bi * num_nodes
        for i in range(num_nodes):
            j = (i + 1) % num_nodes
            srcs += [off + i, off + j]
            dsts += [off + j, off + i]
    edge_index = jnp.array([srcs, dsts], dtype=jnp.int32)           # (2, E)

    # adj[i, j] = 1 iff edge j -> i, plus self loops (GATConv default).
    adj = jnp.zeros((ntot, ntot), jnp.float32)
    adj = adj.at[edge_index[1], edge_index[0]].set(1.0)
    adj = jnp.maximum(adj, jnp.eye(ntot, dtype=jnp.float32))

    params = init_params(kp, in_dim)

    out = landmark_gat_forward(x, adj, params)
    out = jax.block_until_ready(out)
    assert out.shape == (batch, num_nodes // 2, 16), out.shape
    assert bool(jnp.all(jnp.isfinite(out)))
    print("KERNEL_OK")


if __name__ == "__main__":
    main()
</pallas_src>

<mosaic_0001>
module attributes {stable_mosaic.version = 11 : i64} {
  func.func @_landmark_gat_kernel(%arg0: memref<32x8xf32, #tpu.memory_space<vmem>>, %arg1: memref<32x256xf32, #tpu.memory_space<vmem>>, %arg2: memref<32x32xf32, #tpu.memory_space<vmem>>, %arg3: memref<8x256xf32, #tpu.memory_space<vmem>>, %arg4: memref<256x8xf32, #tpu.memory_space<vmem>>, %arg5: memref<32x256xf32, #tpu.memory_space<vmem>>, %arg6: memref<256x32xbf16, #tpu.memory_space<vmem>>, %arg7: memref<256x256xf32, #tpu.memory_space<vmem>>, %arg8: memref<256x128xf32, #tpu.memory_space<vmem>>, %arg9: memref<8x256xbf16, #tpu.memory_space<vmem>>, %arg10: memref<8x8xbf16, #tpu.memory_space<vmem>>, %arg11: memref<8x8xbf16, #tpu.memory_space<vmem>>, %arg12: memref<1x256xf32, #tpu.memory_space<vmem>>, %arg13: memref<1x256xf32, #tpu.memory_space<vmem>>, %arg14: memref<256x128xbf16, #tpu.memory_space<vmem>>, %arg15: memref<256x8xbf16, #tpu.memory_space<vmem>>, %arg16: memref<256x8xbf16, #tpu.memory_space<vmem>>, %arg17: memref<1x128xf32, #tpu.memory_space<vmem>>, %arg18: memref<1x128xf32, #tpu.memory_space<vmem>>, %arg19: memref<128x16xbf16, #tpu.memory_space<vmem>>, %arg20: memref<128x1xbf16, #tpu.memory_space<vmem>>, %arg21: memref<128x1xbf16, #tpu.memory_space<vmem>>, %arg22: memref<1x16xf32, #tpu.memory_space<vmem>>, %arg23: memref<16x1xf32, #tpu.memory_space<vmem>>, %arg24: memref<1x1xf32, #tpu.memory_space<vmem>>, %arg25: memref<32x16xf32, #tpu.memory_space<vmem>>, %arg26: memref<32x1xf32, #tpu.memory_space<vmem>>) attributes {dimension_semantics = [], scalar_prefetch = 0 : i64, scratch_operands = 0 : i64, tpu.core_type = #tpu.core_type<tc>} {
    %c0 = arith.constant 0 : index
    %c0_0 = arith.constant 0 : index
    %0 = vector.load %arg1[%c0, %c0_0] : memref<32x256xf32, #tpu.memory_space<vmem>>, vector<32x256xf32>
    %c0_1 = arith.constant 0 : index
    %c0_2 = arith.constant 0 : index
    %1 = vector.load %arg3[%c0_1, %c0_2] : memref<8x256xf32, #tpu.memory_space<vmem>>, vector<8x256xf32>
    %c0_3 = arith.constant 0 : index
    %c0_4 = arith.constant 0 : index
    %2 = vector.load %arg4[%c0_3, %c0_4] : memref<256x8xf32, #tpu.memory_space<vmem>>, vector<256x8xf32>
    %c0_5 = arith.constant 0 : index
    %c0_6 = arith.constant 0 : index
    %3 = vector.load %arg5[%c0_5, %c0_6] : memref<32x256xf32, #tpu.memory_space<vmem>>, vector<32x256xf32>
    %c0_7 = arith.constant 0 : index
    %c0_8 = arith.constant 0 : index
    %4 = vector.load %arg6[%c0_7, %c0_8] : memref<256x32xbf16, #tpu.memory_space<vmem>>, vector<256x32xbf16>
    %c0_9 = arith.constant 0 : index
    %c0_10 = arith.constant 0 : index
    %5 = vector.load %arg0[%c0_9, %c0_10] : memref<32x8xf32, #tpu.memory_space<vmem>>, vector<32x8xf32>
    %6 = arith.truncf %5 : vector<32x8xf32> to vector<32x8xbf16>
    %c0_11 = arith.constant 0 : index
    %c0_12 = arith.constant 0 : index
    %7 = vector.load %arg9[%c0_11, %c0_12] : memref<8x256xbf16, #tpu.memory_space<vmem>>, vector<8x256xbf16>
    %cst = arith.constant dense<0.000000e+00> : vector<32x256xf32>
    %8 = tpu.matmul %6, %7, %cst {dimension_numbers = #tpu.dot_dimension_numbers<[1], [0], [0], [1], [0, 0, 1, 1], [], []>} : vector<32x8xbf16>, vector<8x256xbf16>, vector<32x256xf32> -> vector<32x256xf32>
    %c0_13 = arith.constant 0 : index
    %c0_14 = arith.constant 0 : index
    %9 = vector.load %arg10[%c0_13, %c0_14] : memref<8x8xbf16, #tpu.memory_space<vmem>>, vector<8x8xbf16>
    %cst_15 = arith.constant dense<0.000000e+00> : vector<32x8xf32>
    %10 = tpu.matmul %6, %9, %cst_15 {dimension_numbers = #tpu.dot_dimension_numbers<[1], [0], [0], [1], [0, 0, 1, 1], [], []>} : vector<32x8xbf16>, vector<8x8xbf16>, vector<32x8xf32> -> vector<32x8xf32>
    %c0_16 = arith.constant 0 : index
    %c0_17 = arith.constant 0 : index
    %11 = vector.load %arg11[%c0_16, %c0_17] : memref<8x8xbf16, #tpu.memory_space<vmem>>, vector<8x8xbf16>
    %cst_18 = arith.constant dense<0.000000e+00> : vector<32x8xf32>
    %12 = tpu.matmul %6, %11, %cst_18 {dimension_numbers = #tpu.dot_dimension_numbers<[1], [0], [0], [1], [0, 0, 1, 1], [], []>} : vector<32x8xbf16>, vector<8x8xbf16>, vector<32x8xf32> -> vector<32x8xf32>
    %cst_19 = arith.constant dense<0.000000e+00> : vector<32x256xf32>
    %13 = tpu.matmul %12, %1, %cst_19 {dimension_numbers = #tpu.dot_dimension_numbers<[1], [0], [0], [1], [0, 0, 1, 1], [], []>} : vector<32x8xf32>, vector<8x256xf32>, vector<32x256xf32> -> vector<32x256xf32>
    %cst_20 = arith.constant dense<0.000000e+00> : vector<32x256xf32>
    %14 = tpu.matmul %10, %1, %cst_20 {dimension_numbers = #tpu.dot_dimension_numbers<[1], [0], [0], [1], [0, 0, 1, 1], [], []>} : vector<32x8xf32>, vector<8x256xf32>, vector<32x256xf32> -> vector<32x256xf32>
    %15 = arith.mulf %14, %3 : vector<32x256xf32>
    %cst_21 = arith.constant dense<0.000000e+00> : vector<256xf32>
    %16 = vector.multi_reduction <add>, %15, %cst_21 [0] : vector<32x256xf32> to vector<256xf32>
    %17 = vector.shape_cast %16 : vector<256xf32> to vector<1x256xf32>
    %18 = vector.broadcast %17 : vector<1x256xf32> to vector<32x256xf32>
    %19 = arith.addf %13, %18 : vector<32x256xf32>
    %cst_22 = arith.constant 2.000000e-01 : f32
    %20 = vector.broadcast %cst_22 : f32 to vector<32x256xf32>
    %21 = arith.mulf %20, %19 : vector<32x256xf32>
    %22 = arith.maximumf %19, %21 : vector<32x256xf32>
    %23 = arith.addf %22, %0 : vector<32x256xf32>
    %cst_23 = arith.constant dense<0xFF800000> : vector<32xf32>
    %24 = vector.multi_reduction <maximumf>, %23, %cst_23 [1] : vector<32x256xf32> to vector<32xf32>
    %25 = vector.shape_cast %24 : vector<32xf32> to vector<32x1xf32>
    %26 = vector.broadcast %25 : vector<32x1xf32> to vector<32x256xf32>
    %27 = arith.subf %23, %26 : vector<32x256xf32>
    %28 = math.exp %27 : vector<32x256xf32>
    %cst_24 = arith.constant dense<0.000000e+00> : vector<32x8xf32>
    %29 = tpu.matmul %28, %2, %cst_24 {dimension_numbers = #tpu.dot_dimension_numbers<[1], [0], [0], [1], [0, 0, 1, 1], [], []>} : vector<32x256xf32>, vector<256x8xf32>, vector<32x8xf32> -> vector<32x8xf32>
    %30 = tpu.reciprocal %29 {approx = true} : vector<32x8xf32> -> vector<32x8xf32>
    %cst_25 = arith.constant dense<0.000000e+00> : vector<32x256xf32>
    %31 = tpu.matmul %30, %1, %cst_25 {dimension_numbers = #tpu.dot_dimension_numbers<[1], [0], [0], [1], [0, 0, 1, 1], [], []>} : vector<32x8xf32>, vector<8x256xf32>, vector<32x256xf32> -> vector<32x256xf32>
    %32 = arith.mulf %28, %31 : vector<32x256xf32>
    %33 = arith.truncf %32 : vector<32x256xf32> to vector<32x256xbf16>
    %34 = arith.truncf %8 : vector<32x256xf32> to vector<32x256xbf16>
    %cst_26 = arith.constant dense<0.000000e+00> : vector<256x256xf32>
    %35 = tpu.matmul %4, %34, %cst_26 {dimension_numbers = #tpu.dot_dimension_numbers<[1], [0], [0], [1], [0, 0, 1, 1], [], []>} : vector<256x32xbf16>, vector<32x256xbf16>, vector<256x256xf32> -> vector<256x256xf32>
    %c0_27 = arith.constant 0 : index
    %c0_28 = arith.constant 0 : index
    %36 = vector.load %arg7[%c0_27, %c0_28] : memref<256x256xf32, #tpu.memory_space<vmem>>, vector<256x256xf32>
    %37 = arith.mulf %35, %36 : vector<256x256xf32>
    %38 = arith.truncf %37 : vector<256x256xf32> to vector<256x256xbf16>
    %cst_29 = arith.constant dense<0.000000e+00> : vector<32x256xf32>
    %39 = tpu.matmul %33, %38, %cst_29 {dimension_numbers = #tpu.dot_dimension_numbers<[1], [0], [0], [1], [0, 0, 1, 1], [], []>} : vector<32x256xbf16>, vector<256x256xbf16>, vector<32x256xf32> -> vector<32x256xf32>
    %c0_30 = arith.constant 0 : index
    %c0_31 = arith.constant 0 : index
    %40 = vector.load %arg12[%c0_30, %c0_31] : memref<1x256xf32, #tpu.memory_space<vmem>>, vector<1x256xf32>
    %41 = vector.broadcast %40 : vector<1x256xf32> to vector<32x256xf32>
    %42 = arith.mulf %39, %41 : vector<32x256xf32>
    %c0_32 = arith.constant 0 : index
    %c0_33 = arith.constant 0 : index
    %43 = vector.load %arg13[%c0_32, %c0_33] : memref<1x256xf32, #tpu.memory_space<vmem>>, vector<1x256xf32>
    %44 = vector.broadcast %43 : vector<1x256xf32> to vector<32x256xf32>
    %45 = arith.addf %42, %44 : vector<32x256xf32>
    %cst_34 = arith.constant 0.000000e+00 : f32
    %46 = vector.broadcast %cst_34 : f32 to vector<32x256xf32>
    %47 = arith.cmpf ogt, %45, %46 : vector<32x256xf32>
    %cst_35 = arith.constant 0.000000e+00 : f32
    %48 = vector.broadcast %cst_35 : f32 to vector<32x256xf32>
    %49 = arith.minimumf %45, %48 : vector<32x256xf32>
    %50 = math.exp %49 : vector<32x256xf32>
    %cst_36 = arith.constant 1.000000e+00 : f32
    %51 = vector.broadcast %cst_36 : f32 to vector<32x256xf32>
    %52 = arith.subf %50, %51 : vector<32x256xf32>
    %cst_37 = arith.constant 1.67326319 : f32
    %53 = vector.broadcast %cst_37 : f32 to vector<32x256xf32>
    %54 = arith.mulf %53, %52 : vector<32x256xf32>
    %55 = arith.select %47, %45, %54 : vector<32x256xi1>, vector<32x256xf32>
    %cst_38 = arith.constant 1.05070102 : f32
    %56 = vector.broadcast %cst_38 : f32 to vector<32x256xf32>
    %57 = arith.mulf %56, %55 : vector<32x256xf32>
    %58 = arith.truncf %57 : vector<32x256xf32> to vector<32x256xbf16>
    %c0_39 = arith.constant 0 : index
    %c0_40 = arith.constant 0 : index
    %59 = vector.load %arg14[%c0_39, %c0_40] : memref<256x128xbf16, #tpu.memory_space<vmem>>, vector<256x128xbf16>
    %cst_41 = arith.constant dense<0.000000e+00> : vector<32x128xf32>
    %60 = tpu.matmul %58, %59, %cst_41 {dimension_numbers = #tpu.dot_dimension_numbers<[1], [0], [0], [1], [0, 0, 1, 1], [], []>} : vector<32x256xbf16>, vector<256x128xbf16>, vector<32x128xf32> -> vector<32x128xf32>
    %c0_42 = arith.constant 0 : index
    %c0_43 = arith.constant 0 : index
    %61 = vector.load %arg15[%c0_42, %c0_43] : memref<256x8xbf16, #tpu.memory_space<vmem>>, vector<256x8xbf16>
    %cst_44 = arith.constant dense<0.000000e+00> : vector<32x8xf32>
    %62 = tpu.matmul %58, %61, %cst_44 {dimension_numbers = #tpu.dot_dimension_numbers<[1], [0], [0], [1], [0, 0, 1, 1], [], []>} : vector<32x256xbf16>, vector<256x8xbf16>, vector<32x8xf32> -> vector<32x8xf32>
    %c0_45 = arith.constant 0 : index
    %c0_46 = arith.constant 0 : index
    %63 = vector.load %arg16[%c0_45, %c0_46] : memref<256x8xbf16, #tpu.memory_space<vmem>>, vector<256x8xbf16>
    %cst_47 = arith.constant dense<0.000000e+00> : vector<32x8xf32>
    %64 = tpu.matmul %58, %63, %cst_47 {dimension_numbers = #tpu.dot_dimension_numbers<[1], [0], [0], [1], [0, 0, 1, 1], [], []>} : vector<32x256xbf16>, vector<256x8xbf16>, vector<32x8xf32> -> vector<32x8xf32>
    %cst_48 = arith.constant dense<0.000000e+00> : vector<32x256xf32>
    %65 = tpu.matmul %64, %1, %cst_48 {dimension_numbers = #tpu.dot_dimension_numbers<[1], [0], [0], [1], [0, 0, 1, 1], [], []>} : vector<32x8xf32>, vector<8x256xf32>, vector<32x256xf32> -> vector<32x256xf32>
    %cst_49 = arith.constant dense<0.000000e+00> : vector<32x256xf32>
    %66 = tpu.matmul %62, %1, %cst_49 {dimension_numbers = #tpu.dot_dimension_numbers<[1], [0], [0], [1], [0, 0, 1, 1], [], []>} : vector<32x8xf32>, vector<8x256xf32>, vector<32x256xf32> -> vector<32x256xf32>
    %67 = arith.mulf %66, %3 : vector<32x256xf32>
    %cst_50 = arith.constant dense<0.000000e+00> : vector<256xf32>
    %68 = vector.multi_reduction <add>, %67, %cst_50 [0] : vector<32x256xf32> to vector<256xf32>
    %69 = vector.shape_cast %68 : vector<256xf32> to vector<1x256xf32>
    %70 = vector.broadcast %69 : vector<1x256xf32> to vector<32x256xf32>
    %71 = arith.addf %65, %70 : vector<32x256xf32>
    %cst_51 = arith.constant 2.000000e-01 : f32
    %72 = vector.broadcast %cst_51 : f32 to vector<32x256xf32>
    %73 = arith.mulf %72, %71 : vector<32x256xf32>
    %74 = arith.maximumf %71, %73 : vector<32x256xf32>
    %75 = arith.addf %74, %0 : vector<32x256xf32>
    %cst_52 = arith.constant dense<0xFF800000> : vector<32xf32>
    %76 = vector.multi_reduction <maximumf>, %75, %cst_52 [1] : vector<32x256xf32> to vector<32xf32>
    %77 = vector.shape_cast %76 : vector<32xf32> to vector<32x1xf32>
    %78 = vector.broadcast %77 : vector<32x1xf32> to vector<32x256xf32>
    %79 = arith.subf %75, %78 : vector<32x256xf32>
    %80 = math.exp %79 : vector<32x256xf32>
    %cst_53 = arith.constant dense<0.000000e+00> : vector<32x8xf32>
    %81 = tpu.matmul %80, %2, %cst_53 {dimension_numbers = #tpu.dot_dimension_numbers<[1], [0], [0], [1], [0, 0, 1, 1], [], []>} : vector<32x256xf32>, vector<256x8xf32>, vector<32x8xf32> -> vector<32x8xf32>
    %82 = tpu.reciprocal %81 {approx = true} : vector<32x8xf32> -> vector<32x8xf32>
    %cst_54 = arith.constant dense<0.000000e+00> : vector<32x256xf32>
    %83 = tpu.matmul %82, %1, %cst_54 {dimension_numbers = #tpu.dot_dimension_numbers<[1], [0], [0], [1], [0, 0, 1, 1], [], []>} : vector<32x8xf32>, vector<8x256xf32>, vector<32x256xf32> -> vector<32x256xf32>
    %84 = arith.mulf %80, %83 : vector<32x256xf32>
    %85 = arith.truncf %84 : vector<32x256xf32> to vector<32x256xbf16>
    %86 = arith.truncf %60 : vector<32x128xf32> to vector<32x128xbf16>
    %cst_55 = arith.constant dense<0.000000e+00> : vector<256x128xf32>
    %87 = tpu.matmul %4, %86, %cst_55 {dimension_numbers = #tpu.dot_dimension_numbers<[1], [0], [0], [1], [0, 0, 1, 1], [], []>} : vector<256x32xbf16>, vector<32x128xbf16>, vector<256x128xf32> -> vector<256x128xf32>
    %c0_56 = arith.constant 0 : index
    %c0_57 = arith.constant 0 : index
    %88 = vector.load %arg8[%c0_56, %c0_57] : memref<256x128xf32, #tpu.memory_space<vmem>>, vector<256x128xf32>
    %89 = arith.mulf %87, %88 : vector<256x128xf32>
    %90 = arith.truncf %89 : vector<256x128xf32> to vector<256x128xbf16>
    %cst_58 = arith.constant dense<0.000000e+00> : vector<32x128xf32>
    %91 = tpu.matmul %85, %90, %cst_58 {dimension_numbers = #tpu.dot_dimension_numbers<[1], [0], [0], [1], [0, 0, 1, 1], [], []>} : vector<32x256xbf16>, vector<256x128xbf16>, vector<32x128xf32> -> vector<32x128xf32>
    %c0_59 = arith.constant 0 : index
    %c0_60 = arith.constant 0 : index
    %92 = vector.load %arg17[%c0_59, %c0_60] : memref<1x128xf32, #tpu.memory_space<vmem>>, vector<1x128xf32>
    %93 = vector.broadcast %92 : vector<1x128xf32> to vector<32x128xf32>
    %94 = arith.mulf %91, %93 : vector<32x128xf32>
    %c0_61 = arith.constant 0 : index
    %c0_62 = arith.constant 0 : index
    %95 = vector.load %arg18[%c0_61, %c0_62] : memref<1x128xf32, #tpu.memory_space<vmem>>, vector<1x128xf32>
    %96 = vector.broadcast %95 : vector<1x128xf32> to vector<32x128xf32>
    %97 = arith.addf %94, %96 : vector<32x128xf32>
    %cst_63 = arith.constant 0.000000e+00 : f32
    %98 = vector.broadcast %cst_63 : f32 to vector<32x128xf32>
    %99 = arith.cmpf ogt, %97, %98 : vector<32x128xf32>
    %cst_64 = arith.constant 0.000000e+00 : f32
    %100 = vector.broadcast %cst_64 : f32 to vector<32x128xf32>
    %101 = arith.minimumf %97, %100 : vector<32x128xf32>
    %102 = math.exp %101 : vector<32x128xf32>
    %cst_65 = arith.constant 1.000000e+00 : f32
    %103 = vector.broadcast %cst_65 : f32 to vector<32x128xf32>
    %104 = arith.subf %102, %103 : vector<32x128xf32>
    %cst_66 = arith.constant 1.67326319 : f32
    %105 = vector.broadcast %cst_66 : f32 to vector<32x128xf32>
    %106 = arith.mulf %105, %104 : vector<32x128xf32>
    %107 = arith.select %99, %97, %106 : vector<32x128xi1>, vector<32x128xf32>
    %cst_67 = arith.constant 1.05070102 : f32
    %108 = vector.broadcast %cst_67 : f32 to vector<32x128xf32>
    %109 = arith.mulf %108, %107 : vector<32x128xf32>
    %110 = arith.truncf %109 : vector<32x128xf32> to vector<32x128xbf16>
    %c0_68 = arith.constant 0 : index
    %c0_69 = arith.constant 0 : index
    %111 = vector.load %arg19[%c0_68, %c0_69] : memref<128x16xbf16, #tpu.memory_space<vmem>>, vector<128x16xbf16>
    %cst_70 = arith.constant dense<0.000000e+00> : vector<32x16xf32>
    %112 = tpu.matmul %110, %111, %cst_70 {dimension_numbers = #tpu.dot_dimension_numbers<[1], [0], [0], [1], [0, 0, 1, 1], [], []>} : vector<32x128xbf16>, vector<128x16xbf16>, vector<32x16xf32> -> vector<32x16xf32>
    %c0_71 = arith.constant 0 : index
    %c0_72 = arith.constant 0 : index
    %113 = vector.load %arg20[%c0_71, %c0_72] : memref<128x1xbf16, #tpu.memory_space<vmem>>, vector<128x1xbf16>
    %cst_73 = arith.constant dense<0.000000e+00> : vector<32x1xf32>
    %114 = tpu.matmul %110, %113, %cst_73 {dimension_numbers = #tpu.dot_dimension_numbers<[1], [0], [0], [1], [0, 0, 1, 1], [], []>} : vector<32x128xbf16>, vector<128x1xbf16>, vector<32x1xf32> -> vector<32x1xf32>
    %c0_74 = arith.constant 0 : index
    %c0_75 = arith.constant 0 : index
    %115 = vector.load %arg21[%c0_74, %c0_75] : memref<128x1xbf16, #tpu.memory_space<vmem>>, vector<128x1xbf16>
    %cst_76 = arith.constant dense<0.000000e+00> : vector<32x1xf32>
    %116 = tpu.matmul %110, %115, %cst_76 {dimension_numbers = #tpu.dot_dimension_numbers<[1], [0], [0], [1], [0, 0, 1, 1], [], []>} : vector<32x128xbf16>, vector<128x1xbf16>, vector<32x1xf32> -> vector<32x1xf32>
    %117 = tpu.transpose %114, [1, 0] : vector<32x1xf32> -> vector<1x32xf32>
    %118 = vector.broadcast %116 : vector<32x1xf32> to vector<32x32xf32>
    %119 = vector.broadcast %117 : vector<1x32xf32> to vector<32x32xf32>
    %120 = arith.addf %118, %119 : vector<32x32xf32>
    %cst_77 = arith.constant 2.000000e-01 : f32
    %121 = vector.broadcast %cst_77 : f32 to vector<32x32xf32>
    %122 = arith.mulf %121, %120 : vector<32x32xf32>
    %123 = arith.maximumf %120, %122 : vector<32x32xf32>
    %c0_78 = arith.constant 0 : index
    %c0_79 = arith.constant 0 : index
    %124 = vector.load %arg2[%c0_78, %c0_79] : memref<32x32xf32, #tpu.memory_space<vmem>>, vector<32x32xf32>
    %125 = arith.addf %123, %124 : vector<32x32xf32>
    %cst_80 = arith.constant dense<0xFF800000> : vector<32xf32>
    %126 = vector.multi_reduction <maximumf>, %125, %cst_80 [1] : vector<32x32xf32> to vector<32xf32>
    %127 = vector.shape_cast %126 : vector<32xf32> to vector<32x1xf32>
    %128 = vector.broadcast %127 : vector<32x1xf32> to vector<32x32xf32>
    %129 = arith.subf %125, %128 : vector<32x32xf32>
    %130 = math.exp %129 : vector<32x32xf32>
    %cst_81 = arith.constant dense<0.000000e+00> : vector<32xf32>
    %131 = vector.multi_reduction <add>, %130, %cst_81 [1] : vector<32x32xf32> to vector<32xf32>
    %132 = vector.shape_cast %131 : vector<32xf32> to vector<32x1xf32>
    %133 = tpu.reciprocal %132 {approx = true} : vector<32x1xf32> -> vector<32x1xf32>
    %134 = vector.broadcast %133 : vector<32x1xf32> to vector<32x32xf32>
    %135 = arith.mulf %130, %134 : vector<32x32xf32>
    %136 = arith.truncf %135 : vector<32x32xf32> to vector<32x32xbf16>
    %137 = arith.truncf %112 : vector<32x16xf32> to vector<32x16xbf16>
    %cst_82 = arith.constant dense<0.000000e+00> : vector<32x16xf32>
    %138 = tpu.matmul %136, %137, %cst_82 {dimension_numbers = #tpu.dot_dimension_numbers<[1], [0], [0], [1], [0, 0, 1, 1], [], []>} : vector<32x32xbf16>, vector<32x16xbf16>, vector<32x16xf32> -> vector<32x16xf32>
    %c0_83 = arith.constant 0 : index
    %c0_84 = arith.constant 0 : index
    %139 = vector.load %arg22[%c0_83, %c0_84] : memref<1x16xf32, #tpu.memory_space<vmem>>, vector<1x16xf32>
    %140 = vector.broadcast %139 : vector<1x16xf32> to vector<32x16xf32>
    %141 = arith.addf %138, %140 : vector<32x16xf32>
    %c0_85 = arith.constant 0 : index
    %c0_86 = arith.constant 0 : index
    %142 = vector.load %arg23[%c0_85, %c0_86] : memref<16x1xf32, #tpu.memory_space<vmem>>, vector<16x1xf32>
    %cst_87 = arith.constant dense<0.000000e+00> : vector<32x1xf32>
    %143 = tpu.matmul %141, %142, %cst_87 {dimension_numbers = #tpu.dot_dimension_numbers<[1], [0], [0], [1], [0, 0, 1, 1], [], []>} : vector<32x16xf32>, vector<16x1xf32>, vector<32x1xf32> -> vector<32x1xf32>
    %c0_88 = arith.constant 0 : index
    %c0_89 = arith.constant 0 : index
    %144 = vector.load %arg24[%c0_88, %c0_89] : memref<1x1xf32, #tpu.memory_space<vmem>>, vector<1x1xf32>
    %145 = vector.broadcast %144 : vector<1x1xf32> to vector<32x1xf32>
    %146 = arith.addf %143, %145 : vector<32x1xf32>
    %cst_90 = arith.constant 0.000000e+00 : f32
    %147 = vector.broadcast %cst_90 : f32 to vector<32x1xf32>
    %148 = arith.subf %147, %146 : vector<32x1xf32>
    %149 = math.exp %148 : vector<32x1xf32>
    %cst_91 = arith.constant 1.000000e+00 : f32
    %150 = vector.broadcast %cst_91 : f32 to vector<32x1xf32>
    %151 = arith.addf %150, %149 : vector<32x1xf32>
    %152 = tpu.reciprocal %151 {approx = true} : vector<32x1xf32> -> vector<32x1xf32>
    %c0_92 = arith.constant 0 : index
    %c0_93 = arith.constant 0 : index
    %153 = vector.load %arg26[%c0_92, %c0_93] : memref<32x1xf32, #tpu.memory_space<vmem>>, vector<32x1xf32>
    tpu.vector_store %arg26[%c0_92, %c0_93], %152 {strides = array<i32>} : memref<32x1xf32, #tpu.memory_space<vmem>>, vector<32x1xf32>,
    %154 = vector.broadcast %152 : vector<32x1xf32> to vector<32x16xf32>
    %155 = arith.mulf %141, %154 : vector<32x16xf32>
    %c0_94 = arith.constant 0 : index
    %c0_95 = arith.constant 0 : index
    %156 = vector.load %arg25[%c0_94, %c0_95] : memref<32x16xf32, #tpu.memory_space<vmem>>, vector<32x16xf32>
    tpu.vector_store %arg25[%c0_94, %c0_95], %155 {strides = array<i32>} : memref<32x16xf32, #tpu.memory_space<vmem>>, vector<32x16xf32>,
    return
  }
}

</mosaic_0001>

<bundles_post_ra>
// kernel: tpu_custom_call.1
= control target key start
LH: loop header
LB: loop body
LE: loop exit
PB: predicated region body
PF: predicated region fallthrough
CT: control target
= control target key end

     0   :  { %s5065_s0 = inlined_call_operand.vmem [shape: f32[32,8], index: 0, kind: input, shape index: {}]   ;;  %s5066_s1 = inlined_call_operand.vmem [shape: f32[32,256], index: 1, kind: input, shape index: {}]   ;;  %s5067_s2 = inlined_call_operand.vmem [shape: f32[32,32], index: 2, kind: input, shape index: {}]   ;;  %s5068_s3 = inlined_call_operand.vmem [shape: f32[8,256], index: 3, kind: input, shape index: {}]   ;;  %s5069_s4 = inlined_call_operand.vmem [shape: f32[256,8], index: 4, kind: input, shape index: {}]   ;;  %s5070_s5 = inlined_call_operand.vmem [shape: f32[32,256], index: 5, kind: input, shape index: {}]   ;;  %s5071_s6 = inlined_call_operand.vmem [shape: bf16[256,32], index: 6, kind: input, shape index: {}]   ;;  %s5072_s7 = inlined_call_operand.hbm [shape: f32[256,256], index: 7, kind: input, shape index: {}]   ;;  %s5073_s8 = inlined_call_operand.vmem [shape: f32[256,128], index: 8, kind: input, shape index: {}]   ;;  %s5074_s9 = inlined_call_operand.vmem [shape: bf16[8,256], index: 9, kind: input, shape index: {}]   ;;  %s5075_s10 = inlined_call_operand.vmem [shape: bf16[8,8], index: 10, kind: input, shape index: {}]   ;;  %s5076_s11 = inlined_call_operand.vmem [shape: bf16[8,8], index: 11, kind: input, shape index: {}]   ;;  %s5077_s12 = inlined_call_operand.vmem [shape: f32[1,256], index: 12, kind: input, shape index: {}]   ;;  %s5078_s13 = inlined_call_operand.vmem [shape: f32[1,256], index: 13, kind: input, shape index: {}]   ;;  %s5079_s14 = inlined_call_operand.vmem [shape: bf16[256,128], index: 14, kind: input, shape index: {}]   ;;  %s5080_s15 = inlined_call_operand.vmem [shape: bf16[256,8], index: 15, kind: input, shape index: {}]   ;;  %s5081_s16 = inlined_call_operand.vmem [shape: bf16[256,8], index: 16, kind: input, shape index: {}]   ;;  %s5082_s17 = inlined_call_operand.vmem [shape: f32[1,128], index: 17, kind: input, shape index: {}]   ;;  %s5083_s18 = inlined_call_operand.vmem [shape: f32[1,128], index: 18, kind: input, shape index: {}]   ;;  %s5084_s19 = inlined_call_operand.vmem [shape: bf16[128,16], index: 19, kind: input, shape index: {}]   ;;  %s5085_s20 = inlined_call_operand.vmem [shape: bf16[128,1], index: 20, kind: input, shape index: {}]   ;;  %s5086_s21 = inlined_call_operand.vmem [shape: bf16[128,1], index: 21, kind: input, shape index: {}]   ;;  %s5087_s22 = inlined_call_operand.vmem [shape: f32[1,16], index: 22, kind: input, shape index: {}]   ;;  %s5088_s23 = inlined_call_operand.vmem [shape: f32[16,1], index: 23, kind: input, shape index: {}]   ;;  %s5089_s24 = inlined_call_operand.<no memory space> [shape: f32[1,1], index: 24, kind: input, shape index: {}]   ;;  %s5090_s25 = inlined_call_operand.vmem [shape: f32[32,16], index: 25, kind: output, shape index: {0}]   ;;  %s5091_s26 = inlined_call_operand.vmem [shape: f32[32,1], index: 26, kind: output, shape index: {1}]  }
   0x1   :  { %5100 = sst [smem:[#allocation6_spill]] %s5065_s0  ;;  %v32_v0 = vstv %s5089_s24 }
   0x2   :  { %5101 = sst [smem:[#allocation7_spill]] %s5066_s1  ;;  %33 = vst [vmem:[#allocation2] sm:$0x1] %v32_v0 }
   0x3   :  { %5102 = sst [smem:[#allocation8_spill]] %s5067_s2 }
   0x4   :  { %5103 = sst [smem:[#allocation9_spill]] %s5068_s3 }
   0x5   :  { %5104 = sst [smem:[#allocation10_spill]] %s5069_s4 }
   0x6   :  { %5105 = sst [smem:[#allocation11_spill]] %s5070_s5 }
   0x7   :  { %5106 = sst [smem:[#allocation12_spill]] %s5071_s6 }
   0x8   :  { %5107 = sst [smem:[#allocation13_spill]] %s5072_s7 }
   0x9   :  { %5108 = sst [smem:[#allocation14_spill]] %s5073_s8 }
   0xa   :  { %5109 = sst [smem:[#allocation15_spill]] %s5074_s9 }
   0xb   :  { %5110 = sst [smem:[#allocation16_spill]] %s5075_s10 }
   0xc   :  { %34 = vsyncpa [#allocation4], 0  ;;  %s5111_s8 = sld [smem:[#allocation13_spill]]  ;;  %s3718_s29 = smov [#allocation3]  }
   0xd   :  { %s55_s0 = sshll.u32 %s3718_s29, 4  ;;  %s3719_s9 = smov 256   ;;  %s56_s0 = int_to_ptr.vmem [resolvable:$true] %s55_s0 }
   0xe   :  { %s3720_s30 = smov 16  }
  0x12   :  { %s53_s4 = sshll.u32 %s5111_s8, 4  ;;  %s54_s4 = int_to_ptr.hbm [resolvable:$true] %s53_s4 }
  0x13   :  { %61 = dma.hbm_to_vmem [thread:$0]  %s54_s4, 8192, %s56_s0, [#allocation4], %s3719_s9, %s3719_s9, %s3720_s30  }
  0x14   :  { %3716 = dma.done.wait [#allocation4], 8192  }
  0x15   :  { %3717 = vsyncadd [#allocation4], 4294959104  ;;  %vm202_vm0 = vcmask 1043456   ;;  %s5112_s10 = sld [smem:[#allocation16_spill]]  ;;  %v270_v7 = vld [vmem:[%s5076_s11] sm:$0xf] }
  0x16   :  { %s5113_s1 = sld [smem:[#allocation15_spill]]  ;;  %vm195_vm1 = vcmask 64512   ;;  %v272_v10 = vsel %vm202_vm0, %v270_v7, 0  ;;  %vm747_vm2 = vcmask 261120   ;;  %vm2838_vm15 = vcmask 130048  }
  0x17   :  { %s5114_s7 = sld [smem:[#allocation6_spill]] }
  0x18   :  { %s5116_s3 = sld [smem:[#allocation10_spill]] }
  0x19   :  { %s5117_s29 = sld [smem:[#allocation11_spill]] }
  0x1a   :  { %s5118_s30 = sld [smem:[#allocation7_spill]] }
  0x1b   :  { %v247_v1 = vld [vmem:[%s5112_s10] sm:$0xf]  ;;  %s5115_s10 = sld [smem:[#allocation9_spill]] }
  0x1c   :  { %v189_v2 = vld [vmem:[%s5113_s1] sm:$0xff]  ;;  %v249_v4 = vsel %vm202_vm0, %v247_v1, 0  ;;  %s5119_s24 = sld [smem:[#allocation12_spill]] }
  0x1d   :  { %v183_v3 = vld [vmem:[%s5114_s7] sm:$0xff]  ;;  %v192_v5 = vunpack.c.h.b16 %v189_v2  ;;  %v184_v6 = vld [vmem:[%s5114_s7 + $0x8] sm:$0xff]  ;;  %258 = vmatpush.bf16.msra.mxu2 %v249_v4  ;;  %v185_v12 = vld [vmem:[%s5114_s7 + $0x10] sm:$0xff]  ;;  %v191_v15 = vunpack.c.l.b16 %v189_v2 }
  0x1e   :  { %v187_v8 = vpack.c.bf16 %v184_v6, %v183_v3  ;;  %v186_v13 = vld [vmem:[%s5114_s7 + $0x18] sm:$0xff]  ;;  %v125_v35 = vld [vmem:[%s5116_s3 + $0x70] sm:$0xff]  ;;  %v124_v37 = vld [vmem:[%s5116_s3 + $0x68] sm:$0xff] }
  0x1f   :  { %v194_v9 = vpack.c.b16 %v192_v5, %v192_v5  ;;  %v188_v14 = vpack.c.bf16 %v186_v13, %v185_v12  ;;  %v193_v16 = vpack.c.b16 %v191_v15, %v191_v15  ;;  %v126_v33 = vld [vmem:[%s5116_s3 + $0x78] sm:$0xff]  ;;  %v141_v36 = vld [vmem:[%s5116_s3 + $0xf0] sm:$0xff]  ;;  %v140_v38 = vld [vmem:[%s5116_s3 + $0xe8] sm:$0xff] }
  0x20   :  { %2946 = vmatmul.msk.bf16.vlgmr.msra.gmra.mxu2 %vm195_vm1, %v187_v8  ;;  %v142_v34 = vld [vmem:[%s5116_s3 + $0xf8] sm:$0xff]  ;;  %v123_v39 = vld [vmem:[%s5116_s3 + $0x60] sm:$0xff]  ;;  %v121_v44 = vld [vmem:[%s5116_s3 + $0x50] sm:$0xff] }
  0x21   :  { %v207_v11 = vsel %vm202_vm0, %v194_v9, 0  ;;  %v204_v17 = vsel %vm202_vm0, %v193_v16, 0  ;;  %v3899_v18 = vld [vmem:[%s5115_s10] sm:$0xff]  ;;  %v3908_v19 = vld [vmem:[%s5115_s10 + $0x8] sm:$0xff]  ;;  %v122_v41 = vld [vmem:[%s5116_s3 + $0x58] sm:$0xff]  ;;  %vm2900_vm0 = vcmask 7168  }
  0x22   :  { %235 = vmatpush.bf16.msra.mxu3 %v207_v11  ;;  %216 = vmatpush.bf16.msra.mxu0 %v204_v17  ;;  %v139_v40 = vld [vmem:[%s5116_s3 + $0xe0] sm:$0xff]  ;;  %v138_v42 = vld [vmem:[%s5116_s3 + $0xd8] sm:$0xff]  ;;  %v137_v45 = vld [vmem:[%s5116_s3 + $0xd0] sm:$0xff] }
  0x23   :  { %416 = vmatpush.msrb.mxu2 %v3899_v18  ;;  %349 = vmatpush.msra.mxu1 %v3908_v19  ;;  %v120_v46 = vld [vmem:[%s5116_s3 + $0x48] sm:$0xff]  ;;  %v119_v48 = vld [vmem:[%s5116_s3 + $0x40] sm:$0xff]  ;;  %v118_v50 = vld [vmem:[%s5116_s3 + $0x38] sm:$0xff] }
  0x24   :  { %v136_v47 = vld [vmem:[%s5116_s3 + $0xc8] sm:$0xff]  ;;  %v135_v49 = vld [vmem:[%s5116_s3 + $0xc0] sm:$0xff]  ;;  %v134_v51 = vld [vmem:[%s5116_s3 + $0xb8] sm:$0xff] }
  0x25   :  { %2944 = vmatmul.msk.bf16.vlgmr.msra.gmra.mxu3 %vm195_vm1, %v187_v8  ;;  %2942 = vmatmul.msk.bf16.vlgmr.msra.gmra.mxu0 %vm195_vm1, %v187_v8  ;;  %v117_v52 = vld [vmem:[%s5116_s3 + $0x30] sm:$0xff]  ;;  %v116_v55 = vld [vmem:[%s5116_s3 + $0x28] sm:$0xff]  ;;  %v115_v57 = vld [vmem:[%s5116_s3 + $0x20] sm:$0xff] }
  0x26   :  { %281 = vmatpush.bf16.msrb.mxu3 %v272_v10  ;;  %320 = vmatpush.msrb.mxu0 %v3899_v18  ;;  %v133_v53 = vld [vmem:[%s5116_s3 + $0xb0] sm:$0xff]  ;;  %v132_v56 = vld [vmem:[%s5116_s3 + $0xa8] sm:$0xff]  ;;  %v131_v58 = vld [vmem:[%s5116_s3 + $0xa0] sm:$0xff] }
  0x27   :  { %608 = vmatpush.msra.mxu2 %v3899_v18  ;;  %548 = vmatpush.msrb.mxu1 %v142_v34  ;;  %v114_v59 = vld [vmem:[%s5116_s3 + $0x18] sm:$0xff]  ;;  %v113_v61 = vld [vmem:[%s5116_s3 + $0x10] sm:$0xff]  ;;  %v112_v63 = vld [vmem:[%s5116_s3 + $0x8] sm:$0xff] }
  0x28   :  { %519 = vmatpush.msra.mxu0 %v126_v33  ;;  %v130_v60 = vld [vmem:[%s5116_s3 + $0x98] sm:$0xff]  ;;  %v129_v62 = vld [vmem:[%s5116_s3 + $0x90] sm:$0xff]  ;;  %v128_v0 = vld [vmem:[%s5116_s3 + $0x88] sm:$0xff] }
  0x29   :  { %549 = vmatpush.msrb.mxu1 %v141_v36  ;;  %v111_v3 = vld [vmem:[%s5116_s3] sm:$0xff]  ;;  %v145_v12 = vld [vmem:[%s5117_s29 + $0x10] sm:$0xff]  ;;  %v148_v33 = vld [vmem:[%s5117_s29 + $0x28] sm:$0xff] }
  0x2a   :  { %3504 = vmatpush.msra.mxu3 %v3899_v18  ;;  %520 = vmatpush.msra.mxu0 %v125_v35  ;;  %v127_v4 = vld [vmem:[%s5116_s3 + $0x80] sm:$0xff] }
  0x2b   :  { %550 = vmatpush.msrb.mxu1 %v140_v38  ;;  %v143_v11 = vld [vmem:[%s5117_s29] sm:$0xff] }
  0x2c   :  { %521 = vmatpush.msra.mxu0 %v124_v37  ;;  %v147_v15 = vld [vmem:[%s5117_s29 + $0x20] sm:$0xff]  ;;  %v150_v37 = vld [vmem:[%s5117_s29 + $0x38] sm:$0xff] }
  0x2d   :  { %551 = vmatpush.msrb.mxu1 %v139_v40 }
  0x2e   :  { %522 = vmatpush.msra.mxu0 %v123_v39 }
  0x2f   :  { %552 = vmatpush.msrb.mxu1 %v138_v42 }
  0x30   :  { %2947 = vmatmul.msk.bf16.gmra.mxu2 %vm195_vm1, %v188_v14  ;;  %523 = vmatpush.msra.mxu0 %v122_v41 }
  0x31   :  { %553 = vmatpush.msrb.mxu1 %v137_v45 }
  0x32   :  { %524 = vmatpush.msra.mxu0 %v121_v44 }
  0x33   :  { %554 = vmatpush.msrb.mxu1 %v136_v47 }
  0x34   :  { %525 = vmatpush.msra.mxu0 %v120_v46 }
  0x35   :  { %2945 = vmatmul.msk.bf16.gmra.mxu3 %vm195_vm1, %v188_v14  ;;  %2943 = vmatmul.msk.bf16.gmra.mxu0 %vm195_vm1, %v188_v14 }
  0x36   :  { %526 = vmatpush.msra.mxu0 %v119_v48  ;;  %555 = vmatpush.msrb.mxu1 %v135_v49 }
  0x38   :  { %527 = vmatpush.msra.mxu0 %v118_v50  ;;  %556 = vmatpush.msrb.mxu1 %v134_v51 }
  0x3a   :  { %528 = vmatpush.msra.mxu0 %v117_v52  ;;  %557 = vmatpush.msrb.mxu1 %v133_v53 }
  0x3c   :  { %529 = vmatpush.msra.mxu0 %v116_v55  ;;  %558 = vmatpush.msrb.mxu1 %v132_v56 }
  0x3e   :  { %530 = vmatpush.msra.mxu0 %v115_v57  ;;  %559 = vmatpush.msrb.mxu1 %v131_v58 }
  0x40   :  { %531 = vmatpush.msra.mxu0 %v114_v59  ;;  %560 = vmatpush.msrb.mxu1 %v130_v60 }
  0x42   :  { %532 = vmatpush.msra.mxu0 %v113_v61  ;;  %561 = vmatpush.msrb.mxu1 %v129_v62 }
  0x44   :  { %533 = vmatpush.msra.mxu0 %v112_v63  ;;  %562 = vmatpush.msrb.mxu1 %v128_v0  ;;  %v101_v0 = vld [vmem:[%s5118_s30] sm:$0xff] }
  0x45   :  { %2948 = vmatmul.msk.bf16.vlgmr.msrb.gmra.mxu3 %vm195_vm1, %v187_v8 }
  0x46   :  { %445 = vmatpush.msrb.mxu3 %v3908_v19  ;;  %534 = vmatpush.msra.mxu0 %v111_v3 }
  0x47   :  { %563 = vmatpush.msrb.mxu1 %v127_v4 }
  0x55   :  { %2949 = vmatmul.msk.bf16.gmra.mxu3 %vm195_vm1, %v188_v14 }
  0xa2   :  { %v3935_v32 = vpop.f32.mrf.mxu0 }
  0xa3   :  { %v260_v20 = vpop.f32.mrf.mxu2 }
  0xa4   :  { %2950 = vmatmul.msk.f32.vlgmr.msrb.gmra.mxu0 %vm195_vm1, %v260_v20  ;;  %2954 = vmatmul.msk.f32.vlgmr.msra.gmra.mxu1 %vm195_vm1, %v260_v20 }
  0xa8   :  { %v3914_v21 = vpop.f32.mrf.mxu3 }
  0xaa   :  { %v220_v43 = vpop.f32.mrf.mxu0 }
  0xab   :  { %v262_v22 = vpop.f32.mrf.mxu2  ;;  %v663_v5 = vpack.c.bf16 %v220_v43, %v3935_v32 }
  0xac   :  { %2951 = vmatmul.msk.f32.gmra.mxu0 %vm195_vm1, %v262_v22  ;;  %2955 = vmatmul.msk.f32.gmra.mxu1 %vm195_vm1, %v262_v22  ;;  %v144_v22 = vld [vmem:[%s5117_s29 + $0x8] sm:$0xff] }
  0xb0   :  { %v3918_v23 = vpop.f32.mrf.mxu3 }
  0xb2   :  { %v223_v54 = vpop.f32.mrf.mxu0 }
  0xb3   :  { %v265_v24 = vpop.f32.mrf.mxu2 }
  0xb4   :  { %2952 = vmatmul.msk.f32.gmra.mxu0 %vm195_vm1, %v265_v24  ;;  %2956 = vmatmul.msk.f32.gmra.mxu1 %vm195_vm1, %v265_v24  ;;  %v146_v24 = vld [vmem:[%s5117_s29 + $0x18] sm:$0xff] }
  0xb8   :  { %v3922_v25 = vpop.f32.mrf.mxu3 }
  0xba   :  { %v225_v1 = vpop.f32.mrf.mxu0 }
  0xbb   :  { %v267_v26 = vpop.f32.mrf.mxu2  ;;  %v665_v2 = vpack.c.bf16 %v225_v1, %v223_v54  ;;  %v102_v1 = vld [vmem:[%s5118_s30 + $0x8] sm:$0xff] }
  0xbc   :  { %2953 = vmatmul.msk.f32.gmra.mxu0 %vm195_vm1, %v267_v26  ;;  %2957 = vmatmul.msk.f32.gmra.mxu1 %vm195_vm1, %v267_v26  ;;  %v149_v26 = vld [vmem:[%s5117_s29 + $0x30] sm:$0xff] }
  0xbd   :  { %802 = vmatpush.bf16.msrb.mxu0 %v665_v2  ;;  %3505 = vmatpush.bf16.msra.mxu1 %v665_v2 }
  0xc0   :  { %v3926_v27 = vpop.f32.mrf.mxu3 }
  0xc1   :  { %803 = vmatpush.bf16.msrb.mxu0 %v663_v5  ;;  %3506 = vmatpush.bf16.msra.mxu1 %v663_v5 }
  0xc8   :  { %v283_v28 = vpop.f32.mrf.mxu3 }
  0xc9   :  { %2958 = vmatmul.msk.f32.vlgmr.msrb.gmra.mxu2 %vm195_vm1, %v283_v28 }
  0xd0   :  { %v285_v29 = vpop.f32.mrf.mxu3 }
  0xd1   :  { %2959 = vmatmul.msk.f32.gmra.mxu2 %vm195_vm1, %v285_v29 }
  0xd8   :  { %v288_v30 = vpop.f32.mrf.mxu3 }
  0xd9   :  { %2960 = vmatmul.msk.f32.gmra.mxu2 %vm195_vm1, %v288_v30 }
  0xe0   :  { %v3931_v31 = vpop.f32.mrf.mxu3 }
  0xe1   :  { %2961 = vmatmul.msk.f32.vlgmr.msra.gmra.mxu3 %vm195_vm1, %v3931_v31 }
  0xe2   :  { %637 = vmatpush.msra.mxu3 %v3908_v19 }
  0xe9   :  { %2962 = vmatmul.msk.f32.vlgmr.msrb.gmra.mxu3 %vm195_vm1, %v283_v28 }
  0xf1   :  { %2963 = vmatmul.msk.f32.gmra.mxu3 %vm195_vm1, %v285_v29 }
  0xf9   :  { %2964 = vmatmul.msk.f32.gmra.mxu3 %vm195_vm1, %v288_v30 }
 0x101   :  { %2965 = vmatmul.msk.f32.gmra.mxu3 %vm195_vm1, %v3931_v31 }
 0x121   :  { %v322_v6 = vpop.f32.mrf.mxu0  ;;  %v351_v7 = vpop.f32.mrf.mxu1 }
 0x122   :  { %v363_v13 = vmul.f32 %v322_v6, %v143_v11  ;;  %v364_v29 = vmul.f32 %v351_v7, %v144_v22 }
 0x129   :  { %v325_v8 = vpop.f32.mrf.mxu0  ;;  %v354_v9 = vpop.f32.mrf.mxu1 }
 0x12a   :  { %v365_v14 = vmul.f32 %v325_v8, %v145_v12  ;;  %v366_v30 = vmul.f32 %v354_v9, %v146_v24 }
 0x12c   :  { %v371_v17 = vadd.f32 %v365_v14, %v363_v13  ;;  %v380_v34 = vadd.f32 %v366_v30, %v364_v29  ;;  %v103_v13 = vld [vmem:[%s5118_s30 + $0x10] sm:$0xff]  ;;  %v104_v14 = vld [vmem:[%s5118_s30 + $0x18] sm:$0xff] }
 0x131   :  { %v328_v10 = vpop.f32.mrf.mxu0  ;;  %v357_v16 = vpop.f32.mrf.mxu1 }
 0x132   :  { %v367_v20 = vmul.f32 %v328_v10, %v147_v15  ;;  %v368_v35 = vmul.f32 %v357_v16, %v148_v33 }
 0x134   :  { %v372_v31 = vadd.f32 %v371_v17, %v367_v20  ;;  %v381_v39 = vadd.f32 %v380_v34, %v368_v35 }
 0x139   :  { %v331_v28 = vpop.f32.mrf.mxu0  ;;  %v360_v38 = vpop.f32.mrf.mxu1 }
 0x13a   :  { %v369_v32 = vmul.f32 %v331_v28, %v149_v26  ;;  %v370_v41 = vmul.f32 %v360_v38, %v150_v37 }
 0x13c   :  { %v373_v36 = vadd.f32 %v372_v31, %v369_v32  ;;  %v382_v43 = vadd.f32 %v381_v39, %v370_v41  ;;  %v105_v31 = vld [vmem:[%s5118_s30 + $0x20] sm:$0xff]  ;;  %v106_v32 = vld [vmem:[%s5118_s30 + $0x28] sm:$0xff] }
 0x13e   :  { %v374_v40 = vrot.slane %v373_v36, 4  ;;  %v383_v45 = vrot.slane %v382_v43, 4 }
 0x140   :  { %v375_v42 = vadd.f32 %v374_v40, %v373_v36  ;;  %v384_v47 = vadd.f32 %v383_v45, %v382_v43  ;;  %v108_v43 = vld [vmem:[%s5118_s30 + $0x38] sm:$0xff] }
 0x142   :  { %v376_v44 = vrot.slane %v375_v42, 2  ;;  %v385_v49 = vrot.slane %v384_v47, 2 }
 0x144   :  { %v377_v46 = vadd.f32 %v376_v44, %v375_v42  ;;  %v386_v51 = vadd.f32 %v385_v49, %v384_v47  ;;  %v107_v42 = vld [vmem:[%s5118_s30 + $0x30] sm:$0xff] }
 0x146   :  { %v378_v48 = vrot.slane %v377_v46, 1  ;;  %v387_v54 = vrot.slane %v386_v51, 1 }
 0x148   :  { %v379_v52 = vadd.f32 %v378_v48, %v377_v46  ;;  %v388_v58 = vadd.f32 %v387_v54, %v386_v51 }
 0x14c   :  { %v418_v50 = vpop.f32.mrf.mxu2 }
 0x14d   :  { %v419_v55 = vadd.f32 %v418_v50, %v379_v52 }
 0x14f   :  { %v459_v57 = vmul.f32 0.2, %v419_v55 }
 0x151   :  { %v467_v61 = vmax.f32 %v419_v55, %v459_v57 }
 0x153   :  { %v475_v4 = vadd.f32 %v467_v61, %v101_v0  ;;  %v664_v61 = vpack.c.bf16 %v3918_v23, %v3914_v21 }
 0x154   :  { %v421_v56 = vpop.f32.mrf.mxu2 }
 0x155   :  { %v422_v62 = vadd.f32 %v421_v56, %v379_v52 }
 0x157   :  { %v461_v3 = vmul.f32 0.2, %v422_v62 }
 0x159   :  { %v469_v10 = vmax.f32 %v422_v62, %v461_v3 }
 0x15b   :  { %v477_v17 = vadd.f32 %v469_v10, %v103_v13  ;;  %v3416_v10 = vld [vmem:[%s5119_s24] sm:$0xff]  ;;  %v4135_v13 = vld [vmem:[%s5119_s24 + $0x68] sm:$0xff] }
 0x15c   :  { %v424_v6 = vpop.f32.mrf.mxu2 }
 0x15d   :  { %v425_v11 = vadd.f32 %v424_v6, %v379_v52 }
 0x15f   :  { %v463_v16 = vmul.f32 0.2, %v425_v11 }
 0x161   :  { %v471_v28 = vmax.f32 %v425_v11, %v463_v16  ;;  %v4123_v11 = vld [vmem:[%s5119_s24 + $0x60] sm:$0xff]  ;;  %v4157_v16 = vld [vmem:[%s5119_s24 + $0x78] sm:$0xff] }
 0x163   :  { %v479_v35 = vadd.f32 %v471_v28, %v105_v31 }
 0x164   :  { %v427_v53 = vpop.f32.mrf.mxu3 }
 0x165   :  { %v428_v29 = vadd.f32 %v427_v53, %v379_v52 }
 0x167   :  { %v465_v34 = vmul.f32 0.2, %v428_v29 }
 0x169   :  { %v473_v40 = vmax.f32 %v428_v29, %v465_v34 }
 0x16b   :  { %v481_v45 = vadd.f32 %v473_v40, %v107_v42  ;;  %v3424_v42 = vld [vmem:[%s5119_s24 + $0x40] sm:$0xff] }
 0x16c   :  { %v447_v59 = vpop.f32.mrf.mxu3 }
 0x16d   :  { %v448_v60 = vadd.f32 %v447_v59, %v388_v58 }
 0x16f   :  { %v460_v63 = vmul.f32 0.2, %v448_v60 }
 0x171   :  { %v468_v2 = vmax.f32 %v448_v60, %v460_v63  ;;  %v666_v60 = vpack.c.bf16 %v3926_v27, %v3922_v25 }
 0x173   :  { %v476_v5 = vadd.f32 %v468_v2, %v102_v1 }
 0x174   :  { %v450_v7 = vpop.f32.mrf.mxu3 }
 0x175   :  { %v451_v8 = vadd.f32 %v450_v7, %v388_v58  ;;  %v483_v9 = vmax.f32 %v475_v4, %v476_v5 }
 0x177   :  { %v462_v12 = vmul.f32 0.2, %v451_v8  ;;  %484 = vmax.xlane.f32.xlu0 %v483_v9 }
 0x179   :  { %v470_v15 = vmax.f32 %v451_v8, %v462_v12  ;;  %v3417_v12 = vld [vmem:[%s5119_s24 + $0x8] sm:$0xff] }
 0x17b   :  { %v478_v20 = vadd.f32 %v470_v15, %v104_v14  ;;  %v3418_v14 = vld [vmem:[%s5119_s24 + $0x10] sm:$0xff]  ;;  %v3419_v15 = vld [vmem:[%s5119_s24 + $0x18] sm:$0xff] }
 0x17c   :  { %v453_v22 = vpop.f32.mrf.mxu3 }
 0x17d   :  { %v454_v24 = vadd.f32 %v453_v22, %v388_v58  ;;  %v486_v26 = vmax.f32 %v477_v17, %v478_v20  ;;  %v3422_v22 = vld [vmem:[%s5119_s24 + $0x30] sm:$0xff] }
 0x17f   :  { %v464_v30 = vmul.f32 0.2, %v454_v24  ;;  %487 = vmax.xlane.f32.xlu0 %v486_v26 }
 0x181   :  { %v472_v33 = vmax.f32 %v454_v24, %v464_v30 }
 0x183   :  { %v480_v36 = vadd.f32 %v472_v33, %v106_v32  ;;  %v3423_v33 = vld [vmem:[%s5119_s24 + $0x38] sm:$0xff] }
 0x184   :  { %v456_v37 = vpop.f32.mrf.mxu3 }
 0x185   :  { %v457_v38 = vadd.f32 %v456_v37, %v388_v58  ;;  %v489_v39 = vmax.f32 %v479_v35, %v480_v36 }
 0x187   :  { %v466_v41 = vmul.f32 0.2, %v457_v38  ;;  %490 = vmax.xlane.f32.xlu1 %v489_v39 }
 0x189   :  { %v474_v44 = vmax.f32 %v457_v38, %v466_v41 }
 0x18b   :  { %v482_v46 = vadd.f32 %v474_v44, %v108_v43 }
 0x18d   :  { %v492_v47 = vmax.f32 %v481_v45, %v482_v46 }
 0x18f   :  { %493 = vmax.xlane.f32.xlu1 %v492_v47 }
 0x1ea   :  { %v485_v48 = vpop.xlane.xlu0 %484 }
 0x1eb   :  { %v495_v49 = vsub.f32 %v475_v4, %v485_v48  ;;  %v496_v50 = vsub.f32 %v476_v5, %v485_v48  ;;  %v3425_v48 = vld [vmem:[%s5119_s24 + $0x48] sm:$0xff] }
 0x1ed   :  { %v503_v51 = vmul.f32 1.442695, %v495_v49  ;;  %v505_v52 = vmul.f32 1.442695, %v496_v50 }
 0x1ef   :  { %3522 = vpow2.f32 %v503_v51 }
 0x1f0   :  { %3524 = vpow2.f32 %v505_v52 }
 0x1f2   :  { %v488_v53 = vpop.xlane.xlu0 %487 }
 0x1f3   :  { %v497_v54 = vsub.f32 %v477_v17, %v488_v53  ;;  %v498_v55 = vsub.f32 %v478_v20, %v488_v53  ;;  %v3420_v17 = vld [vmem:[%s5119_s24 + $0x20] sm:$0xff]  ;;  %v3421_v20 = vld [vmem:[%s5119_s24 + $0x28] sm:$0xff]  ;;  %v3426_v53 = vld [vmem:[%s5119_s24 + $0x50] sm:$0xff] }
 0x1f5   :  { %v4088_v56 = vpop.eup %3522  ;;  %v507_v57 = vmul.f32 1.442695, %v497_v54  ;;  %v509_v58 = vmul.f32 1.442695, %v498_v55 }
 0x1f6   :  { %v4090_v59 = vpop.eup %3524  ;;  %535 = vmatmul.f32.vlgmr.msra.gmra.mxu0 %v4088_v56 }
 0x1f7   :  { %3526 = vpow2.f32 %v507_v57  ;;  %564 = vmatmul.f32.vlgmr.msrb.gmra.mxu1 %v4090_v59  ;;  %2119 = vmatpush.msra.mxu0 %v3899_v18 }
 0x1f8   :  { %3528 = vpow2.f32 %v509_v58  ;;  %891 = vmatpush.bf16.msrb.mxu1 %v666_v60  ;;  %v3427_v60 = vld [vmem:[%s5119_s24 + $0x58] sm:$0xff] }
 0x1fa   :  { %v491_v62 = vpop.xlane.xlu1 %490 }
 0x1fb   :  { %v499_v63 = vsub.f32 %v479_v35, %v491_v62  ;;  %v500_v0 = vsub.f32 %v480_v36, %v491_v62  ;;  %v1034_v62 = vld [vmem:[#allocation3 + $0x1e0] sm:$0xff] }
 0x1fc   :  { %892 = vmatpush.bf16.msrb.mxu1 %v664_v61 }
 0x1fd   :  { %v4099_v1 = vpop.eup %3526  ;;  %v511_v2 = vmul.f32 1.442695, %v499_v63  ;;  %v513_v25 = vmul.f32 1.442695, %v500_v0  ;;  %v1036_v63 = vld [vmem:[#allocation3 + $0x1f0] sm:$0xff] }
 0x1fe   :  { %v4101_v27 = vpop.eup %3528  ;;  %538 = vmatmul.f32.gmra.mxu0 %v4099_v1 }
 0x1ff   :  { %3530 = vpow2.f32 %v511_v2  ;;  %567 = vmatmul.f32.gmra.mxu1 %v4101_v27  ;;  %v1032_v2 = vld [vmem:[#allocation3 + $0x1d0] sm:$0xff] }
 0x200   :  { %3532 = vpow2.f32 %v513_v25 }
 0x202   :  { %v494_v3 = vpop.xlane.xlu1 %493 }
 0x203   :  { %v501_v4 = vsub.f32 %v481_v45, %v494_v3  ;;  %v502_v5 = vsub.f32 %v482_v46, %v494_v3 }
 0x205   :  { %v4105_v21 = vpop.eup %3530  ;;  %v515_v23 = vmul.f32 1.442695, %v501_v4  ;;  %v517_v6 = vmul.f32 1.442695, %v502_v5  ;;  %v1030_v5 = vld [vmem:[#allocation3 + $0x1c0] sm:$0xff] }
 0x206   :  { %v4107_v7 = vpop.eup %3532  ;;  %541 = vmatmul.f32.gmra.mxu0 %v4105_v21 }
 0x207   :  { %3534 = vpow2.f32 %v515_v23  ;;  %570 = vmatmul.f32.gmra.mxu1 %v4107_v7 }
 0x208   :  { %3536 = vpow2.f32 %v517_v6 }
 0x20d   :  { %v4111_v8 = vpop.eup %3534 }
 0x20e   :  { %v4113_v9 = vpop.eup %3536  ;;  %544 = vmatmul.f32.gmra.mxu0 %v4111_v8 }
 0x20f   :  { %573 = vmatmul.f32.gmra.mxu1 %v4113_v9 }
 0x216   :  { %3038 = vmatmul.msk.bf16.vlgmr.msrb.gmra.mxu0 %vm747_vm2, %v3416_v10 }
 0x217   :  { %3050 = vmatmul.msk.bf16.vlgmr.msra.gmra.mxu1 %vm747_vm2, %v4123_v11 }
 0x218   :  { %3507 = vmatpush.msra.mxu1 %v3899_v18  ;;  %v4146_v18 = vld [vmem:[%s5119_s24 + $0x70] sm:$0xff] }
 0x226   :  { %3039 = vmatmul.msk.bf16.gmra.mxu0 %vm747_vm2, %v3417_v12 }
 0x227   :  { %3051 = vmatmul.msk.bf16.gmra.mxu1 %vm747_vm2, %v4135_v13 }
 0x236   :  { %3040 = vmatmul.msk.bf16.gmra.mxu0 %vm747_vm2, %v3418_v14 }
 0x237   :  { %3052 = vmatmul.msk.bf16.gmra.mxu1 %vm747_vm2, %v4146_v18 }
 0x246   :  { %3041 = vmatmul.msk.bf16.gmra.mxu0 %vm747_vm2, %v3419_v15 }
 0x247   :  { %3053 = vmatmul.msk.bf16.gmra.mxu1 %vm747_vm2, %v4157_v16 }
 0x256   :  { %3042 = vmatmul.msk.bf16.gmra.mxu0 %vm747_vm2, %v3420_v17 }
 0x257   :  { %3054 = vmatmul.msk.bf16.vlgmr.msrb.gmra.mxu1 %vm747_vm2, %v3416_v10  ;;  %v1028_v10 = vld [vmem:[#allocation3 + $0x1b0] sm:$0xff] }
 0x258   :  { %2148 = vmatpush.msrb.mxu1 %v3908_v19 }
 0x266   :  { %3043 = vmatmul.msk.bf16.gmra.mxu0 %vm747_vm2, %v3421_v20 }
 0x267   :  { %3055 = vmatmul.msk.bf16.gmra.mxu1 %vm747_vm2, %v3417_v12 }
 0x273   :  { %v536_v24 = vpop.f32.mrf.mxu0 }
 0x274   :  { %v565_v26 = vpop.f32.mrf.mxu1 }
 0x275   :  { %v566_v28 = vadd.f32 %v565_v26, %v536_v24 }
 0x276   :  { %3044 = vmatmul.msk.bf16.gmra.mxu0 %vm747_vm2, %v3422_v22 }
 0x277   :  { %3538 = vrcp.f32 %v566_v28  ;;  %3056 = vmatmul.msk.bf16.gmra.mxu1 %vm747_vm2, %v3418_v14  ;;  %v1026_v14 = vld [vmem:[#allocation3 + $0x1a0] sm:$0xff] }
 0x278   :  { %v1022_v28 = vld [vmem:[#allocation3 + $0x180] sm:$0xff] }
 0x27b   :  { %v539_v19 = vpop.f32.mrf.mxu0 }
 0x27c   :  { %v568_v29 = vpop.f32.mrf.mxu1 }
 0x27d   :  { %v3539_v30 = vpop.eup %3538  ;;  %v569_v31 = vadd.f32 %v568_v29, %v539_v19 }
 0x27e   :  { %2966 = vmatmul.msk.f32.vlgmr.msra.gmra.mxu2 %vm195_vm1, %v3539_v30  ;;  %2970 = vmatmul.msk.f32.vlgmr.msra.gmra.mxu3 %vm195_vm1, %v3539_v30 }
 0x27f   :  { %3540 = vrcp.f32 %v569_v31  ;;  %v975_v31 = vld [vmem:[#allocation3 + $0x8] sm:$0xff] }
 0x283   :  { %v542_v32 = vpop.f32.mrf.mxu0 }
 0x284   :  { %v571_v34 = vpop.f32.mrf.mxu1 }
 0x285   :  { %v3541_v35 = vpop.eup %3540  ;;  %v572_v36 = vadd.f32 %v571_v34, %v542_v32  ;;  %v977_v32 = vld [vmem:[#allocation3 + $0x18] sm:$0xff] }
 0x286   :  { %2967 = vmatmul.msk.f32.gmra.mxu2 %vm195_vm1, %v3541_v35  ;;  %2971 = vmatmul.msk.f32.gmra.mxu3 %vm195_vm1, %v3541_v35 }
 0x287   :  { %3542 = vrcp.f32 %v572_v36  ;;  %3045 = vmatmul.msk.bf16.gmra.mxu0 %vm747_vm2, %v3423_v33  ;;  %3057 = vmatmul.msk.bf16.gmra.mxu1 %vm747_vm2, %v3419_v15 }
 0x28b   :  { %v545_v37 = vpop.f32.mrf.mxu0 }
 0x28c   :  { %v574_v38 = vpop.f32.mrf.mxu1 }
 0x28d   :  { %v3543_v39 = vpop.eup %3542  ;;  %v575_v40 = vadd.f32 %v574_v38, %v545_v37 }
 0x28e   :  { %2968 = vmatmul.msk.f32.gmra.mxu2 %vm195_vm1, %v3543_v39  ;;  %2972 = vmatmul.msk.f32.gmra.mxu3 %vm195_vm1, %v3543_v39 }
 0x28f   :  { %3544 = vrcp.f32 %v575_v40 }
 0x293   :  { %v4189_v41 = vpop.f32.mrf.mxu0 }
 0x294   :  { %v865_v43 = vpop.f32.mrf.mxu1 }
 0x295   :  { %v3545_v44 = vpop.eup %3544  ;;  %v1086_v30 = vmul.f32 %v1022_v28, %v865_v43  ;;  %v981_v43 = vld [vmem:[#allocation3 + $0x38] sm:$0xff] }
 0x296   :  { %2969 = vmatmul.msk.f32.gmra.mxu2 %vm195_vm1, %v3545_v44  ;;  %2973 = vmatmul.msk.f32.gmra.mxu3 %vm195_vm1, %v3545_v44 }
 0x297   :  { %3046 = vmatmul.msk.bf16.gmra.mxu0 %vm747_vm2, %v3424_v42  ;;  %3058 = vmatmul.msk.bf16.gmra.mxu1 %vm747_vm2, %v3420_v17 }
 0x29b   :  { %v4198_v45 = vpop.f32.mrf.mxu0 }
 0x29c   :  { %v867_v46 = vpop.f32.mrf.mxu1 }
 0x2a3   :  { %v4200_v47 = vpop.f32.mrf.mxu0 }
 0x2a4   :  { %v870_v49 = vpop.f32.mrf.mxu1 }
 0x2a5   :  { %v1090_v26 = vmul.f32 %v1026_v14, %v870_v49  ;;  %v987_v14 = vld [vmem:[#allocation3 + $0x68] sm:$0xff] }
 0x2a7   :  { %3047 = vmatmul.msk.bf16.gmra.mxu0 %vm747_vm2, %v3425_v48  ;;  %3059 = vmatmul.msk.bf16.gmra.mxu1 %vm747_vm2, %v3421_v20 }
 0x2ab   :  { %v4207_v50 = vpop.f32.mrf.mxu0 }
 0x2ac   :  { %v872_v51 = vpop.f32.mrf.mxu1 }
 0x2ad   :  { %v1092_v15 = vmul.f32 %v1028_v10, %v872_v51  ;;  %v998_v10 = vld [vmem:[#allocation3 + $0xc0] sm:$0xff] }
 0x2af   :  { %v1128_v29 = vpack.c.bf16 %v1092_v15, %v1090_v26  ;;  %v989_v15 = vld [vmem:[#allocation3 + $0x78] sm:$0xff] }
 0x2b3   :  { %v4209_v52 = vpop.f32.mrf.mxu0 }
 0x2b4   :  { %v875_v54 = vpop.f32.mrf.mxu1 }
 0x2b5   :  { %v1094_v12 = vmul.f32 %v1030_v5, %v875_v54 }
 0x2b7   :  { %3048 = vmatmul.msk.bf16.gmra.mxu0 %vm747_vm2, %v3426_v53  ;;  %3060 = vmatmul.msk.bf16.gmra.mxu1 %vm747_vm2, %v3422_v22  ;;  %v1024_v22 = vld [vmem:[#allocation3 + $0x190] sm:$0xff] }
 0x2b8   :  { %v1088_v19 = vmul.f32 %v1024_v22, %v867_v46 }
 0x2bb   :  { %v4216_v55 = vpop.f32.mrf.mxu0 }
 0x2bc   :  { %v877_v57 = vpop.f32.mrf.mxu1 }
 0x2bd   :  { %v1096_v23 = vmul.f32 %v1032_v2, %v877_v57 }
 0x2bf   :  { %v1130_v17 = vpack.c.bf16 %v1096_v23, %v1094_v12  ;;  %v1000_v12 = vld [vmem:[#allocation3 + $0xd0] sm:$0xff] }
 0x2c3   :  { %v4218_v58 = vpop.f32.mrf.mxu0 }
 0x2c4   :  { %v880_v61 = vpop.f32.mrf.mxu1 }
 0x2c5   :  { %v1098_v3 = vmul.f32 %v1034_v62, %v880_v61  ;;  %v983_v62 = vld [vmem:[#allocation3 + $0x48] sm:$0xff] }
 0x2c7   :  { %3049 = vmatmul.msk.bf16.gmra.mxu0 %vm747_vm2, %v3427_v60  ;;  %3061 = vmatmul.msk.bf16.gmra.mxu1 %vm747_vm2, %v3423_v33  ;;  %v1126_v33 = vpack.c.bf16 %v1088_v19, %v1086_v30 }
 0x2cb   :  { %v4225_v0 = vpop.f32.mrf.mxu0 }
 0x2cc   :  { %v882_v25 = vpop.f32.mrf.mxu1 }
 0x2cd   :  { %v1100_v4 = vmul.f32 %v1036_v63, %v882_v25  ;;  %v985_v63 = vld [vmem:[#allocation3 + $0x58] sm:$0xff] }
 0x2cf   :  { %v1132_v6 = vpack.c.bf16 %v1100_v4, %v1098_v3 }
 0x2d1   :  { %1153 = vmatpush.bf16.msrb.mxu3 %v1132_v6  ;;  %v1002_v6 = vld [vmem:[#allocation3 + $0xe0] sm:$0xff] }
 0x2d3   :  { %v4227_v20 = vpop.f32.mrf.mxu0 }
 0x2d4   :  { %v894_v24 = vpop.f32.mrf.mxu1 }
 0x2d5   :  { %1154 = vmatpush.bf16.msrb.mxu3 %v1130_v17  ;;  %v4230_v36 = vmul.f32 %v975_v31, %v894_v24  ;;  %v994_v31 = vld [vmem:[#allocation3 + $0xa0] sm:$0xff] }
 0x2d7   :  { %3062 = vmatmul.msk.bf16.gmra.mxu1 %vm747_vm2, %v3424_v42  ;;  %v979_v42 = vld [vmem:[#allocation3 + $0x28] sm:$0xff] }
 0x2d9   :  { %1155 = vmatpush.bf16.msrb.mxu3 %v1128_v29 }
 0x2db   :  { %v827_v34 = vpop.f32.mrf.mxu0 }
 0x2dc   :  { %v896_v35 = vpop.f32.mrf.mxu1 }
 0x2dd   :  { %v4232_v37 = vmul.f32 %v977_v32, %v896_v35  ;;  %1156 = vmatpush.bf16.msrb.mxu3 %v1126_v33  ;;  %v996_v32 = vld [vmem:[#allocation3 + $0xb0] sm:$0xff] }
 0x2df   :  { %v1103_v38 = vpack.c.bf16 %v4232_v37, %v4230_v36 }
 0x2e3   :  { %v830_v39 = vpop.f32.mrf.mxu0 }
 0x2e4   :  { %v899_v40 = vpop.f32.mrf.mxu1  ;;  %v1058_v35 = vmul.f32 %v994_v31, %v830_v39 }
 0x2e5   :  { %v4237_v49 = vmul.f32 %v979_v42, %v899_v40 }
 0x2e7   :  { %3063 = vmatmul.msk.bf16.gmra.mxu1 %vm747_vm2, %v3425_v48 }
 0x2eb   :  { %v832_v44 = vpop.f32.mrf.mxu0 }
 0x2ec   :  { %v901_v46 = vpop.f32.mrf.mxu1  ;;  %v1060_v40 = vmul.f32 %v996_v32, %v832_v44 }
 0x2ed   :  { %v4239_v51 = vmul.f32 %v981_v43, %v901_v46  ;;  %v990_v43 = vld [vmem:[#allocation3 + $0x80] sm:$0xff]  ;;  %v992_v46 = vld [vmem:[#allocation3 + $0x90] sm:$0xff] }
 0x2ef   :  { %v1105_v54 = vpack.c.bf16 %v4239_v51, %v4237_v49  ;;  %v1021_v51 = vld [vmem:[#allocation3 + $0x178] sm:$0xff] }
 0x2f3   :  { %v835_v57 = vpop.f32.mrf.mxu0 }
 0x2f4   :  { %v904_v61 = vpop.f32.mrf.mxu1  ;;  %v1062_v22 = vmul.f32 %v998_v10, %v835_v57  ;;  %v982_v10 = vld [vmem:[#allocation3 + $0x40] sm:$0xff] }
 0x2f5   :  { %v4244_v48 = vmul.f32 %v983_v62, %v904_v61  ;;  %v1054_v62 = vmul.f32 %v990_v43, %v4227_v20 }
 0x2f7   :  { %3064 = vmatmul.msk.bf16.gmra.mxu1 %vm747_vm2, %v3426_v53  ;;  %v1004_v53 = vld [vmem:[#allocation3 + $0xf0] sm:$0xff] }
 0x2fb   :  { %v837_v2 = vpop.f32.mrf.mxu0 }
 0x2fc   :  { %v906_v25 = vpop.f32.mrf.mxu1  ;;  %v1064_v28 = vmul.f32 %v1000_v12, %v837_v2  ;;  %v1112_v2 = vpack.c.bf16 %v1060_v40, %v1058_v35  ;;  %v984_v12 = vld [vmem:[#allocation3 + $0x50] sm:$0xff] }
 0x2fd   :  { %v4246_v3 = vmul.f32 %v985_v63, %v906_v25  ;;  %v1056_v63 = vmul.f32 %v992_v46, %v827_v34  ;;  %v986_v25 = vld [vmem:[#allocation3 + $0x60] sm:$0xff]  ;;  %v1046_v34 = vmul.f32 %v982_v10, %v4209_v52 }
 0x2fe   :  { %v1114_v42 = vpack.c.bf16 %v1064_v28, %v1062_v22  ;;  %v1050_v39 = vmul.f32 %v986_v25, %v4218_v58  ;;  %v976_v28 = vld [vmem:[#allocation3 + $0x10] sm:$0xff] }
 0x2ff   :  { %v1107_v4 = vpack.c.bf16 %v4246_v3, %v4244_v48 }
 0x304   :  { %v840_v5 = vpop.f32.mrf.mxu0  ;;  %v909_v23 = vpop.f32.mrf.mxu1 }
 0x305   :  { %v1066_v17 = vmul.f32 %v1002_v6, %v840_v5  ;;  %v4251_v19 = vmul.f32 %v987_v14, %v909_v23  ;;  %v988_v5 = vld [vmem:[#allocation3 + $0x70] sm:$0xff]  ;;  %v1110_v23 = vpack.c.bf16 %v1056_v63, %v1054_v62  ;;  %v610_v6 = vpop.f32.mrf.mxu2 }
 0x306   :  { %v1052_v44 = vmul.f32 %v988_v5, %v4225_v0  ;;  %v1018_v5 = vld [vmem:[#allocation3 + $0x160] sm:$0xff] }
 0x307   :  { %3065 = vmatmul.msk.bf16.gmra.mxu1 %vm747_vm2, %v3427_v60 }
 0x30c   :  { %v842_v24 = vpop.f32.mrf.mxu0  ;;  %v911_v26 = vpop.f32.mrf.mxu1 }
 0x30d   :  { %v1068_v29 = vmul.f32 %v1004_v53, %v842_v24  ;;  %v4253_v30 = vmul.f32 %v989_v15, %v911_v26  ;;  %v1048_v53 = vmul.f32 %v984_v12, %v4216_v55  ;;  %v1108_v15 = vpack.c.bf16 %v1052_v44, %v1050_v39  ;;  %v613_v24 = vpop.f32.mrf.mxu2  ;;  %v974_v26 = vld [vmem:[#allocation3] sm:$0xff]  ;;  %v639_v39 = vpop.f32.mrf.mxu3  ;;  %v1001_v12 = vld [vmem:[#allocation3 + $0xd8] sm:$0xff] }
 0x30e   :  { %v1038_v52 = vmul.f32 %v974_v26, %v4189_v41  ;;  %v1040_v55 = vmul.f32 %v976_v28, %v4198_v45  ;;  %v1014_v44 = vld [vmem:[#allocation3 + $0x140] sm:$0xff] }
 0x30f   :  { %v1116_v33 = vpack.c.bf16 %v1068_v29, %v1066_v17  ;;  %v1109_v60 = vpack.c.bf16 %v4253_v30, %v4251_v19  ;;  %v980_v17 = vld [vmem:[#allocation3 + $0x30] sm:$0xff]  ;;  %v1106_v58 = vpack.c.bf16 %v1048_v53, %v1046_v34 }
 0x310   :  { %v1044_v22 = vmul.f32 %v980_v17, %v4207_v50  ;;  %v651_v50 = vmul.f32 %v4088_v56, %v610_v6  ;;  %v1020_v6 = vld [vmem:[#allocation3 + $0x170] sm:$0xff] }
 0x311   :  { %1134 = vmatpush.bf16.msrb.mxu2 %v1116_v33  ;;  %v1102_v33 = vpack.c.bf16 %v1040_v55, %v1038_v52  ;;  %v997_v55 = vld [vmem:[#allocation3 + $0xb8] sm:$0xff] }
 0x314   :  { %v4257_v57 = vpop.f32.mrf.mxu0  ;;  %v4259_v61 = vpop.f32.mrf.mxu1 }
 0x315   :  { %1135 = vmatpush.bf16.msrb.mxu2 %v1114_v42  ;;  %v616_v42 = vpop.f32.mrf.mxu2 }
 0x317   :  { %3066 = vmatmul.msk.bf16.gmra.mxu1 %vm747_vm2, %v4123_v11  ;;  %v978_v11 = vld [vmem:[#allocation3 + $0x20] sm:$0xff] }
 0x318   :  { %v1042_v0 = vmul.f32 %v978_v11, %v4200_v47  ;;  %v653_v47 = vmul.f32 %v4099_v1, %v613_v24  ;;  %v655_v1 = vmul.f32 %v4105_v21, %v616_v42  ;;  %v999_v24 = vld [vmem:[#allocation3 + $0xc8] sm:$0xff]  ;;  %v1008_v42 = vld [vmem:[#allocation3 + $0x110] sm:$0xff] }
 0x319   :  { %1136 = vmatpush.bf16.msrb.mxu2 %v1112_v2 }
 0x31a   :  { %v1104_v32 = vpack.c.bf16 %v1044_v22, %v1042_v0  ;;  %v4282_v43 = vpack.c.bf16 %v653_v47, %v651_v50  ;;  %v1012_v22 = vld [vmem:[#allocation3 + $0x130] sm:$0xff] }
 0x31c   :  { %v4266_v14 = vpop.f32.mrf.mxu0  ;;  %v4268_v20 = vpop.f32.mrf.mxu1 }
 0x31d   :  { %1137 = vmatpush.bf16.msrb.mxu2 %v1110_v23  ;;  %v619_v46 = vpop.f32.mrf.mxu2  ;;  %v1016_v23 = vld [vmem:[#allocation3 + $0x150] sm:$0xff] }
 0x321   :  { %1138 = vmatpush.bf16.msrb.mxu2 %v1108_v15  ;;  %v1010_v15 = vld [vmem:[#allocation3 + $0x120] sm:$0xff] }
 0x324   :  { %v850_v29 = vpop.f32.mrf.mxu0  ;;  %v4274_v31 = vpop.f32.mrf.mxu1 }
 0x325   :  { %1139 = vmatpush.bf16.msrb.mxu2 %v1106_v58  ;;  %v1074_v52 = vmul.f32 %v1010_v15, %v850_v29  ;;  %v1033_v15 = vld [vmem:[#allocation3 + $0x1d8] sm:$0xff] }
 0x327   :  { %3067 = vmatmul.msk.bf16.gmra.mxu1 %vm747_vm2, %v4135_v13  ;;  %v657_v13 = vmul.f32 %v4111_v8, %v619_v46  ;;  %v1005_v8 = vld [vmem:[#allocation3 + $0xf8] sm:$0xff]  ;;  %v642_v46 = vpop.f32.mrf.mxu3 }
 0x329   :  { %1140 = vmatpush.bf16.msrb.mxu2 %v1104_v32  ;;  %v4289_v63 = vpack.c.bf16 %v657_v13, %v655_v1  ;;  %v1006_v32 = vld [vmem:[#allocation3 + $0x100] sm:$0xff] }
 0x32c   :  { %v852_v35 = vpop.f32.mrf.mxu0  ;;  %v921_v40 = vpop.f32.mrf.mxu1 }
 0x32d   :  { %1141 = vmatpush.bf16.msrb.mxu2 %v1102_v33  ;;  %v1076_v47 = vmul.f32 %v1012_v22, %v852_v35  ;;  %v1061_v13 = vmul.f32 %v997_v55, %v921_v40  ;;  %v991_v35 = vld [vmem:[#allocation3 + $0x88] sm:$0xff]  ;;  %v3436_v55 = vld [vmem:[%s5079_s14 + $0x20] sm:$0xff] }
 0x32e   :  { %v3437_v22 = vld [vmem:[%s5079_s14 + $0x28] sm:$0xff] }
 0x330   :  { %1142 = vmatmul.bf16.vlgmr.msrb.gmra.mxu2 %v4282_v43 }
 0x334   :  { %v855_v41 = vpop.f32.mrf.mxu0  ;;  %v924_v45 = vpop.f32.mrf.mxu1 }
 0x335   :  { %v1078_v21 = vmul.f32 %v1014_v44, %v855_v41  ;;  %v1063_v33 = vmul.f32 %v999_v24, %v924_v45  ;;  %v995_v41 = vld [vmem:[#allocation3 + $0xa8] sm:$0xff] }
 0x336   :  { %v1059_v29 = vmul.f32 %v995_v41, %v4274_v31  ;;  %v645_v31 = vpop.f32.mrf.mxu3  ;;  %v3435_v41 = vld [vmem:[%s5079_s14 + $0x18] sm:$0xff] }
 0x337   :  { %3068 = vmatmul.msk.bf16.gmra.mxu1 %vm747_vm2, %v4146_v18  ;;  %v1003_v18 = vld [vmem:[#allocation3 + $0xe8] sm:$0xff] }
 0x338   :  { %v1113_v44 = vpack.c.bf16 %v1061_v13, %v1059_v29 }
 0x33c   :  { %v857_v62 = vpop.f32.mrf.mxu0  ;;  %v926_v56 = vpop.f32.mrf.mxu1 }
 0x33d   :  { %v1080_v11 = vmul.f32 %v1016_v23, %v857_v62  ;;  %v1070_v62 = vmul.f32 %v1006_v32, %v4257_v57  ;;  %v1055_v23 = vmul.f32 %v991_v35, %v4259_v61  ;;  %v654_v57 = vmul.f32 %v4101_v27, %v642_v46  ;;  %v3433_v35 = vld [vmem:[%s5079_s14 + $0x8] sm:$0xff] }
 0x33f   :  { %v1122_v50 = vpack.c.bf16 %v1080_v11, %v1078_v21 }
 0x340   :  { %1147 = vmatmul.bf16.gmra.mxu2 %v4289_v63 }
 0x344   :  { %v860_v2 = vpop.f32.mrf.mxu0  ;;  %v929_v25 = vpop.f32.mrf.mxu1 }
 0x345   :  { %v1082_v10 = vmul.f32 %v1018_v5, %v860_v2  ;;  %v1067_v17 = vmul.f32 %v1003_v18, %v929_v25  ;;  %v993_v2 = vld [vmem:[#allocation3 + $0x98] sm:$0xff]  ;;  %v1120_v5 = vpack.c.bf16 %v1076_v47, %v1074_v52  ;;  %v1027_v52 = vld [vmem:[#allocation3 + $0x1a8] sm:$0xff] }
 0x346   :  { %v1057_v45 = vmul.f32 %v993_v2, %v4268_v20  ;;  %v656_v20 = vmul.f32 %v4107_v7, %v645_v31  ;;  %v3432_v31 = vld [vmem:[%s5079_s14] sm:$0xff] }
 0x347   :  { %3069 = vmatmul.msk.bf16.gmra.mxu1 %vm747_vm2, %v4157_v16  ;;  %v1065_v16 = vmul.f32 %v1001_v12, %v926_v56  ;;  %v1072_v56 = vmul.f32 %v1008_v42, %v4266_v14  ;;  %v1023_v42 = vld [vmem:[#allocation3 + $0x188] sm:$0xff] }
 0x348   :  { %v1111_v18 = vpack.c.bf16 %v1057_v45, %v1055_v23  ;;  %v1013_v23 = vld [vmem:[#allocation3 + $0x138] sm:$0xff] }
 0x349   :  { %v1115_v1 = vpack.c.bf16 %v1065_v16, %v1063_v33  ;;  %v1118_v40 = vpack.c.bf16 %v1072_v56, %v1070_v62  ;;  %v1025_v33 = vld [vmem:[#allocation3 + $0x198] sm:$0xff]  ;;  %v3434_v62 = vld [vmem:[%s5079_s14 + $0x10] sm:$0xff] }
 0x34a   :  { %v1017_v56 = vld [vmem:[#allocation3 + $0x158] sm:$0xff] }
 0x34c   :  { %v862_v34 = vpop.f32.mrf.mxu0  ;;  %v931_v53 = vpop.f32.mrf.mxu1 }
 0x34d   :  { %v1084_v58 = vmul.f32 %v1020_v6, %v862_v34  ;;  %v1069_v0 = vmul.f32 %v1005_v8, %v931_v53  ;;  %v652_v6 = vmul.f32 %v4090_v59, %v639_v39  ;;  %v648_v59 = vpop.f32.mrf.mxu3  ;;  %v1037_v34 = vld [vmem:[#allocation3 + $0x1f8] sm:$0xff]  ;;  %v3438_v53 = vld [vmem:[%s5079_s14 + $0x30] sm:$0xff] }
 0x34e   :  { %v658_v27 = vmul.f32 %v4113_v9, %v648_v59  ;;  %v1019_v9 = vld [vmem:[#allocation3 + $0x168] sm:$0xff] }
 0x34f   :  { %v1124_v26 = vpack.c.bf16 %v1084_v58, %v1082_v10  ;;  %v1117_v28 = vpack.c.bf16 %v1069_v0, %v1067_v17  ;;  %v4305_v8 = vpack.c.bf16 %v654_v57, %v652_v6  ;;  %v1031_v0 = vld [vmem:[#allocation3 + $0x1c8] sm:$0xff]  ;;  %v4360_v57 = vld [vmem:[%s5078_s13] sm:$0x3] }
 0x350   :  { %v4326_v19 = vpack.c.bf16 %v658_v27, %v656_v20 }
 0x351   :  { %1157 = vmatpush.bf16.msrb.mxu3 %v1124_v26  ;;  %1172 = vmatpush.bf16.msra.mxu2 %v1117_v28  ;;  %v1029_v26 = vld [vmem:[#allocation3 + $0x1b8] sm:$0xff] }
 0x354   :  { %v4295_v25 = vpop.f32.mrf.mxu1 }
 0x355   :  { %1158 = vmatpush.bf16.msrb.mxu3 %v1122_v50  ;;  %1173 = vmatpush.bf16.msra.mxu2 %v1115_v1 }
 0x359   :  { %1159 = vmatpush.bf16.msrb.mxu3 %v1120_v5  ;;  %1174 = vmatpush.bf16.msra.mxu2 %v1113_v44  ;;  %v1015_v5 = vld [vmem:[#allocation3 + $0x148] sm:$0xff]  ;;  %v4355_v44 = vld [vmem:[%s5077_s12] sm:$0x3] }
 0x35a   :  { %v1212_v6 = vperm.slane %v4355_v44, 0 }
 0x35c   :  { %v4303_v14 = vpop.f32.mrf.mxu1 }
 0x35d   :  { %1160 = vmatpush.bf16.msrb.mxu3 %v1118_v40  ;;  %1175 = vmatpush.bf16.msra.mxu2 %v1111_v18  ;;  %v1011_v18 = vld [vmem:[#allocation3 + $0x128] sm:$0xff] }
 0x360   :  { %1161 = vmatmul.bf16.vlgmr.msrb.gmra.mxu3 %v4305_v8 }
 0x361   :  { %1176 = vmatpush.bf16.msra.mxu2 %v1109_v60 }
 0x364   :  { %v4311_v61 = vpop.f32.mrf.mxu1 }
 0x365   :  { %1177 = vmatpush.bf16.msra.mxu2 %v1107_v4 }
 0x369   :  { %1178 = vmatpush.bf16.msra.mxu2 %v1105_v54 }
 0x36c   :  { %v4321_v39 = vpop.f32.mrf.mxu1 }
 0x36d   :  { %1179 = vmatpush.bf16.msra.mxu2 %v1103_v38  ;;  %v1077_v59 = vmul.f32 %v1013_v23, %v4321_v39 }
 0x370   :  { %1166 = vmatmul.bf16.gmra.mxu3 %v4326_v19  ;;  %1180 = vmatmul.bf16.vlgmr.msra.gmra.mxu2 %v4282_v43  ;;  %v3439_v43 = vld [vmem:[%s5079_s14 + $0x38] sm:$0xff] }
 0x371   :  { %1434 = vmatpush.bf16.msrb.mxu2 %v3439_v43 }
 0x374   :  { %v944_v48 = vpop.f32.mrf.mxu1 }
 0x375   :  { %1435 = vmatpush.bf16.msrb.mxu2 %v3438_v53  ;;  %v1079_v40 = vmul.f32 %v1015_v5, %v944_v48  ;;  %v1226_v48 = vperm.slane %v4360_v57, 0 }
 0x379   :  { %1436 = vmatpush.bf16.msrb.mxu2 %v3437_v22  ;;  %v3451_v22 = vld [vmem:[%s5080_s15 + $0x18] sm:$0xff] }
 0x37c   :  { %v946_v3 = vpop.f32.mrf.mxu1 }
 0x37d   :  { %1437 = vmatpush.bf16.msrb.mxu2 %v3436_v55  ;;  %v1081_v45 = vmul.f32 %v1017_v56, %v946_v3  ;;  %v1009_v3 = vld [vmem:[#allocation3 + $0x118] sm:$0xff] }
 0x37f   :  { %v1123_v27 = vpack.c.bf16 %v1081_v45, %v1079_v40  ;;  %v3471_v40 = vld [vmem:[%s5081_s16 + $0x38] sm:$0xff] }
 0x380   :  { %1185 = vmatmul.bf16.gmra.mxu2 %v4289_v63  ;;  %v1035_v63 = vld [vmem:[#allocation3 + $0x1e8] sm:$0xff] }
 0x381   :  { %1438 = vmatpush.bf16.msrb.mxu2 %v3435_v41 }
 0x384   :  { %v949_v49 = vpop.f32.mrf.mxu1 }
 0x385   :  { %v1083_v54 = vmul.f32 %v1019_v9, %v949_v49  ;;  %1439 = vmatpush.bf16.msrb.mxu2 %v3434_v62  ;;  %v1075_v9 = vmul.f32 %v1011_v18, %v4311_v61  ;;  %v3454_v61 = vld [vmem:[%s5080_s15 + $0x30] sm:$0xff]  ;;  %v3448_v62 = vld [vmem:[%s5080_s15] sm:$0xff] }
 0x386   :  { %v3470_v18 = vld [vmem:[%s5081_s16 + $0x30] sm:$0xff] }
 0x389   :  { %1440 = vmatpush.bf16.msrb.mxu2 %v3433_v35 }
 0x38c   :  { %v951_v7 = vpop.f32.mrf.mxu1 }
 0x38d   :  { %v1085_v4 = vmul.f32 %v1021_v51, %v951_v7  ;;  %1441 = vmatpush.bf16.msrb.mxu2 %v3432_v31  ;;  %v1007_v51 = vld [vmem:[#allocation3 + $0x108] sm:$0xff] }
 0x38f   :  { %v1125_v30 = vpack.c.bf16 %v1085_v4, %v1083_v54  ;;  %v3455_v54 = vld [vmem:[%s5080_s15 + $0x38] sm:$0xff]  ;;  %v1073_v4 = vmul.f32 %v1009_v3, %v4303_v14  ;;  %v3453_v14 = vld [vmem:[%s5080_s15 + $0x28] sm:$0xff] }
 0x391   :  { %1600 = vmatpush.bf16.msra.mxu2 %v3455_v54  ;;  %v3467_v54 = vld [vmem:[%s5081_s16 + $0x18] sm:$0xff] }
 0x394   :  { %v954_v60 = vpop.f32.mrf.mxu1 }
 0x395   :  { %v1087_v1 = vmul.f32 %v1023_v42, %v954_v60  ;;  %1601 = vmatpush.bf16.msra.mxu2 %v3454_v61  ;;  %v3445_v61 = vld [vmem:[%s5079_s14 + $0x68] sm:$0xff] }
 0x399   :  { %1602 = vmatpush.bf16.msra.mxu2 %v3453_v14  ;;  %v3441_v14 = vld [vmem:[%s5079_s14 + $0x48] sm:$0xff] }
 0x39c   :  { %v956_v36 = vpop.f32.mrf.mxu1 }
 0x39d   :  { %v1089_v46 = vmul.f32 %v1025_v33, %v956_v36  ;;  %v1071_v36 = vmul.f32 %v1007_v51, %v4295_v25  ;;  %v3452_v25 = vld [vmem:[%s5080_s15 + $0x20] sm:$0xff] }
 0x39e   :  { %1603 = vmatpush.bf16.msra.mxu2 %v3452_v25 }
 0x39f   :  { %v1127_v2 = vpack.c.bf16 %v1089_v46, %v1087_v1 }
 0x3a2   :  { %1604 = vmatpush.bf16.msra.mxu2 %v3451_v22 }
 0x3a4   :  { %v959_v37 = vpop.f32.mrf.mxu1 }
 0x3a5   :  { %v1091_v50 = vmul.f32 %v1027_v52, %v959_v37 }
 0x3ac   :  { %v961_v38 = vpop.f32.mrf.mxu1 }
 0x3ad   :  { %v1093_v32 = vmul.f32 %v1029_v26, %v961_v38  ;;  %v1119_v38 = vpack.c.bf16 %v1073_v4, %v1071_v36  ;;  %v3466_v4 = vld [vmem:[%s5081_s16 + $0x10] sm:$0xff]  ;;  %v3447_v36 = vld [vmem:[%s5079_s14 + $0x78] sm:$0xff] }
 0x3af   :  { %v1129_v13 = vpack.c.bf16 %v1093_v32, %v1091_v50  ;;  %v3449_v50 = vld [vmem:[%s5080_s15 + $0x8] sm:$0xff] }
 0x3b3   :  { %v1143_v29 = vpop.f32.mrf.mxu2 }
 0x3b4   :  { %v964_v10 = vpop.f32.mrf.mxu1 }
 0x3b5   :  { %v1095_v28 = vmul.f32 %v1031_v0, %v964_v10 }
 0x3bb   :  { %v1145_v39 = vpop.f32.mrf.mxu2 }
 0x3bc   :  { %v966_v21 = vpop.f32.mrf.mxu1 }
 0x3bd   :  { %v1097_v24 = vmul.f32 %v1033_v15, %v966_v21 }
 0x3bf   :  { %v1131_v47 = vpack.c.bf16 %v1097_v24, %v1095_v28 }
 0x3c4   :  { %v969_v12 = vpop.f32.mrf.mxu1 }
 0x3c5   :  { %v1099_v17 = vmul.f32 %v1035_v63, %v969_v12 }
 0x3cc   :  { %v971_v11 = vpop.f32.mrf.mxu1 }
 0x3cd   :  { %v1101_v58 = vmul.f32 %v1037_v34, %v971_v11  ;;  %v1148_v34 = vpop.f32.mrf.mxu2 }
 0x3cf   :  { %v1133_v16 = vpack.c.bf16 %v1101_v58, %v1099_v17 }
 0x3d1   :  { %1191 = vmatpush.bf16.msra.mxu3 %v1133_v16  ;;  %v3450_v16 = vld [vmem:[%s5080_s15 + $0x10] sm:$0xff] }
 0x3d2   :  { %1605 = vmatpush.bf16.msra.mxu2 %v3450_v16 }
 0x3d5   :  { %1192 = vmatpush.bf16.msra.mxu3 %v1131_v47  ;;  %v1150_v28 = vpop.f32.mrf.mxu2 }
 0x3d6   :  { %1606 = vmatpush.bf16.msra.mxu2 %v3449_v50 }
 0x3d9   :  { %1193 = vmatpush.bf16.msra.mxu3 %v1129_v13 }
 0x3da   :  { %1607 = vmatpush.bf16.msra.mxu2 %v3448_v62 }
 0x3dd   :  { %1194 = vmatpush.bf16.msra.mxu3 %v1127_v2 }
 0x3e1   :  { %1195 = vmatpush.bf16.msra.mxu3 %v1125_v30  ;;  %v1121_v30 = vpack.c.bf16 %v1077_v59, %v1075_v9  ;;  %v3469_v59 = vld [vmem:[%s5081_s16 + $0x28] sm:$0xff] }
 0x3e3   :  { %v1162_v20 = vpop.f32.mrf.mxu3 }
 0x3e4   :  { %v1163_v49 = vadd.f32 %v1162_v20, %v1143_v29 }
 0x3e5   :  { %1196 = vmatpush.bf16.msra.mxu3 %v1123_v27 }
 0x3e6   :  { %v1216_v7 = vmul.f32 %v1212_v6, %v1163_v49  ;;  %v3468_v49 = vld [vmem:[%s5081_s16 + $0x20] sm:$0xff] }
 0x3e8   :  { %v1230_v60 = vadd.f32 %v1226_v48, %v1216_v7 }
 0x3e9   :  { %1197 = vmatpush.bf16.msra.mxu3 %v1121_v30  ;;  %v3465_v30 = vld [vmem:[%s5081_s16 + $0x8] sm:$0xff] }
 0x3ea   :  { %v1246_v37 = vmin.f32 %v1230_v60, 0.0  ;;  %vm1238_vm3 = vcmp.gt.f32.partialorder %v1230_v60, 0.0 }
 0x3eb   :  { %v1164_v10 = vpop.f32.mrf.mxu3 }
 0x3ec   :  { %v1254_v21 = vmul.f32 1.442695, %v1246_v37  ;;  %v1165_v12 = vadd.f32 %v1164_v10, %v1145_v39  ;;  %v3464_v39 = vld [vmem:[%s5081_s16] sm:$0xff]  ;;  %v3446_v37 = vld [vmem:[%s5079_s14 + $0x70] sm:$0xff]  ;;  %v3443_v10 = vld [vmem:[%s5079_s14 + $0x58] sm:$0xff] }
 0x3ed   :  { %1198 = vmatpush.bf16.msra.mxu3 %v1119_v38  ;;  %v3444_v38 = vld [vmem:[%s5079_s14 + $0x60] sm:$0xff] }
 0x3ee   :  { %3546 = vpow2.f32 %v1254_v21  ;;  %v1218_v43 = vmul.f32 %v1212_v6, %v1165_v12  ;;  %v3442_v21 = vld [vmem:[%s5079_s14 + $0x50] sm:$0xff] }
 0x3f0   :  { %v1232_v63 = vadd.f32 %v1226_v48, %v1218_v43  ;;  %1199 = vmatmul.bf16.vlgmr.msra.gmra.mxu3 %v4305_v8  ;;  %v1213_v43 = vperm.slane %v4355_v44, 1  ;;  %v3462_v44 = vld [vmem:[%s5080_s15 + $0x70] sm:$0xff] }
 0x3f1   :  { %1453 = vmatpush.bf16.msrb.mxu3 %v3447_v36 }
 0x3f2   :  { %v1248_v53 = vmin.f32 %v1232_v63, 0.0  ;;  %vm1240_vm4 = vcmp.gt.f32.partialorder %v1232_v63, 0.0 }
 0x3f3   :  { %v1167_v15 = vpop.f32.mrf.mxu3  ;;  %v1181_v12 = vpop.f32.mrf.mxu2 }
 0x3f4   :  { %v3547_v11 = vpop.eup %3546  ;;  %v1258_v17 = vmul.f32 1.442695, %v1248_v53  ;;  %v1168_v58 = vadd.f32 %v1167_v15, %v1148_v34  ;;  %v1227_v53 = vperm.slane %v4360_v57, 1  ;;  %v3461_v57 = vld [vmem:[%s5080_s15 + $0x68] sm:$0xff] }
 0x3f5   :  { %v3070_v24 = vadd.f32 -1.0, %v3547_v11  ;;  %1454 = vmatpush.bf16.msrb.mxu3 %v3446_v37  ;;  %v3463_v11 = vld [vmem:[%s5080_s15 + $0x78] sm:$0xff] }
 0x3f6   :  { %3548 = vpow2.f32 %v1258_v17  ;;  %v1220_v0 = vmul.f32 %v1212_v6, %v1168_v58 }
 0x3f7   :  { %v1278_v52 = vmul.f32 1.6732632, %v3070_v24 }
 0x3f8   :  { %v1234_v8 = vadd.f32 %v1226_v48, %v1220_v0 }
 0x3f9   :  { %v1286_v13 = vsel %vm1238_vm3, %v1230_v60, %v1278_v52  ;;  %v3626_v60 = vld [vmem:[%s5115_s10] sm:$0xff]  ;;  %1455 = vmatpush.bf16.msrb.mxu3 %v3445_v61 }
 0x3fa   :  { %v1250_v26 = vmin.f32 %v1234_v8, 0.0  ;;  %v1294_v29 = vmul.f32 1.050701, %v1286_v13  ;;  %vm1242_vm5 = vcmp.gt.f32.partialorder %v1234_v8, 0.0  ;;  %v3460_v52 = vld [vmem:[%s5080_s15 + $0x60] sm:$0xff] }
 0x3fb   :  { %v1169_v55 = vpop.f32.mrf.mxu3  ;;  %v1183_v17 = vpop.f32.mrf.mxu2 }
 0x3fc   :  { %v3549_v32 = vpop.eup %3548  ;;  %v1262_v47 = vmul.f32 1.442695, %v1250_v26  ;;  %v1170_v33 = vadd.f32 %v1169_v55, %v1150_v28 }
 0x3fd   :  { %v3072_v42 = vadd.f32 -1.0, %v3549_v32  ;;  %1456 = vmatpush.bf16.msrb.mxu3 %v3444_v38 }
 0x3fe   :  { %3550 = vpow2.f32 %v1262_v47  ;;  %v1222_v41 = vmul.f32 %v1212_v6, %v1170_v33 }
 0x3ff   :  { %v1280_v46 = vmul.f32 1.6732632, %v3072_v42 }
 0x400   :  { %v1236_v1 = vadd.f32 %v1226_v48, %v1222_v41  ;;  %1204 = vmatmul.bf16.gmra.mxu3 %v4326_v19  ;;  %v3459_v41 = vld [vmem:[%s5080_s15 + $0x58] sm:$0xff] }
 0x401   :  { %v1288_v2 = vsel %vm1240_vm4, %v1232_v63, %v1280_v46  ;;  %1457 = vmatpush.bf16.msrb.mxu3 %v3443_v10  ;;  %v3440_v63 = vld [vmem:[%s5079_s14 + $0x40] sm:$0xff]  ;;  %s5120_s14 = sld [smem:[#allocation14_spill]] }
 0x402   :  { %v1252_v56 = vmin.f32 %v1236_v1, 0.0  ;;  %v1296_v5 = vmul.f32 1.050701, %v1288_v2  ;;  %vm1244_vm6 = vcmp.gt.f32.partialorder %v1236_v1, 0.0  ;;  %v3476_v10 = vld [vmem:[%s5081_s16 + $0x60] sm:$0xff] }
 0x403   :  { %v1186_v28 = vpop.f32.mrf.mxu2 }
 0x404   :  { %v3551_v35 = vpop.eup %3550  ;;  %v1266_v45 = vmul.f32 1.442695, %v1252_v56  ;;  %v1302_v23 = vpack.c.bf16 %v1296_v5, %v1294_v29 }
 0x405   :  { %v3074_v19 = vadd.f32 -1.0, %v3551_v35  ;;  %1458 = vmatpush.bf16.msrb.mxu3 %v3442_v21 }
 0x406   :  { %3552 = vpow2.f32 %v1266_v45  ;;  %1442 = vmatmul.bf16.vlgmr.msrb.gmra.mxu2 %v1302_v23 }
 0x407   :  { %1766 = vmatpush.bf16.msrb.mxu2 %v3471_v40  ;;  %v1282_v6 = vmul.f32 1.6732632, %v3074_v19 }
 0x409   :  { %v1290_v3 = vsel %vm1242_vm5, %v1234_v8, %v1282_v6  ;;  %1459 = vmatpush.bf16.msrb.mxu3 %v3441_v14 }
 0x40a   :  { %v1298_v9 = vmul.f32 1.050701, %v1290_v3 }
 0x40b   :  { %1767 = vmatpush.bf16.msrb.mxu2 %v3470_v18  ;;  %v1188_v2 = vpop.f32.mrf.mxu2 }
 0x40c   :  { %v3553_v31 = vpop.eup %3552 }
 0x40d   :  { %v3076_v27 = vadd.f32 -1.0, %v3553_v31  ;;  %1460 = vmatpush.bf16.msrb.mxu3 %v3440_v63  ;;  %v3474_v63 = vld [vmem:[%s5081_s16 + $0x50] sm:$0xff] }
 0x40f   :  { %v1284_v20 = vmul.f32 1.6732632, %v3076_v27  ;;  %1768 = vmatpush.bf16.msrb.mxu2 %v3469_v59  ;;  %v3456_v27 = vld [vmem:[%s5080_s15 + $0x40] sm:$0xff] }
 0x411   :  { %v1292_v48 = vsel %vm1244_vm6, %v1236_v1, %v1284_v20  ;;  %1619 = vmatpush.bf16.msra.mxu3 %v3463_v11  ;;  %v3458_v1 = vld [vmem:[%s5080_s15 + $0x50] sm:$0xff] }
 0x412   :  { %v1300_v51 = vmul.f32 1.050701, %v1292_v48 }
 0x413   :  { %1769 = vmatpush.bf16.msrb.mxu2 %v3468_v49 }
 0x414   :  { %v1304_v7 = vpack.c.bf16 %v1300_v51, %v1298_v9 }
 0x415   :  { %1620 = vmatpush.bf16.msra.mxu3 %v3462_v44 }
 0x416   :  { %1447 = vmatmul.bf16.gmra.mxu2 %v1304_v7 }
 0x417   :  { %1770 = vmatpush.bf16.msrb.mxu2 %v3467_v54 }
 0x419   :  { %1621 = vmatpush.bf16.msra.mxu3 %v3461_v57 }
 0x41b   :  { %1771 = vmatpush.bf16.msrb.mxu2 %v3466_v4  ;;  %v3478_v4 = vld [vmem:[%s5081_s16 + $0x70] sm:$0xff] }
 0x41d   :  { %1622 = vmatpush.bf16.msra.mxu3 %v3460_v52 }
 0x41f   :  { %1772 = vmatpush.bf16.msrb.mxu2 %v3465_v30 }
 0x421   :  { %1623 = vmatpush.bf16.msra.mxu3 %v3459_v41 }
 0x423   :  { %1773 = vmatpush.bf16.msrb.mxu2 %v3464_v39 }
 0x425   :  { %1624 = vmatpush.bf16.msra.mxu3 %v3458_v1 }
 0x426   :  { %1608 = vmatmul.bf16.vlgmr.msra.gmra.mxu2 %v1302_v23 }
 0x427   :  { %1831 = vmatpush.msra.mxu2 %v3626_v60 }
 0x436   :  { %1613 = vmatmul.bf16.gmra.mxu2 %v1304_v7 }
 0x446   :  { %1774 = vmatmul.bf16.vlgmr.msrb.gmra.mxu2 %v1302_v23  ;;  %v3457_v23 = vld [vmem:[%s5080_s15 + $0x48] sm:$0xff] }
 0x447   :  { %1927 = vmatpush.msrb.mxu2 %v3626_v60  ;;  %1625 = vmatpush.bf16.msra.mxu3 %v3457_v23  ;;  %v3477_v60 = vld [vmem:[%s5081_s16 + $0x68] sm:$0xff]  ;;  %v3638_v23 = vld [vmem:[%s5116_s3 + $0x50] sm:$0xff] }
 0x44b   :  { %1626 = vmatpush.bf16.msra.mxu3 %v3456_v27  ;;  %v3642_v27 = vld [vmem:[%s5116_s3 + $0x40] sm:$0xff] }
 0x456   :  { %1779 = vmatmul.bf16.gmra.mxu2 %v1304_v7  ;;  %v3479_v7 = vld [vmem:[%s5081_s16 + $0x78] sm:$0xff] }
 0x473   :  { %v1200_v25 = vpop.f32.mrf.mxu3 }
 0x474   :  { %v1201_v34 = vadd.f32 %v1200_v25, %v1181_v12  ;;  %v3473_v25 = vld [vmem:[%s5081_s16 + $0x48] sm:$0xff] }
 0x476   :  { %v1217_v15 = vmul.f32 %v1213_v43, %v1201_v34  ;;  %v3472_v34 = vld [vmem:[%s5081_s16 + $0x40] sm:$0xff] }
 0x478   :  { %v1231_v58 = vadd.f32 %v1227_v53, %v1217_v15 }
 0x47a   :  { %v1247_v0 = vmin.f32 %v1231_v58, 0.0  ;;  %vm1239_vm7 = vcmp.gt.f32.partialorder %v1231_v58, 0.0 }
 0x47b   :  { %v1202_v22 = vpop.f32.mrf.mxu3 }
 0x47c   :  { %v1256_v24 = vmul.f32 1.442695, %v1247_v0  ;;  %v1203_v8 = vadd.f32 %v1202_v22, %v1183_v17 }
 0x47e   :  { %3554 = vpow2.f32 %v1256_v24  ;;  %v1219_v16 = vmul.f32 %v1213_v43, %v1203_v8 }
 0x480   :  { %v1233_v26 = vadd.f32 %v1227_v53, %v1219_v16 }
 0x482   :  { %v1249_v55 = vmin.f32 %v1233_v26, 0.0  ;;  %vm1241_vm8 = vcmp.gt.f32.partialorder %v1233_v26, 0.0 }
 0x483   :  { %v1205_v32 = vpop.f32.mrf.mxu3 }
 0x484   :  { %v3555_v47 = vpop.eup %3554  ;;  %v1260_v33 = vmul.f32 1.442695, %v1249_v55  ;;  %v1206_v50 = vadd.f32 %v1205_v32, %v1186_v28 }
 0x485   :  { %v3071_v46 = vadd.f32 -1.0, %v3555_v47 }
 0x486   :  { %3556 = vpow2.f32 %v1260_v33  ;;  %v1221_v42 = vmul.f32 %v1213_v43, %v1206_v50  ;;  %v3628_v50 = vld [vmem:[%s5116_s3 + $0x78] sm:$0xff] }
 0x487   :  { %v1279_v56 = vmul.f32 1.6732632, %v3071_v46  ;;  %v3630_v46 = vld [vmem:[%s5116_s3 + $0x70] sm:$0xff] }
 0x488   :  { %v1235_v13 = vadd.f32 %v1227_v53, %v1221_v42  ;;  %v3629_v42 = vld [vmem:[%s5116_s3 + $0xf8] sm:$0xff] }
 0x489   :  { %v1287_v18 = vsel %vm1239_vm7, %v1231_v58, %v1279_v56  ;;  %v1443_v15 = vpop.f32.mrf.mxu2 }
 0x48a   :  { %v1251_v62 = vmin.f32 %v1235_v13, 0.0  ;;  %v1295_v20 = vmul.f32 1.050701, %v1287_v18  ;;  %vm1243_vm9 = vcmp.gt.f32.partialorder %v1235_v13, 0.0 }
 0x48b   :  { %v1207_v29 = vpop.f32.mrf.mxu3 }
 0x48c   :  { %v3557_v5 = vpop.eup %3556  ;;  %v1264_v35 = vmul.f32 1.442695, %v1251_v62  ;;  %v1208_v45 = vadd.f32 %v1207_v29, %v1188_v2  ;;  %v3632_v62 = vld [vmem:[%s5116_s3 + $0x68] sm:$0xff]  ;;  %v3634_v29 = vld [vmem:[%s5116_s3 + $0x60] sm:$0xff] }
 0x48d   :  { %v3073_v40 = vadd.f32 -1.0, %v3557_v5  ;;  %v3633_v2 = vld [vmem:[%s5116_s3 + $0xe8] sm:$0xff]  ;;  %v3635_v5 = vld [vmem:[%s5116_s3 + $0xe0] sm:$0xff] }
 0x48e   :  { %3558 = vpow2.f32 %v1264_v35  ;;  %v1223_v19 = vmul.f32 %v1213_v43, %v1208_v45  ;;  %v3475_v43 = vld [vmem:[%s5081_s16 + $0x58] sm:$0xff] }
 0x48f   :  { %v1281_v6 = vmul.f32 1.6732632, %v3073_v40  ;;  %v3636_v35 = vld [vmem:[%s5116_s3 + $0x58] sm:$0xff]  ;;  %v3639_v40 = vld [vmem:[%s5116_s3 + $0xd0] sm:$0xff] }
 0x490   :  { %v1237_v31 = vadd.f32 %v1227_v53, %v1223_v19  ;;  %v3627_v53 = vld [vmem:[%s5115_s10 + $0x8] sm:$0xff]  ;;  %v3637_v45 = vld [vmem:[%s5116_s3 + $0xd8] sm:$0xff] }
 0x491   :  { %v1289_v59 = vsel %vm1241_vm8, %v1233_v26, %v1281_v6  ;;  %v1445_v11 = vpop.f32.mrf.mxu2  ;;  %v3640_v6 = vld [vmem:[%s5116_s3 + $0x48] sm:$0xff] }
 0x492   :  { %v1297_v3 = vmul.f32 1.050701, %v1289_v59  ;;  %v1253_v49 = vmin.f32 %v1237_v31, 0.0  ;;  %vm1245_vm10 = vcmp.gt.f32.partialorder %v1237_v31, 0.0 }
 0x494   :  { %v3559_v48 = vpop.eup %3558  ;;  %v1268_v9 = vmul.f32 1.442695, %v1253_v49  ;;  %v1303_v51 = vpack.c.bf16 %v1297_v3, %v1295_v20  ;;  %v3643_v20 = vld [vmem:[%s5116_s3 + $0xc0] sm:$0xff]  ;;  %v3644_v3 = vld [vmem:[%s5116_s3 + $0x38] sm:$0xff] }
 0x495   :  { %v3075_v54 = vadd.f32 -1.0, %v3559_v48  ;;  %v3645_v49 = vld [vmem:[%s5116_s3 + $0xb8] sm:$0xff]  ;;  %v3646_v48 = vld [vmem:[%s5116_s3 + $0x30] sm:$0xff] }
 0x496   :  { %3560 = vpow2.f32 %v1268_v9  ;;  %1461 = vmatmul.bf16.vlgmr.msrb.gmra.mxu3 %v1303_v51  ;;  %v3647_v9 = vld [vmem:[%s5116_s3 + $0xb0] sm:$0xff] }
 0x497   :  { %1785 = vmatpush.bf16.msrb.mxu3 %v3479_v7  ;;  %v1283_v30 = vmul.f32 1.6732632, %v3075_v54  ;;  %v3648_v7 = vld [vmem:[%s5116_s3 + $0x28] sm:$0xff] }
 0x498   :  { %v3649_v54 = vld [vmem:[%s5116_s3 + $0xa8] sm:$0xff] }
 0x499   :  { %v1291_v61 = vsel %vm1243_vm9, %v1235_v13, %v1283_v30  ;;  %v1448_v17 = vpop.f32.mrf.mxu2  ;;  %v3631_v13 = vld [vmem:[%s5116_s3 + $0xf0] sm:$0xff] }
 0x49a   :  { %v1299_v21 = vmul.f32 1.050701, %v1291_v61  ;;  %v3654_v61 = vld [vmem:[%s5116_s3 + $0x10] sm:$0xff] }
 0x49b   :  { %1786 = vmatpush.bf16.msrb.mxu3 %v3478_v4 }
 0x49c   :  { %v3561_v39 = vpop.eup %3560 }
 0x49d   :  { %v3077_v36 = vadd.f32 -1.0, %v3561_v39  ;;  %v3650_v39 = vld [vmem:[%s5116_s3 + $0x20] sm:$0xff] }
 0x49f   :  { %v1285_v37 = vmul.f32 1.6732632, %v3077_v36  ;;  %1787 = vmatpush.bf16.msrb.mxu3 %v3477_v60  ;;  %v3651_v60 = vld [vmem:[%s5116_s3 + $0xa0] sm:$0xff]  ;;  %v3652_v36 = vld [vmem:[%s5116_s3 + $0x18] sm:$0xff] }
 0x4a1   :  { %v1293_v38 = vsel %vm1245_vm10, %v1237_v31, %v1285_v37  ;;  %v1450_v44 = vpop.f32.mrf.mxu2  ;;  %v3641_v31 = vld [vmem:[%s5116_s3 + $0xc8] sm:$0xff]  ;;  %v3653_v37 = vld [vmem:[%s5116_s3 + $0x98] sm:$0xff] }
 0x4a2   :  { %v1301_v12 = vmul.f32 1.050701, %v1293_v38  ;;  %v3655_v38 = vld [vmem:[%s5116_s3 + $0x90] sm:$0xff] }
 0x4a3   :  { %1788 = vmatpush.bf16.msrb.mxu3 %v3476_v10 }
 0x4a4   :  { %v1305_v14 = vpack.c.bf16 %v1301_v12, %v1299_v21  ;;  %v3656_v21 = vld [vmem:[%s5116_s3 + $0x8] sm:$0xff] }
 0x4a5   :  { %v3657_v12 = vld [vmem:[%s5116_s3 + $0x88] sm:$0xff] }
 0x4a6   :  { %1466 = vmatmul.bf16.gmra.mxu3 %v1305_v14 }
 0x4a7   :  { %1789 = vmatpush.bf16.msrb.mxu3 %v3475_v43  ;;  %v3658_v43 = vld [vmem:[%s5116_s3] sm:$0xff] }
 0x4a9   :  { %v1609_v24 = vpop.f32.mrf.mxu2 }
 0x4ab   :  { %1790 = vmatpush.bf16.msrb.mxu3 %v3474_v63  ;;  %v3659_v63 = vld [vmem:[%s5116_s3 + $0x80] sm:$0xff] }
 0x4af   :  { %1791 = vmatpush.bf16.msrb.mxu3 %v3473_v25 }
 0x4b1   :  { %v1611_v52 = vpop.f32.mrf.mxu2 }
 0x4b3   :  { %1792 = vmatpush.bf16.msrb.mxu3 %v3472_v34 }
 0x4b6   :  { %1627 = vmatmul.bf16.vlgmr.msra.gmra.mxu3 %v1303_v51 }
 0x4b7   :  { %1860 = vmatpush.msra.mxu3 %v3627_v53 }
 0x4b9   :  { %v1614_v41 = vpop.f32.mrf.mxu2 }
 0x4c1   :  { %v1616_v19 = vpop.f32.mrf.mxu2 }
 0x4c6   :  { %1632 = vmatmul.bf16.gmra.mxu3 %v1305_v14 }
 0x4c9   :  { %v1775_v30 = vpop.f32.mrf.mxu2 }
 0x4d1   :  { %v1777_v25 = vpop.f32.mrf.mxu2 }
 0x4d6   :  { %1793 = vmatmul.bf16.vlgmr.msrb.gmra.mxu3 %v1303_v51 }
 0x4d7   :  { %1956 = vmatpush.msrb.mxu3 %v3627_v53 }
 0x4e6   :  { %1798 = vmatmul.bf16.gmra.mxu3 %v1305_v14 }
 0x519   :  { %v1462_v58 = vpop.f32.mrf.mxu3 }
 0x51a   :  { %v1463_v55 = vadd.f32 %v1462_v58, %v1443_v15  ;;  %v1780_v15 = vpop.f32.mrf.mxu2 }
 0x521   :  { %v1464_v0 = vpop.f32.mrf.mxu3 }
 0x522   :  { %v1465_v26 = vadd.f32 %v1464_v0, %v1445_v11  ;;  %v1782_v58 = vpop.f32.mrf.mxu2 }
 0x524   :  { %v4504_v32 = vpack.c.bf16 %v1465_v26, %v1463_v55  ;;  %v3661_v55 = vld [vmem:[%s5117_s29 + $0x18] sm:$0xff] }
 0x529   :  { %v1467_v22 = vpop.f32.mrf.mxu3 }
 0x52a   :  { %v1468_v57 = vadd.f32 %v1467_v22, %v1448_v17 }
 0x531   :  { %v1469_v8 = vpop.f32.mrf.mxu3 }
 0x532   :  { %v1470_v16 = vadd.f32 %v1469_v8, %v1450_v44 }
 0x534   :  { %v4501_v28 = vpack.c.bf16 %v1470_v16, %v1468_v57 }
 0x536   :  { %2182 = vmatpush.bf16.msrb.mxu0 %v4501_v28 }
 0x539   :  { %v1628_v47 = vpop.f32.mrf.mxu3 }
 0x53a   :  { %v1629_v33 = vadd.f32 %v1628_v47, %v1609_v24  ;;  %2183 = vmatpush.bf16.msrb.mxu0 %v4504_v32  ;;  %v3662_v47 = vld [vmem:[%s5117_s29] sm:$0xff] }
 0x53c   :  { %3270 = vmatmul.msk.f32.vlgmr.msra.gmra.mxu2 %vm195_vm1, %v1629_v33  ;;  %3274 = vmatmul.msk.f32.vlgmr.msra.gmra.mxu3 %vm195_vm1, %v1629_v33 }
 0x53d   :  { %2030 = vmatpush.msra.mxu2 %v3628_v50  ;;  %2059 = vmatpush.msra.mxu3 %v3629_v42  ;;  %v3663_v50 = vld [vmem:[%s5117_s29 + $0x8] sm:$0xff] }
 0x53f   :  { %2031 = vmatpush.msra.mxu2 %v3630_v46  ;;  %2060 = vmatpush.msra.mxu3 %v3631_v13  ;;  %v3665_v13 = vld [vmem:[%s5117_s29 + $0x28] sm:$0xff] }
 0x541   :  { %v1630_v1 = vpop.f32.mrf.mxu3  ;;  %2032 = vmatpush.msra.mxu2 %v3632_v62  ;;  %2061 = vmatpush.msra.mxu3 %v3633_v2 }
 0x542   :  { %v1631_v56 = vadd.f32 %v1630_v1, %v1611_v52 }
 0x543   :  { %2033 = vmatpush.msra.mxu2 %v3634_v29  ;;  %2062 = vmatpush.msra.mxu3 %v3635_v5 }
 0x544   :  { %3271 = vmatmul.msk.f32.gmra.mxu2 %vm195_vm1, %v1631_v56  ;;  %3275 = vmatmul.msk.f32.gmra.mxu3 %vm195_vm1, %v1631_v56 }
 0x545   :  { %2034 = vmatpush.msra.mxu2 %v3636_v35  ;;  %2063 = vmatpush.msra.mxu3 %v3637_v45  ;;  %v3666_v45 = vld [vmem:[%s5117_s29 + $0x30] sm:$0xff] }
 0x547   :  { %2035 = vmatpush.msra.mxu2 %v3638_v23  ;;  %2064 = vmatpush.msra.mxu3 %v3639_v40  ;;  %v3667_v40 = vld [vmem:[%s5117_s29 + $0x38] sm:$0xff] }
 0x549   :  { %v1633_v18 = vpop.f32.mrf.mxu3  ;;  %2036 = vmatpush.msra.mxu2 %v3640_v6  ;;  %2065 = vmatpush.msra.mxu3 %v3641_v31 }
 0x54a   :  { %v1634_v59 = vadd.f32 %v1633_v18, %v1614_v41  ;;  %v3664_v41 = vld [vmem:[%s5117_s29 + $0x20] sm:$0xff] }
 0x54b   :  { %2037 = vmatpush.msra.mxu2 %v3642_v27  ;;  %2066 = vmatpush.msra.mxu3 %v3643_v20 }
 0x54c   :  { %3272 = vmatmul.msk.f32.gmra.mxu2 %vm195_vm1, %v1634_v59  ;;  %3276 = vmatmul.msk.f32.gmra.mxu3 %vm195_vm1, %v1634_v59 }
 0x54d   :  { %2038 = vmatpush.msra.mxu2 %v3644_v3  ;;  %2067 = vmatpush.msra.mxu3 %v3645_v49 }
 0x54f   :  { %2039 = vmatpush.msra.mxu2 %v3646_v48  ;;  %2068 = vmatpush.msra.mxu3 %v3647_v9 }
 0x551   :  { %v1635_v51 = vpop.f32.mrf.mxu3  ;;  %2040 = vmatpush.msra.mxu2 %v3648_v7  ;;  %2069 = vmatpush.msra.mxu3 %v3649_v54 }
 0x552   :  { %v1636_v4 = vadd.f32 %v1635_v51, %v1616_v19 }
 0x553   :  { %2041 = vmatpush.msra.mxu2 %v3650_v39  ;;  %2070 = vmatpush.msra.mxu3 %v3651_v60 }
 0x554   :  { %3273 = vmatmul.msk.f32.gmra.mxu2 %vm195_vm1, %v1636_v4  ;;  %3277 = vmatmul.msk.f32.gmra.mxu3 %vm195_vm1, %v1636_v4 }
 0x555   :  { %2042 = vmatpush.msra.mxu2 %v3652_v36  ;;  %2071 = vmatpush.msra.mxu3 %v3653_v37 }
 0x557   :  { %2043 = vmatpush.msra.mxu2 %v3654_v61  ;;  %2072 = vmatpush.msra.mxu3 %v3655_v38 }
 0x559   :  { %v1794_v10 = vpop.f32.mrf.mxu3  ;;  %2044 = vmatpush.msra.mxu2 %v3656_v21  ;;  %2073 = vmatpush.msra.mxu3 %v3657_v12 }
 0x55a   :  { %v1795_v14 = vadd.f32 %v1794_v10, %v1775_v30 }
 0x55b   :  { %2045 = vmatpush.msra.mxu2 %v3658_v43  ;;  %2074 = vmatpush.msra.mxu3 %v3659_v63 }
 0x55c   :  { %3278 = vmatmul.msk.f32.vlgmr.msrb.gmra.mxu2 %vm195_vm1, %v1795_v14  ;;  %3282 = vmatmul.msk.f32.vlgmr.msrb.gmra.mxu3 %vm195_vm1, %v1795_v14 }
 0x55d   :  { %3508 = vmatpush.bf16.msrb.mxu2 %v4501_v28  ;;  %v3660_v28 = vld [vmem:[%s5117_s29 + $0x10] sm:$0xff] }
 0x561   :  { %3509 = vmatpush.bf16.msrb.mxu2 %v4504_v32  ;;  %v1796_v34 = vpop.f32.mrf.mxu3 }
 0x562   :  { %v1797_v53 = vadd.f32 %v1796_v34, %v1777_v25  ;;  %v3668_v34 = vld [vmem:[%s5118_s30] sm:$0xff] }
 0x564   :  { %3279 = vmatmul.msk.f32.gmra.mxu2 %vm195_vm1, %v1797_v53  ;;  %3283 = vmatmul.msk.f32.gmra.mxu3 %vm195_vm1, %v1797_v53 }
 0x569   :  { %v1799_v11 = vpop.f32.mrf.mxu3 }
 0x56a   :  { %v1800_v17 = vadd.f32 %v1799_v11, %v1780_v15  ;;  %v3669_v15 = vld [vmem:[%s5118_s30 + $0x8] sm:$0xff] }
 0x56c   :  { %3280 = vmatmul.msk.f32.gmra.mxu2 %vm195_vm1, %v1800_v17  ;;  %3284 = vmatmul.msk.f32.gmra.mxu3 %vm195_vm1, %v1800_v17 }
 0x571   :  { %v1801_v44 = vpop.f32.mrf.mxu3 }
 0x572   :  { %v1802_v0 = vadd.f32 %v1801_v44, %v1782_v58 }
 0x574   :  { %3281 = vmatmul.msk.f32.gmra.mxu2 %vm195_vm1, %v1802_v0  ;;  %3285 = vmatmul.msk.f32.gmra.mxu3 %vm195_vm1, %v1802_v0 }
 0x5bf   :  { %v1833_v22 = vpop.f32.mrf.mxu2  ;;  %v1862_v24 = vpop.f32.mrf.mxu3 }
 0x5c0   :  { %v1874_v33 = vmul.f32 %v3662_v47, %v1833_v22  ;;  %v1875_v42 = vmul.f32 %v3663_v50, %v1862_v24 }
 0x5c7   :  { %v1836_v8 = vpop.f32.mrf.mxu2  ;;  %v1865_v57 = vpop.f32.mrf.mxu3 }
 0x5c8   :  { %v1876_v52 = vmul.f32 %v3660_v28, %v1836_v8  ;;  %v1877_v32 = vmul.f32 %v3661_v55, %v1865_v57 }
 0x5ca   :  { %v1882_v62 = vadd.f32 %v1876_v52, %v1874_v33  ;;  %v1891_v2 = vadd.f32 %v1877_v32, %v1875_v42  ;;  %v3670_v52 = vld [vmem:[%s5118_s30 + $0x10] sm:$0xff]  ;;  %v3671_v32 = vld [vmem:[%s5118_s30 + $0x18] sm:$0xff]  ;;  %v3672_v33 = vld [vmem:[%s5118_s30 + $0x20] sm:$0xff] }
 0x5cb   :  { %v3673_v42 = vld [vmem:[%s5118_s30 + $0x28] sm:$0xff] }
 0x5cf   :  { %v1839_v16 = vpop.f32.mrf.mxu2  ;;  %v1868_v26 = vpop.f32.mrf.mxu3 }
 0x5d0   :  { %v1878_v46 = vmul.f32 %v3664_v41, %v1839_v16  ;;  %v1879_v1 = vmul.f32 %v3665_v13, %v1868_v26 }
 0x5d2   :  { %v1883_v5 = vadd.f32 %v1882_v62, %v1878_v46  ;;  %v1892_v35 = vadd.f32 %v1891_v2, %v1879_v1 }
 0x5d7   :  { %v1842_v56 = vpop.f32.mrf.mxu2  ;;  %v1871_v29 = vpop.f32.mrf.mxu3 }
 0x5d8   :  { %v1880_v23 = vmul.f32 %v3666_v45, %v1842_v56  ;;  %v1881_v19 = vmul.f32 %v3667_v40, %v1871_v29 }
 0x5da   :  { %v1884_v18 = vadd.f32 %v1883_v5, %v1880_v23  ;;  %v1893_v6 = vadd.f32 %v1892_v35, %v1881_v19  ;;  %v3674_v23 = vld [vmem:[%s5118_s30 + $0x30] sm:$0xff]  ;;  %v3675_v19 = vld [vmem:[%s5118_s30 + $0x38] sm:$0xff] }
 0x5dc   :  { %v1885_v31 = vrot.slane %v1884_v18, 4  ;;  %v1894_v59 = vrot.slane %v1893_v6, 4 }
 0x5de   :  { %v1886_v27 = vadd.f32 %v1885_v31, %v1884_v18  ;;  %v1895_v20 = vadd.f32 %v1894_v59, %v1893_v6 }
 0x5df   :  { %v1929_v3 = vpop.f32.mrf.mxu2  ;;  %v1958_v49 = vpop.f32.mrf.mxu3 }
 0x5e0   :  { %v1887_v48 = vrot.slane %v1886_v27, 2  ;;  %v1896_v9 = vrot.slane %v1895_v20, 2 }
 0x5e2   :  { %v1888_v51 = vadd.f32 %v1887_v48, %v1886_v27  ;;  %v1897_v7 = vadd.f32 %v1896_v9, %v1895_v20 }
 0x5e4   :  { %v1889_v54 = vrot.slane %v1888_v51, 1  ;;  %v1898_v4 = vrot.slane %v1897_v7, 1 }
 0x5e6   :  { %v1890_v30 = vadd.f32 %v1889_v54, %v1888_v51  ;;  %v1899_v39 = vadd.f32 %v1898_v4, %v1897_v7 }
 0x5e7   :  { %v1932_v60 = vpop.f32.mrf.mxu2  ;;  %v1961_v36 = vpop.f32.mrf.mxu3 }
 0x5e8   :  { %v1930_v37 = vadd.f32 %v1929_v3, %v1890_v30  ;;  %v1959_v61 = vadd.f32 %v1958_v49, %v1899_v39  ;;  %v1933_v38 = vadd.f32 %v1932_v60, %v1890_v30  ;;  %v1962_v10 = vadd.f32 %v1961_v36, %v1899_v39 }
 0x5ea   :  { %v1970_v21 = vmul.f32 0.2, %v1930_v37  ;;  %v1971_v12 = vmul.f32 0.2, %v1959_v61  ;;  %v1972_v14 = vmul.f32 0.2, %v1933_v38 }
 0x5eb   :  { %v1973_v25 = vmul.f32 0.2, %v1962_v10 }
 0x5ec   :  { %v1978_v43 = vmax.f32 %v1930_v37, %v1970_v21  ;;  %v1979_v63 = vmax.f32 %v1959_v61, %v1971_v12  ;;  %v1980_v17 = vmax.f32 %v1933_v38, %v1972_v14 }
 0x5ed   :  { %v1981_v0 = vmax.f32 %v1962_v10, %v1973_v25 }
 0x5ee   :  { %v1986_v53 = vadd.f32 %v3668_v34, %v1978_v43  ;;  %v1987_v11 = vadd.f32 %v3669_v15, %v1979_v63  ;;  %v1988_v55 = vadd.f32 %v3670_v52, %v1980_v17  ;;  %v3676_v15 = vld [vmem:[%s5119_s24 + $0x38] sm:$0xff]  ;;  %v3678_v17 = vld [vmem:[%s5119_s24 + $0x48] sm:$0xff] }
 0x5ef   :  { %v1935_v58 = vpop.f32.mrf.mxu2  ;;  %v1964_v44 = vpop.f32.mrf.mxu3  ;;  %v1989_v47 = vadd.f32 %v3671_v32, %v1981_v0  ;;  %v3681_v0 = vld [vmem:[%s5119_s24 + $0x60] sm:$0xff] }
 0x5f0   :  { %v1936_v22 = vadd.f32 %v1935_v58, %v1890_v30  ;;  %v1965_v24 = vadd.f32 %v1964_v44, %v1899_v39  ;;  %v1994_v8 = vmax.f32 %v1986_v53, %v1987_v11  ;;  %v3679_v58 = vld [vmem:[%s5119_s24 + $0x50] sm:$0xff]  ;;  %v3680_v44 = vld [vmem:[%s5119_s24 + $0x58] sm:$0xff] }
 0x5f1   :  { %v1997_v56 = vmax.f32 %v1988_v55, %v1989_v47 }
 0x5f2   :  { %v1974_v57 = vmul.f32 0.2, %v1936_v22  ;;  %v1975_v16 = vmul.f32 0.2, %v1965_v24  ;;  %1995 = vmax.xlane.f32.xlu2 %v1994_v8 }
 0x5f4   :  { %v1982_v26 = vmax.f32 %v1936_v22, %v1974_v57  ;;  %v1983_v28 = vmax.f32 %v1965_v24, %v1975_v16  ;;  %v3682_v22 = vld [vmem:[%s5119_s24 + $0x68] sm:$0xff] }
 0x5f6   :  { %v1990_v50 = vadd.f32 %v3672_v33, %v1982_v26  ;;  %v1991_v41 = vadd.f32 %v3673_v42, %v1983_v28 }
 0x5f7   :  { %v1938_v46 = vpop.f32.mrf.mxu2  ;;  %v1967_v13 = vpop.f32.mrf.mxu3 }
 0x5f8   :  { %v1939_v1 = vadd.f32 %v1938_v46, %v1890_v30  ;;  %v1968_v62 = vadd.f32 %v1967_v13, %v1899_v39  ;;  %v2000_v2 = vmax.f32 %v1990_v50, %v1991_v41 }
 0x5fa   :  { %v1976_v29 = vmul.f32 0.2, %v1939_v1  ;;  %v1977_v5 = vmul.f32 0.2, %v1968_v62  ;;  %2001 = vmax.xlane.f32.xlu0 %v2000_v2  ;;  %1998 = vmax.xlane.f32.xlu2 %v1997_v56  ;;  %v3685_v56 = vld [vmem:[%s5119_s24] sm:$0xff] }
 0x5fc   :  { %v1984_v35 = vmax.f32 %v1939_v1, %v1976_v29  ;;  %v1985_v45 = vmax.f32 %v1968_v62, %v1977_v5  ;;  %v3684_v1 = vld [vmem:[%s5119_s24 + $0x78] sm:$0xff]  ;;  %v2279_v29 = vld [vmem:[%s5120_s14 + $0x70] sm:$0xff] }
 0x5fd   :  { %v2280_v5 = vld [vmem:[%s5120_s14 + $0x78] sm:$0xff] }
 0x5fe   :  { %v1992_v40 = vadd.f32 %v3674_v23, %v1984_v35  ;;  %v1993_v18 = vadd.f32 %v3675_v19, %v1985_v45 }
 0x600   :  { %v2003_v6 = vmax.f32 %v1992_v40, %v1993_v18 }
 0x602   :  { %2004 = vmax.xlane.f32.xlu1 %v2003_v6  ;;  %v2281_v6 = vld [vmem:[%s5120_s14 + $0x80] sm:$0xff] }
 0x665   :  { %v1996_v31 = vpop.xlane.xlu2 %1995 }
 0x666   :  { %v2006_v59 = vsub.f32 %v1986_v53, %v1996_v31  ;;  %v2007_v27 = vsub.f32 %v1987_v11, %v1996_v31  ;;  %v3677_v11 = vld [vmem:[%s5119_s24 + $0x40] sm:$0xff]  ;;  %v2282_v31 = vld [vmem:[%s5120_s14 + $0x88] sm:$0xff] }
 0x668   :  { %v2014_v20 = vmul.f32 1.442695, %v2006_v59  ;;  %v2016_v3 = vmul.f32 1.442695, %v2007_v27 }
 0x66a   :  { %3562 = vpow2.f32 %v2014_v20 }
 0x66b   :  { %3564 = vpow2.f32 %v2016_v3 }
 0x66d   :  { %v1999_v49 = vpop.xlane.xlu2 %1998  ;;  %v2002_v4 = vpop.xlane.xlu0 %2001 }
 0x66e   :  { %v2008_v48 = vsub.f32 %v1988_v55, %v1999_v49  ;;  %v2009_v9 = vsub.f32 %v1989_v47, %v1999_v49  ;;  %v2010_v39 = vsub.f32 %v1990_v50, %v2002_v4  ;;  %v2011_v60 = vsub.f32 %v1991_v41, %v2002_v4  ;;  %v3683_v55 = vld [vmem:[%s5119_s24 + $0x70] sm:$0xff] }
 0x670   :  { %v4669_v51 = vpop.eup %3562  ;;  %v2018_v7 = vmul.f32 1.442695, %v2008_v48  ;;  %v2020_v30 = vmul.f32 1.442695, %v2009_v9  ;;  %v2022_v36 = vmul.f32 1.442695, %v2010_v39 }
 0x671   :  { %v4671_v54 = vpop.eup %3564  ;;  %2046 = vmatmul.f32.vlgmr.msra.gmra.mxu2 %v4669_v51  ;;  %v2024_v37 = vmul.f32 1.442695, %v2011_v60  ;;  %v3687_v48 = vld [vmem:[%s5119_s24 + $0x10] sm:$0xff] }
 0x672   :  { %2075 = vmatmul.f32.vlgmr.msra.gmra.mxu3 %v4671_v54  ;;  %3566 = vpow2.f32 %v2018_v7  ;;  %v2283_v9 = vld [vmem:[%s5120_s14 + $0x90] sm:$0xff]  ;;  %v2284_v7 = vld [vmem:[%s5120_s14 + $0x98] sm:$0xff] }
 0x673   :  { %3568 = vpow2.f32 %v2020_v30 }
 0x674   :  { %3570 = vpow2.f32 %v2022_v36 }
 0x675   :  { %v2005_v61 = vpop.xlane.xlu1 %2004  ;;  %3572 = vpow2.f32 %v2024_v37  ;;  %v3688_v37 = vld [vmem:[%s5119_s24 + $0x18] sm:$0xff] }
 0x676   :  { %v2012_v21 = vsub.f32 %v1992_v40, %v2005_v61  ;;  %v2013_v12 = vsub.f32 %v1993_v18, %v2005_v61  ;;  %v3686_v18 = vld [vmem:[%s5119_s24 + $0x8] sm:$0xff]  ;;  %v2285_v61 = vld [vmem:[%s5120_s14 + $0xa0] sm:$0xff] }
 0x678   :  { %v4675_v38 = vpop.eup %3566  ;;  %v2026_v14 = vmul.f32 1.442695, %v2012_v21  ;;  %v2028_v43 = vmul.f32 1.442695, %v2013_v12  ;;  %v2286_v21 = vld [vmem:[%s5120_s14 + $0xa8] sm:$0xff] }
 0x679   :  { %v4677_v10 = vpop.eup %3568  ;;  %2049 = vmatmul.f32.gmra.mxu2 %v4675_v38 }
 0x67a   :  { %2078 = vmatmul.f32.gmra.mxu3 %v4677_v10  ;;  %v4681_v63 = vpop.eup %3570  ;;  %3574 = vpow2.f32 %v2026_v14 }
 0x67b   :  { %v4683_v25 = vpop.eup %3572  ;;  %3576 = vpow2.f32 %v2028_v43 }
 0x680   :  { %v4687_v34 = vpop.eup %3574 }
 0x681   :  { %2052 = vmatmul.f32.gmra.mxu2 %v4681_v63  ;;  %v4689_v53 = vpop.eup %3576 }
 0x682   :  { %2081 = vmatmul.f32.gmra.mxu3 %v4683_v25 }
 0x689   :  { %2055 = vmatmul.f32.gmra.mxu2 %v4687_v34 }
 0x68a   :  { %2084 = vmatmul.f32.gmra.mxu3 %v4689_v53 }
 0x691   :  { %3301 = vmatmul.msk.bf16.vlgmr.msrb.gmra.mxu2 %vm747_vm2, %v3676_v15 }
 0x6a1   :  { %3302 = vmatmul.msk.bf16.gmra.mxu2 %vm747_vm2, %v3677_v11 }
 0x6b1   :  { %3303 = vmatmul.msk.bf16.gmra.mxu2 %vm747_vm2, %v3678_v17  ;;  %v3689_v17 = vld [vmem:[%s5119_s24 + $0x20] sm:$0xff] }
 0x6c1   :  { %3304 = vmatmul.msk.bf16.gmra.mxu2 %vm747_vm2, %v3679_v58  ;;  %v2287_v58 = vld [vmem:[%s5120_s14 + $0xb0] sm:$0xff] }
 0x6d1   :  { %3305 = vmatmul.msk.bf16.gmra.mxu2 %vm747_vm2, %v3680_v44  ;;  %v2288_v44 = vld [vmem:[%s5120_s14 + $0xb8] sm:$0xff] }
 0x6e1   :  { %3306 = vmatmul.msk.bf16.gmra.mxu2 %vm747_vm2, %v3681_v0 }
 0x6f1   :  { %3307 = vmatmul.msk.bf16.gmra.mxu2 %vm747_vm2, %v3682_v22 }
 0x6f4   :  { %v2047_v24 = vpop.f32.mrf.mxu2 }
 0x6f5   :  { %v2076_v8 = vpop.f32.mrf.mxu3 }
 0x6f6   :  { %v2077_v57 = vadd.f32 %v2076_v8, %v2047_v24 }
 0x6f8   :  { %3578 = vrcp.f32 %v2077_v57 }
 0x6fc   :  { %v2050_v26 = vpop.f32.mrf.mxu2 }
 0x6fd   :  { %v2079_v28 = vpop.f32.mrf.mxu3 }
 0x6fe   :  { %v3579_v16 = vpop.eup %3578  ;;  %v2080_v52 = vadd.f32 %v2079_v28, %v2050_v26 }
 0x6ff   :  { %3286 = vmatmul.msk.f32.vlgmr.msra.gmra.mxu0 %vm195_vm1, %v3579_v16 }
 0x700   :  { %3580 = vrcp.f32 %v2080_v52  ;;  %v3691_v52 = vld [vmem:[%s5119_s24 + $0x30] sm:$0xff] }
 0x701   :  { %3308 = vmatmul.msk.bf16.gmra.mxu2 %vm747_vm2, %v3683_v55 }
 0x704   :  { %v2053_v32 = vpop.f32.mrf.mxu2 }
 0x705   :  { %v2082_v47 = vpop.f32.mrf.mxu3 }
 0x706   :  { %v3581_v33 = vpop.eup %3580  ;;  %v2083_v50 = vadd.f32 %v2082_v47, %v2053_v32 }
 0x707   :  { %3287 = vmatmul.msk.f32.gmra.mxu0 %vm195_vm1, %v3581_v33 }
 0x708   :  { %3582 = vrcp.f32 %v2083_v50 }
 0x70c   :  { %v2056_v42 = vpop.f32.mrf.mxu2 }
 0x70d   :  { %v2085_v41 = vpop.f32.mrf.mxu3 }
 0x70e   :  { %v3583_v46 = vpop.eup %3582  ;;  %v2086_v13 = vadd.f32 %v2085_v41, %v2056_v42 }
 0x70f   :  { %3288 = vmatmul.msk.f32.gmra.mxu0 %vm195_vm1, %v3583_v46 }
 0x710   :  { %3584 = vrcp.f32 %v2086_v13 }
 0x711   :  { %3309 = vmatmul.msk.bf16.gmra.mxu2 %vm747_vm2, %v3684_v1 }
 0x714   :  { %v2220_v62 = vpop.f32.mrf.mxu2 }
 0x715   :  { %v2311_v35 = vmul.f32 %v2279_v29, %v2220_v62  ;;  %v2265_v29 = vld [vmem:[%s5120_s14] sm:$0xff] }
 0x716   :  { %v3585_v2 = vpop.eup %3584 }
 0x717   :  { %3289 = vmatmul.msk.f32.vlgmr.msra.gmra.mxu1 %vm195_vm1, %v3585_v2  ;;  %3294 = vmatmul.msk.bf16.vlgmr.msrb.gmra.mxu0 %vm747_vm2, %v3685_v56  ;;  %v2295_v56 = vld [vmem:[%s5120_s14 + $0xf0] sm:$0xff] }
 0x71c   :  { %v2222_v45 = vpop.f32.mrf.mxu2 }
 0x71d   :  { %v2312_v23 = vmul.f32 %v2280_v5, %v2222_v45  ;;  %v2294_v5 = vld [vmem:[%s5120_s14 + $0xe8] sm:$0xff] }
 0x71f   :  { %v2336_v40 = vpack.c.bf16 %v2312_v23, %v2311_v35  ;;  %3290 = vmatmul.msk.f32.vlgmr.msrb.gmra.mxu1 %vm195_vm1, %v3579_v16  ;;  %v3690_v16 = vld [vmem:[%s5119_s24 + $0x28] sm:$0xff]  ;;  %v2296_v35 = vld [vmem:[%s5120_s14 + $0xf8] sm:$0xff] }
 0x721   :  { %2345 = vmatpush.bf16.msrb.mxu3 %v2336_v40 }
 0x724   :  { %v2225_v19 = vpop.f32.mrf.mxu2 }
 0x725   :  { %v4755_v59 = vmul.f32 %v2281_v6, %v2225_v19 }
 0x727   :  { %3291 = vmatmul.msk.f32.gmra.mxu1 %vm195_vm1, %v3581_v33  ;;  %3295 = vmatmul.msk.bf16.gmra.mxu0 %vm747_vm2, %v3686_v18 }
 0x72c   :  { %v2227_v27 = vpop.f32.mrf.mxu2 }
 0x72d   :  { %v4757_v20 = vmul.f32 %v2282_v31, %v2227_v27 }
 0x72f   :  { %v2337_v3 = vpack.c.bf16 %v4757_v20, %v4755_v59  ;;  %3292 = vmatmul.msk.f32.gmra.mxu1 %vm195_vm1, %v3583_v46  ;;  %v2277_v59 = vld [vmem:[%s5120_s14 + $0x60] sm:$0xff]  ;;  %v2278_v20 = vld [vmem:[%s5120_s14 + $0x68] sm:$0xff] }
 0x734   :  { %v2230_v49 = vpop.f32.mrf.mxu2 }
 0x735   :  { %v4773_v4 = vmul.f32 %v2283_v9, %v2230_v49  ;;  %v2291_v49 = vld [vmem:[%s5120_s14 + $0xd0] sm:$0xff] }
 0x737   :  { %3293 = vmatmul.msk.f32.gmra.mxu1 %vm195_vm1, %v3585_v2  ;;  %3296 = vmatmul.msk.bf16.gmra.mxu0 %vm747_vm2, %v3687_v48  ;;  %v2292_v48 = vld [vmem:[%s5120_s14 + $0xd8] sm:$0xff] }
 0x73c   :  { %v2232_v30 = vpop.f32.mrf.mxu2 }
 0x73d   :  { %v4775_v39 = vmul.f32 %v2284_v7, %v2232_v30 }
 0x73f   :  { %v2338_v60 = vpack.c.bf16 %v4775_v39, %v4773_v4 }
 0x744   :  { %v2235_v36 = vpop.f32.mrf.mxu2 }
 0x745   :  { %v4789_v12 = vmul.f32 %v2285_v61, %v2235_v36  ;;  %v2289_v61 = vld [vmem:[%s5120_s14 + $0xc0] sm:$0xff] }
 0x747   :  { %3297 = vmatmul.msk.bf16.gmra.mxu0 %vm747_vm2, %v3688_v37 }
 0x74c   :  { %v2237_v14 = vpop.f32.mrf.mxu2 }
 0x74d   :  { %v4791_v43 = vmul.f32 %v2286_v21, %v2237_v14  ;;  %v2290_v21 = vld [vmem:[%s5120_s14 + $0xc8] sm:$0xff] }
 0x74f   :  { %v2339_v15 = vpack.c.bf16 %v4791_v43, %v4789_v12 }
 0x754   :  { %v2240_v11 = vpop.f32.mrf.mxu2 }
 0x755   :  { %v2319_v0 = vmul.f32 %v2287_v58, %v2240_v11 }
 0x757   :  { %3298 = vmatmul.msk.bf16.gmra.mxu0 %vm747_vm2, %v3689_v17 }
 0x75c   :  { %v2242_v22 = vpop.f32.mrf.mxu2 }
 0x75d   :  { %v2320_v24 = vmul.f32 %v2288_v44, %v2242_v22  ;;  %v2267_v22 = vld [vmem:[%s5120_s14 + $0x10] sm:$0xff] }
 0x75f   :  { %v2340_v8 = vpack.c.bf16 %v2320_v24, %v2319_v0  ;;  %v2268_v24 = vld [vmem:[%s5120_s14 + $0x18] sm:$0xff] }
 0x764   :  { %v2245_v57 = vpop.f32.mrf.mxu2 }
 0x765   :  { %v2321_v11 = vmul.f32 %v2289_v61, %v2245_v57 }
 0x767   :  { %3299 = vmatmul.msk.bf16.gmra.mxu0 %vm747_vm2, %v3690_v16 }
 0x76c   :  { %v2247_v26 = vpop.f32.mrf.mxu2 }
 0x76d   :  { %v2322_v17 = vmul.f32 %v2290_v21, %v2247_v26 }
 0x76f   :  { %v2341_v44 = vpack.c.bf16 %v2322_v17, %v2321_v11 }
 0x774   :  { %v2250_v28 = vpop.f32.mrf.mxu2 }
 0x775   :  { %v2323_v30 = vmul.f32 %v2291_v49, %v2250_v28  ;;  %v2273_v49 = vld [vmem:[%s5120_s14 + $0x40] sm:$0xff] }
 0x777   :  { %3300 = vmatmul.msk.bf16.gmra.mxu0 %vm747_vm2, %v3691_v52 }
 0x77c   :  { %v4813_v55 = vpop.f32.mrf.mxu0  ;;  %v2252_v32 = vpop.f32.mrf.mxu2 }
 0x77d   :  { %v2324_v36 = vmul.f32 %v2292_v48, %v2252_v32 }
 0x77f   :  { %v2342_v58 = vpack.c.bf16 %v2324_v36, %v2323_v30  ;;  %v2272_v30 = vld [vmem:[%s5120_s14 + $0x38] sm:$0xff] }
 0x784   :  { %v4815_v47 = vpop.f32.mrf.mxu0  ;;  %v2255_v33 = vpop.f32.mrf.mxu2 }
 0x785   :  { %v2164_v17 = vmul.f32 %v4675_v38, %v4815_v47  ;;  %v3495_v38 = vld [vmem:[%s5085_s20 + $0x38] sm:$0xff]  ;;  %v3494_v47 = vld [vmem:[%s5085_s20 + $0x30] sm:$0xff] }
 0x78c   :  { %v2127_v50 = vpop.f32.mrf.mxu0  ;;  %v2257_v42 = vpop.f32.mrf.mxu2 }
 0x78d   :  { %v4818_v13 = vmul.f32 %v4681_v63, %v2127_v50  ;;  %v2266_v63 = vld [vmem:[%s5120_s14 + $0x8] sm:$0xff]  ;;  %v2326_v31 = vmul.f32 %v2294_v5, %v2257_v42 }
 0x78e   :  { %v2270_v50 = vld [vmem:[%s5120_s14 + $0x28] sm:$0xff] }
 0x794   :  { %v2130_v41 = vpop.f32.mrf.mxu1  ;;  %v2185_v46 = vpop.f32.mrf.mxu0 }
 0x795   :  { %v4821_v1 = vmul.f32 %v4687_v34, %v2130_v41  ;;  %v2260_v62 = vpop.f32.mrf.mxu2  ;;  %v2293_v34 = vld [vmem:[%s5120_s14 + $0xe0] sm:$0xff]  ;;  %v4843_v40 = vmul.f32 %v2265_v29, %v2185_v46 }
 0x796   :  { %v2327_v45 = vmul.f32 %v2295_v56, %v2260_v62  ;;  %v2325_v6 = vmul.f32 %v2293_v34, %v2255_v33  ;;  %v2269_v33 = vld [vmem:[%s5120_s14 + $0x20] sm:$0xff] }
 0x797   :  { %v2172_v2 = vpack.c.bf16 %v4821_v1, %v4818_v13  ;;  %v3502_v13 = vld [vmem:[%s5086_s21 + $0x30] sm:$0xff]  ;;  %v3485_v1 = vld [vmem:[%s5084_s19 + $0x28] sm:$0xff] }
 0x798   :  { %v2343_v37 = vpack.c.bf16 %v2326_v31, %v2325_v6  ;;  %v2274_v31 = vld [vmem:[%s5120_s14 + $0x48] sm:$0xff] }
 0x79c   :  { %v2187_v23 = vpop.f32.mrf.mxu0  ;;  %v2150_v0 = vpop.f32.mrf.mxu1 }
 0x79d   :  { %v4845_v19 = vmul.f32 %v2266_v63, %v2187_v23  ;;  %v2262_v18 = vpop.f32.mrf.mxu2  ;;  %v2163_v41 = vmul.f32 %v4671_v54, %v2150_v0  ;;  %v2275_v23 = vld [vmem:[%s5120_s14 + $0x50] sm:$0xff]  ;;  %v3487_v0 = vld [vmem:[%s5084_s19 + $0x38] sm:$0xff] }
 0x79e   :  { %v2328_v27 = vmul.f32 %v2296_v35, %v2262_v18  ;;  %2497 = vmatpush.bf16.msra.mxu1 %v3487_v0 }
 0x79f   :  { %v2329_v9 = vpack.c.bf16 %v4845_v19, %v4843_v40  ;;  %v3501_v40 = vld [vmem:[%s5086_s21 + $0x28] sm:$0xff]  ;;  %v3484_v19 = vld [vmem:[%s5084_s19 + $0x20] sm:$0xff] }
 0x7a0   :  { %v2344_v7 = vpack.c.bf16 %v2328_v27, %v2327_v45 }
 0x7a2   :  { %2364 = vmatpush.bf16.msra.mxu0 %v2344_v7 }
 0x7a4   :  { %v2190_v14 = vpop.f32.mrf.mxu0  ;;  %v2153_v57 = vpop.f32.mrf.mxu1 }
 0x7a5   :  { %v2299_v28 = vmul.f32 %v2267_v22, %v2190_v14  ;;  %v3500_v22 = vld [vmem:[%s5086_s21 + $0x20] sm:$0xff] }
 0x7a6   :  { %2365 = vmatpush.bf16.msra.mxu0 %v2343_v37  ;;  %v2271_v37 = vld [vmem:[%s5120_s14 + $0x30] sm:$0xff] }
 0x7aa   :  { %2366 = vmatpush.bf16.msra.mxu0 %v2342_v58  ;;  %v2162_v58 = vmul.f32 %v4669_v51, %v4813_v55  ;;  %v3503_v51 = vld [vmem:[%s5086_s21 + $0x38] sm:$0xff]  ;;  %v3486_v55 = vld [vmem:[%s5084_s19 + $0x30] sm:$0xff] }
 0x7ab   :  { %2498 = vmatpush.bf16.msra.mxu1 %v3486_v55 }
 0x7ac   :  { %v2192_v16 = vpop.f32.mrf.mxu0  ;;  %v2156_v43 = vpop.f32.mrf.mxu1 }
 0x7ad   :  { %v2300_v52 = vmul.f32 %v2268_v24, %v2192_v16  ;;  %v3483_v24 = vld [vmem:[%s5084_s19 + $0x18] sm:$0xff] }
 0x7ae   :  { %2367 = vmatpush.bf16.msra.mxu0 %v2341_v44  ;;  %v2170_v44 = vpack.c.bf16 %v2164_v17, %v2162_v58  ;;  %v3491_v16 = vld [vmem:[%s5085_s20 + $0x18] sm:$0xff] }
 0x7af   :  { %v2330_v32 = vpack.c.bf16 %v2300_v52, %v2299_v28  ;;  %2499 = vmatpush.bf16.msra.mxu1 %v3485_v1  ;;  %v3499_v28 = vld [vmem:[%s5086_s21 + $0x18] sm:$0xff]  ;;  %v3482_v52 = vld [vmem:[%s5084_s19 + $0x10] sm:$0xff] }
 0x7b2   :  { %2368 = vmatpush.bf16.msra.mxu0 %v2340_v8  ;;  %v2165_v8 = vmul.f32 %v4677_v10, %v2153_v57  ;;  %v2167_v10 = vmul.f32 %v4683_v25, %v2156_v43  ;;  %v3498_v57 = vld [vmem:[%s5086_s21 + $0x10] sm:$0xff] }
 0x7b3   :  { %2500 = vmatpush.bf16.msra.mxu1 %v3484_v19 }
 0x7b4   :  { %v2195_v26 = vpop.f32.mrf.mxu0  ;;  %v2159_v39 = vpop.f32.mrf.mxu1 }
 0x7b5   :  { %v2301_v46 = vmul.f32 %v2269_v33, %v2195_v26  ;;  %v3481_v33 = vld [vmem:[%s5084_s19 + $0x8] sm:$0xff] }
 0x7b6   :  { %2369 = vmatpush.bf16.msra.mxu0 %v2339_v15  ;;  %v2171_v15 = vpack.c.bf16 %v2165_v8, %v2163_v41  ;;  %v3497_v8 = vld [vmem:[%s5086_s21 + $0x8] sm:$0xff]  ;;  %v3488_v41 = vld [vmem:[%s5085_s20] sm:$0xff] }
 0x7b7   :  { %2501 = vmatpush.bf16.msra.mxu1 %v3483_v24 }
 0x7ba   :  { %2370 = vmatpush.bf16.msra.mxu0 %v2338_v60  ;;  %v2169_v60 = vmul.f32 %v4689_v53, %v2159_v39  ;;  %v2276_v53 = vld [vmem:[%s5120_s14 + $0x58] sm:$0xff] }
 0x7bb   :  { %2502 = vmatpush.bf16.msra.mxu1 %v3482_v52 }
 0x7bc   :  { %v2197_v42 = vpop.f32.mrf.mxu0  ;;  %v2173_v29 = vpack.c.bf16 %v2169_v60, %v2167_v10 }
 0x7bd   :  { %v2302_v12 = vmul.f32 %v2270_v50, %v2197_v42  ;;  %v3489_v50 = vld [vmem:[%s5085_s20 + $0x8] sm:$0xff]  ;;  %v3480_v42 = vld [vmem:[%s5084_s19] sm:$0xff]  ;;  %s5121_s19 = sld [smem:[#allocation8_spill]] }
 0x7be   :  { %2371 = vmatpush.bf16.msra.mxu0 %v2337_v3 }
 0x7bf   :  { %v2331_v62 = vpack.c.bf16 %v2302_v12, %v2301_v46  ;;  %2503 = vmatpush.bf16.msra.mxu1 %v3481_v33  ;;  %v3496_v46 = vld [vmem:[%s5086_s21] sm:$0xff] }
 0x7c0   :  { %v3518_v12 = vld [vmem:[%s5082_s17] ss:$0 sm:$0xff] }
 0x7c1   :  { %2372 = vmatmul.bf16.vlgmr.msra.gmra.mxu0 %v2171_v15 }
 0x7c2   :  { %2663 = vmatpush.bf16.msrb.mxu0 %v3503_v51 }
 0x7c3   :  { %2504 = vmatpush.bf16.msra.mxu1 %v3480_v42 }
 0x7c4   :  { %v2200_v4 = vpop.f32.mrf.mxu0 }
 0x7c5   :  { %v2303_v14 = vmul.f32 %v2271_v37, %v2200_v4 }
 0x7c6   :  { %2664 = vmatpush.bf16.msrb.mxu0 %v3502_v13 }
 0x7ca   :  { %2665 = vmatpush.bf16.msrb.mxu0 %v3501_v40 }
 0x7cc   :  { %v2202_v56 = vpop.f32.mrf.mxu0 }
 0x7cd   :  { %v2304_v61 = vmul.f32 %v2272_v30, %v2202_v56 }
 0x7ce   :  { %2666 = vmatpush.bf16.msrb.mxu0 %v3500_v22 }
 0x7cf   :  { %v2332_v11 = vpack.c.bf16 %v2304_v61, %v2303_v14 }
 0x7d1   :  { %2377 = vmatmul.bf16.gmra.mxu0 %v2173_v29 }
 0x7d2   :  { %2667 = vmatpush.bf16.msrb.mxu0 %v3499_v28 }
 0x7d4   :  { %v2205_v54 = vpop.f32.mrf.mxu0 }
 0x7d5   :  { %v2305_v36 = vmul.f32 %v2273_v49, %v2205_v54 }
 0x7d6   :  { %2668 = vmatpush.bf16.msrb.mxu0 %v3498_v57 }
 0x7da   :  { %2669 = vmatpush.bf16.msrb.mxu0 %v3497_v8 }
 0x7dc   :  { %v2207_v63 = vpop.f32.mrf.mxu0 }
 0x7dd   :  { %v2306_v48 = vmul.f32 %v2274_v31, %v2207_v63 }
 0x7de   :  { %2670 = vmatpush.bf16.msrb.mxu0 %v3496_v46 }
 0x7df   :  { %v2333_v21 = vpack.c.bf16 %v2306_v48, %v2305_v36 }
 0x7e4   :  { %v2210_v34 = vpop.f32.mrf.mxu0 }
 0x7e5   :  { %v2307_v27 = vmul.f32 %v2275_v23, %v2210_v34 }
 0x7ec   :  { %v2212_v5 = vpop.f32.mrf.mxu0 }
 0x7ed   :  { %v2308_v18 = vmul.f32 %v2276_v53, %v2212_v5 }
 0x7ef   :  { %v2334_v7 = vpack.c.bf16 %v2308_v18, %v2307_v27  ;;  %v3721_v18 = vmov 0  }
 0x7f0   :  { %3515 = vset.pattern.permute.xlu2 %v3721_v18  ;;  %3516 = vset.pattern.permute.xlu0 %v3721_v18 }
 0x7f1   :  { %3517 = vset.pattern.permute.xlu1 %v3721_v18 }
 0x7f4   :  { %v2215_v35 = vpop.f32.mrf.mxu0 }
 0x7f5   :  { %v2309_v3 = vmul.f32 %v2277_v59, %v2215_v35 }
 0x7fc   :  { %v2217_v25 = vpop.f32.mrf.mxu0 }
 0x7fd   :  { %v2310_v45 = vmul.f32 %v2278_v20, %v2217_v25 }
 0x7ff   :  { %v2335_v6 = vpack.c.bf16 %v2310_v45, %v2309_v3 }
 0x801   :  { %2346 = vmatpush.bf16.msrb.mxu3 %v2335_v6 }
 0x805   :  { %2347 = vmatpush.bf16.msrb.mxu3 %v2334_v7 }
 0x809   :  { %2348 = vmatpush.bf16.msrb.mxu3 %v2333_v21 }
 0x80d   :  { %2349 = vmatpush.bf16.msrb.mxu3 %v2332_v11 }
 0x811   :  { %2350 = vmatpush.bf16.msrb.mxu3 %v2331_v62  ;;  %v3519_v62 = vld [vmem:[%s5083_s18] ss:$0 sm:$0xff] }
 0x815   :  { %2351 = vmatpush.bf16.msrb.mxu3 %v2330_v32  ;;  %v3490_v32 = vld [vmem:[%s5085_s20 + $0x10] sm:$0xff] }
 0x819   :  { %2352 = vmatpush.bf16.msrb.mxu3 %v2329_v9  ;;  %v3492_v9 = vld [vmem:[%s5085_s20 + $0x20] sm:$0xff] }
 0x81c   :  { %2353 = vmatmul.bf16.vlgmr.msrb.gmra.mxu3 %v2170_v44 }
 0x81d   :  { %2580 = vmatpush.bf16.msra.mxu3 %v3495_v38 }
 0x821   :  { %2581 = vmatpush.bf16.msra.mxu3 %v3494_v47 }
 0x82c   :  { %2358 = vmatmul.bf16.gmra.mxu3 %v2172_v2  ;;  %v3493_v2 = vld [vmem:[%s5085_s20 + $0x28] sm:$0xff] }
 0x82d   :  { %2582 = vmatpush.bf16.msra.mxu3 %v3493_v2 }
 0x831   :  { %2583 = vmatpush.bf16.msra.mxu3 %v3492_v9 }
 0x835   :  { %2584 = vmatpush.bf16.msra.mxu3 %v3491_v16 }
 0x839   :  { %2585 = vmatpush.bf16.msra.mxu3 %v3490_v32 }
 0x83d   :  { %2586 = vmatpush.bf16.msra.mxu3 %v3489_v50 }
 0x83e   :  { %v2373_v26 = vpop.f32.mrf.mxu0 }
 0x841   :  { %2587 = vmatpush.bf16.msra.mxu3 %v3488_v41 }
 0x846   :  { %v2375_v39 = vpop.f32.mrf.mxu0 }
 0x84e   :  { %v2378_v5 = vpop.f32.mrf.mxu0 }
 0x856   :  { %v2380_v31 = vpop.f32.mrf.mxu0 }
 0x89f   :  { %v2354_v43 = vpop.f32.mrf.mxu3 }
 0x8a0   :  { %v2374_v15 = vadd.f32 %v2373_v26, %v2354_v43 }
 0x8a2   :  { %v2387_v4 = vmul.f32 %v3518_v12, %v2374_v15 }
 0x8a4   :  { %v2395_v60 = vadd.f32 %v3519_v62, %v2387_v4 }
 0x8a6   :  { %v2403_v56 = vmin.f32 %v2395_v60, 0.0  ;;  %vm2399_vm11 = vcmp.gt.f32.partialorder %v2395_v60, 0.0 }
 0x8a7   :  { %v2356_v10 = vpop.f32.mrf.mxu3 }
 0x8a8   :  { %v2407_v29 = vmul.f32 1.442695, %v2403_v56  ;;  %v2376_v54 = vadd.f32 %v2375_v39, %v2356_v10 }
 0x8aa   :  { %3586 = vpow2.f32 %v2407_v29  ;;  %v2388_v63 = vmul.f32 %v3518_v12, %v2376_v54 }
 0x8ac   :  { %v2396_v34 = vadd.f32 %v3519_v62, %v2388_v63 }
 0x8ae   :  { %v2404_v35 = vmin.f32 %v2396_v34, 0.0  ;;  %vm2400_vm12 = vcmp.gt.f32.partialorder %v2396_v34, 0.0 }
 0x8af   :  { %v2359_v59 = vpop.f32.mrf.mxu3 }
 0x8b0   :  { %v3587_v20 = vpop.eup %3586  ;;  %v2409_v53 = vmul.f32 1.442695, %v2404_v35  ;;  %v2379_v25 = vadd.f32 %v2378_v5, %v2359_v59  ;;  %v2748_v5 = vld [vmem:[%s5121_s19 + $0x8] sm:$0xff]  ;;  %v2747_v35 = vld [vmem:[%s5121_s19] sm:$0xff] }
 0x8b1   :  { %v3310_v45 = vadd.f32 -1.0, %v3587_v20 }
 0x8b2   :  { %3588 = vpow2.f32 %v2409_v53  ;;  %v2389_v3 = vmul.f32 %v3518_v12, %v2379_v25 }
 0x8b3   :  { %v2419_v27 = vmul.f32 1.6732632, %v3310_v45 }
 0x8b4   :  { %v2397_v23 = vadd.f32 %v3519_v62, %v2389_v3 }
 0x8b5   :  { %v2423_v61 = vsel %vm2399_vm11, %v2395_v60, %v2419_v27 }
 0x8b6   :  { %v2405_v6 = vmin.f32 %v2397_v23, 0.0  ;;  %v2427_v17 = vmul.f32 1.050701, %v2423_v61  ;;  %vm2401_vm13 = vcmp.gt.f32.partialorder %v2397_v23, 0.0 }
 0x8b7   :  { %v2361_v49 = vpop.f32.mrf.mxu3 }
 0x8b8   :  { %v3589_v48 = vpop.eup %3588  ;;  %v2411_v7 = vmul.f32 1.442695, %v2405_v6  ;;  %v2381_v30 = vadd.f32 %v2380_v31, %v2361_v49  ;;  %v2749_v31 = vld [vmem:[%s5121_s19 + $0x10] sm:$0xff] }
 0x8b9   :  { %v3311_v36 = vadd.f32 -1.0, %v3589_v48 }
 0x8ba   :  { %3590 = vpow2.f32 %v2411_v7  ;;  %v2390_v37 = vmul.f32 %v3518_v12, %v2381_v30  ;;  %v2750_v30 = vld [vmem:[%s5121_s19 + $0x18] sm:$0xff] }
 0x8bb   :  { %v2420_v21 = vmul.f32 1.6732632, %v3311_v36 }
 0x8bc   :  { %v2398_v14 = vadd.f32 %v3519_v62, %v2390_v37 }
 0x8bd   :  { %v2424_v11 = vsel %vm2400_vm12, %v2396_v34, %v2420_v21 }
 0x8be   :  { %v2428_v58 = vmul.f32 1.050701, %v2424_v11  ;;  %v2406_v44 = vmin.f32 %v2398_v14, 0.0  ;;  %vm2402_vm14 = vcmp.gt.f32.partialorder %v2398_v14, 0.0 }
 0x8c0   :  { %v3591_v0 = vpop.eup %3590  ;;  %v2431_v38 = vpack.c.bf16 %v2428_v58, %v2427_v17  ;;  %v2413_v51 = vmul.f32 1.442695, %v2406_v44 }
 0x8c1   :  { %v3312_v55 = vadd.f32 -1.0, %v3591_v0 }
 0x8c2   :  { %3592 = vpow2.f32 %v2413_v51  ;;  %2505 = vmatmul.bf16.vlgmr.msra.gmra.mxu1 %v2431_v38  ;;  %2588 = vmatmul.bf16.vlgmr.msra.gmra.mxu3 %v2431_v38 }
 0x8c3   :  { %2671 = vmatmul.bf16.vlgmr.msrb.gmra.mxu0 %v2431_v38  ;;  %v2421_v47 = vmul.f32 1.6732632, %v3312_v55 }
 0x8c5   :  { %v2425_v40 = vsel %vm2401_vm13, %v2397_v23, %v2421_v47 }
 0x8c6   :  { %v2429_v9 = vmul.f32 1.050701, %v2425_v40 }
 0x8c8   :  { %v3593_v13 = vpop.eup %3592 }
 0x8c9   :  { %v3313_v1 = vadd.f32 -1.0, %v3593_v13 }
 0x8cb   :  { %v2422_v2 = vmul.f32 1.6732632, %v3313_v1 }
 0x8cd   :  { %v2426_v19 = vsel %vm2402_vm14, %v2398_v14, %v2422_v2 }
 0x8ce   :  { %v2430_v22 = vmul.f32 1.050701, %v2426_v19 }
 0x8d0   :  { %v2432_v24 = vpack.c.bf16 %v2430_v22, %v2429_v9 }
 0x8d2   :  { %2510 = vmatmul.bf16.gmra.mxu1 %v2432_v24  ;;  %2593 = vmatmul.bf16.gmra.mxu3 %v2432_v24 }
 0x8d3   :  { %2676 = vmatmul.bf16.gmra.mxu0 %v2432_v24 }
 0x93f   :  { %v2506_v16 = vpop.f32.mrf.mxu1 }
 0x940   :  { %v2672_v28 = vpop.f32.mrf.mxu0 }
 0x941   :  { %2716 = vperm.xlu2 %3515, %v2672_v28   ;;  %v2832_v28 = vld [vmem:[%s5088_s23] sm:$0xff] }
 0x945   :  { %v2589_v41 = vpop.f32.mrf.mxu3 }
 0x947   :  { %v2508_v52 = vpop.f32.mrf.mxu1 }
 0x948   :  { %v2674_v32 = vpop.f32.mrf.mxu0  ;;  %v2801_v42 = vpack.c.bf16 %v2508_v52, %v2506_v16  ;;  %v2833_v16 = vld [vmem:[%s5088_s23 + $0x8] sm:$0xff] }
 0x949   :  { %2721 = vperm.xlu0 %3516, %v2674_v32   ;;  %2865 = vmatpush.msrb.mxu3 %v2833_v16 }
 0x94b   :  { %2866 = vmatpush.msrb.mxu3 %v2832_v28 }
 0x94d   :  { %v2591_v46 = vpop.f32.mrf.mxu3 }
 0x94f   :  { %v2511_v57 = vpop.f32.mrf.mxu1 }
 0x950   :  { %v2677_v26 = vpop.f32.mrf.mxu0 }
 0x951   :  { %2726 = vperm.xlu1 %3517, %v2677_v26  }
 0x955   :  { %v2594_v12 = vpop.f32.mrf.mxu3 }
 0x957   :  { %v2513_v33 = vpop.f32.mrf.mxu1 }
 0x958   :  { %v2802_v50 = vpack.c.bf16 %v2513_v33, %v2511_v57  ;;  %v2679_v8 = vpop.f32.mrf.mxu0 }
 0x959   :  { %2731 = vperm.xlu2 %3515, %v2679_v8  }
 0x95a   :  { %2819 = vmatpush.bf16.msrb.mxu1 %v2802_v50 }
 0x95d   :  { %v2596_v43 = vpop.f32.mrf.mxu3 }
 0x95e   :  { %2820 = vmatpush.bf16.msrb.mxu1 %v2801_v42 }
 0x97f   :  { %2682 = vxpose.xlu2.b32.start [1/4] (short) (narrow) %v2589_v41, 8 }
 0x987   :  { %2683 = vxpose.xlu2.b32.cont [2/4] (short) (narrow) %v2591_v46, 8 }
 0x98f   :  { %2684 = vxpose.xlu2.b32.cont [3/4] (short) (narrow) %v2594_v12, 8 }
 0x997   :  { %2685 = vxpose.xlu2.b32.end [4/4] (short) (narrow) %v2596_v43, 8 }
 0x99b   :  { %v2717_v15 = vpop.permute.xlu2 %2716 }
 0x9b3   :  { %v2732_v62 = vpop.permute.xlu2 %2731 }
 0x9bb   :  { %v2722_v60 = vpop.permute.xlu0 %2721 }
 0x9c3   :  { %v2727_v56 = vpop.permute.xlu1 %2726 }
 0xa18   :  { %v2698_v4 = vpop.trf.xlu2 }
 0xa19   :  { %v2734_v39 = vperm.slane %v2698_v4, 0  ;;  %v3520_v4 = vld [vmem:[%s5087_s22] ss:$0 sm:$0xff] }
 0xa1b   :  { %v2736_v10 = vadd.f32 %v2734_v39, %v2722_v60  ;;  %v2735_v29 = vadd.f32 %v2734_v39, %v2717_v15  ;;  %v2737_v54 = vadd.f32 %v2734_v39, %v2727_v56  ;;  %v2738_v6 = vadd.f32 %v2734_v39, %v2732_v62 }
 0xa1d   :  { %v2740_v63 = vmul.f32 0.2, %v2736_v10  ;;  %v2739_v34 = vmul.f32 0.2, %v2735_v29  ;;  %v2741_v53 = vmul.f32 0.2, %v2737_v54 }
 0xa1e   :  { %v2742_v49 = vmul.f32 0.2, %v2738_v6 }
 0xa1f   :  { %v2744_v59 = vmax.f32 %v2736_v10, %v2740_v63  ;;  %v2743_v20 = vmax.f32 %v2735_v29, %v2739_v34  ;;  %v2745_v18 = vmax.f32 %v2737_v54, %v2741_v53 }
 0xa20   :  { %v2746_v7 = vmax.f32 %v2738_v6, %v2742_v49 }
 0xa21   :  { %v2752_v25 = vadd.f32 %v2748_v5, %v2744_v59  ;;  %v2751_v3 = vadd.f32 %v2747_v35, %v2743_v20  ;;  %v2753_v27 = vadd.f32 %v2749_v31, %v2745_v18  ;;  %v3521_v5 = vld [vmem:[#allocation2] ss:$0 sm:$0xff] }
 0xa22   :  { %v2754_v36 = vadd.f32 %v2750_v30, %v2746_v7 }
 0xa23   :  { %v2758_v45 = vsel %vm747_vm2, %v2752_v25, -inf  ;;  %v2755_v23 = vsel %vm747_vm2, %v2751_v3, -inf  ;;  %v2761_v48 = vsel %vm747_vm2, %v2753_v27, -inf }
 0xa24   :  { %2759 = vmax.xlane.f32.xlu0 %v2758_v45  ;;  %2756 = vmax.xlane.f32.xlu1 %v2755_v23  ;;  %v2764_v37 = vsel %vm747_vm2, %v2754_v36, -inf }
 0xa2c   :  { %2762 = vmax.xlane.f32.xlu1 %v2761_v48 }
 0xa34   :  { %2765 = vmax.xlane.f32.xlu1 %v2764_v37 }
 0xa97   :  { %v2760_v61 = vpop.xlane.xlu0 %2759  ;;  %v2757_v21 = vpop.xlane.xlu1 %2756 }
 0xa98   :  { %v2768_v14 = vsub.f32 %v2752_v25, %v2760_v61  ;;  %v2767_v11 = vsub.f32 %v2751_v3, %v2757_v21 }
 0xa9a   :  { %v2773_v17 = vmul.f32 1.442695, %v2768_v14  ;;  %v2771_v58 = vmul.f32 1.442695, %v2767_v11 }
 0xa9c   :  { %3594 = vpow2.f32 %v2773_v17 }
 0xa9d   :  { %3596 = vpow2.f32 %v2771_v58 }
 0xa9f   :  { %v2763_v44 = vpop.xlane.xlu1 %2762 }
 0xaa0   :  { %v2769_v0 = vsub.f32 %v2753_v27, %v2763_v44 }
 0xaa2   :  { %v3595_v38 = vpop.eup %3594  ;;  %v2775_v51 = vmul.f32 1.442695, %v2769_v0 }
 0xaa3   :  { %v3597_v55 = vpop.eup %3596  ;;  %v2782_v47 = vsel %vm747_vm2, %v3595_v38, 0.0 }
 0xaa4   :  { %3598 = vpow2.f32 %v2775_v51  ;;  %2783 = vadd.xlane.f32.xlu1 %v2782_v47  ;;  %v2779_v13 = vsel %vm747_vm2, %v3597_v55, 0.0 }
 0xaa5   :  { %2780 = vadd.xlane.f32.xlu0 %v2779_v13 }
 0xaa7   :  { %v2766_v1 = vpop.xlane.xlu1 %2765 }
 0xaa8   :  { %v2770_v2 = vsub.f32 %v2754_v36, %v2766_v1 }
 0xaaa   :  { %v3599_v40 = vpop.eup %3598  ;;  %v2777_v19 = vmul.f32 1.442695, %v2770_v2 }
 0xaab   :  { %v2785_v9 = vsel %vm747_vm2, %v3599_v40, 0.0 }
 0xaac   :  { %3600 = vpow2.f32 %v2777_v19  ;;  %2786 = vadd.xlane.f32.xlu2 %v2785_v9 }
 0xab2   :  { %v3601_v22 = vpop.eup %3600 }
 0xab3   :  { %v2788_v24 = vsel %vm747_vm2, %v3601_v22, 0.0 }
 0xab4   :  { %2789 = vadd.xlane.f32.xlu0 %v2788_v24 }
 0xb17   :  { %v2784_v52 = vpop.xlane.xlu1 %2783 }
 0xb18   :  { %v2781_v32 = vpop.xlane.xlu0 %2780  ;;  %3602 = vrcp.f32 %v2784_v52 }
 0xb19   :  { %3604 = vrcp.f32 %v2781_v32 }
 0xb1e   :  { %v3603_v57 = vpop.eup %3602 }
 0xb1f   :  { %v3605_v26 = vpop.eup %3604  ;;  %v2796_v33 = vmul.f32 %v3603_v57, %v3595_v38  ;;  %v2787_v42 = vpop.xlane.xlu2 %2786 }
 0xb20   :  { %v2795_v50 = vmul.f32 %v3605_v26, %v3597_v55  ;;  %3606 = vrcp.f32 %v2787_v42 }
 0xb22   :  { %v2799_v8 = vpack.c.bf16 %v2796_v33, %v2795_v50 }
 0xb24   :  { %3410 = vmatmul.msk.bf16.vlgmr.msrb.gmra.mxu1 %vm747_vm2, %v2799_v8 }
 0xb26   :  { %v3607_v46 = vpop.eup %3606 }
 0xb27   :  { %v2790_v41 = vpop.xlane.xlu0 %2789  ;;  %v2797_v43 = vmul.f32 %v3607_v46, %v3599_v40 }
 0xb28   :  { %3608 = vrcp.f32 %v2790_v41 }
 0xb2e   :  { %v3609_v12 = vpop.eup %3608 }
 0xb2f   :  { %v2798_v15 = vmul.f32 %v3609_v12, %v3601_v22 }
 0xb31   :  { %v2800_v62 = vpack.c.bf16 %v2798_v15, %v2797_v43 }
 0xb34   :  { %3411 = vmatmul.msk.bf16.gmra.mxu1 %vm747_vm2, %v2800_v62 }
 0xba1   :  { %v2822_v39 = vpop.f32.mrf.mxu1 }
 0xba2   :  { %v2823_v60 = vadd.f32 %v3520_v4, %v2822_v39 }
 0xba4   :  { %3412 = vmatmul.msk.f32.vlgmr.msrb.gmra.mxu3 %vm2838_vm15, %v2823_v60 }
 0xba9   :  { %v2824_v56 = vpop.f32.mrf.mxu1 }
 0xbaa   :  { %v2825_v10 = vadd.f32 %v3520_v4, %v2824_v56 }
 0xbac   :  { %3413 = vmatmul.msk.f32.gmra.mxu3 %vm2838_vm15, %v2825_v10 }
 0xbb1   :  { %v2827_v29 = vpop.f32.mrf.mxu1 }
 0xbb2   :  { %v2828_v54 = vadd.f32 %v3520_v4, %v2827_v29 }
 0xbb4   :  { %3414 = vmatmul.msk.f32.gmra.mxu3 %vm2838_vm15, %v2828_v54 }
 0xbb9   :  { %v2829_v63 = vpop.f32.mrf.mxu1 }
 0xbba   :  { %v2830_v34 = vadd.f32 %v3520_v4, %v2829_v63 }
 0xbbc   :  { %3415 = vmatmul.msk.f32.gmra.mxu3 %vm2838_vm15, %v2830_v34 }
 0xc27   :  { %v2868_v35 = vpop.f32.mrf.mxu3 }
 0xc28   :  { %v2869_v59 = vadd.f32 %v3521_v5, %v2868_v35 }
 0xc2a   :  { %v2880_v20 = vsub.f32 0.0, %v2869_v59 }
 0xc2c   :  { %v2884_v53 = vmul.f32 1.442695, %v2880_v20 }
 0xc2e   :  { %3610 = vpow2.f32 %v2884_v53 }
 0xc2f   :  { %v2871_v25 = vpop.f32.mrf.mxu3 }
 0xc30   :  { %v2872_v3 = vadd.f32 %v3521_v5, %v2871_v25 }
 0xc32   :  { %v2881_v45 = vsub.f32 0.0, %v2872_v3 }
 0xc34   :  { %v3611_v23 = vpop.eup %3610  ;;  %v2886_v18 = vmul.f32 1.442695, %v2881_v45 }
 0xc35   :  { %v2892_v6 = vadd.f32 1.0, %v3611_v23 }
 0xc36   :  { %3612 = vpow2.f32 %v2886_v18 }
 0xc37   :  { %3614 = vrcp.f32 %v2892_v6  ;;  %v2874_v31 = vpop.f32.mrf.mxu3 }
 0xc38   :  { %v2875_v27 = vadd.f32 %v3521_v5, %v2874_v31 }
 0xc3a   :  { %v2882_v49 = vsub.f32 0.0, %v2875_v27 }
 0xc3c   :  { %v3613_v48 = vpop.eup %3612  ;;  %v2888_v7 = vmul.f32 1.442695, %v2882_v49 }
 0xc3d   :  { %v3615_v30 = vpop.eup %3614  ;;  %v2893_v36 = vadd.f32 1.0, %v3613_v48 }
 0xc3e   :  { %2901 = vst.msk [vmem:[%s5091_s26] sm:$0xff] %vm2900_vm0, %v3615_v30  ;;  %3616 = vpow2.f32 %v2888_v7  ;;  %2907 = vperm.xlu1 %3517, %v3615_v30  }
 0xc3f   :  { %3618 = vrcp.f32 %v2893_v36  ;;  %v2877_v37 = vpop.f32.mrf.mxu3 }
 0xc40   :  { %v2878_v61 = vadd.f32 %v3521_v5, %v2877_v37 }
 0xc42   :  { %v2883_v21 = vsub.f32 0.0, %v2878_v61 }
 0xc44   :  { %v3617_v14 = vpop.eup %3616  ;;  %v2890_v11 = vmul.f32 1.442695, %v2883_v21 }
 0xc45   :  { %v3619_v17 = vpop.eup %3618  ;;  %v2894_v58 = vadd.f32 1.0, %v3617_v14 }
 0xc46   :  { %2902 = vst.msk [vmem:[%s5091_s26 + $0x8] sm:$0xff] %vm2900_vm0, %v3619_v17  ;;  %3620 = vpow2.f32 %v2890_v11  ;;  %2912 = vperm.xlu0 %3516, %v3619_v17  }
 0xc47   :  { %3622 = vrcp.f32 %v2894_v58 }
 0xc4c   :  { %v3621_v44 = vpop.eup %3620 }
 0xc4d   :  { %v3623_v0 = vpop.eup %3622  ;;  %v2895_v38 = vadd.f32 1.0, %v3621_v44 }
 0xc4e   :  { %2903 = vst.msk [vmem:[%s5091_s26 + $0x10] sm:$0xff] %vm2900_vm0, %v3623_v0  ;;  %2917 = vperm.xlu1 %3517, %v3623_v0  }
 0xc4f   :  { %3624 = vrcp.f32 %v2895_v38 }
 0xc55   :  { %v3625_v51 = vpop.eup %3624 }
 0xc56   :  { %2904 = vst.msk [vmem:[%s5091_s26 + $0x18] sm:$0xff] %vm2900_vm0, %v3625_v51  ;;  %2922 = vperm.xlu0 %3516, %v3625_v51  }
 0xcb0   :  { %v2908_v55 = vpop.permute.xlu1 %2907 }
 0xcb1   :  { %v2925_v47 = vmul.f32 %v2908_v55, %v2823_v60 }
 0xcb3   :  { %2929 = vst.msk [vmem:[%s5090_s25] sm:$0xff] %vm2838_vm15, %v2925_v47 }
 0xcb8   :  { %v2913_v13 = vpop.permute.xlu0 %2912 }
 0xcb9   :  { %v2926_v1 = vmul.f32 %v2913_v13, %v2825_v10 }
 0xcbb   :  { %2930 = vst.msk [vmem:[%s5090_s25 + $0x8] sm:$0xff] %vm2838_vm15, %v2926_v1 }
 0xcc0   :  { %v2918_v2 = vpop.permute.xlu1 %2917 }
 0xcc1   :  { %v2927_v40 = vmul.f32 %v2918_v2, %v2828_v54 }
 0xcc3   :  { %2931 = vst.msk [vmem:[%s5090_s25 + $0x10] sm:$0xff] %vm2838_vm15, %v2927_v40 }
 0xcc8   :  { %v2923_v19 = vpop.permute.xlu0 %2922 }
 0xcc9   :  { %v2928_v9 = vmul.f32 %v2923_v19, %v2830_v34 }
 0xccb   :  { %2932 = vst.msk [vmem:[%s5090_s25 + $0x18] sm:$0xff] %vm2838_vm15, %v2928_v9 }
 0xccc   :  { %2941 = vsyncpa [#allocation4], 1 }

</bundles_post_ra>
